<compile_context>
chip_gen: v7x
topology: tpu7x:2x2x1
jax: 0.10.0
libtpu: 0.0.40
codegen_flags: <defaults>
</compile_context>

<pallas_src>
import functools

import numpy as np
import jax
import jax.numpy as jnp
from jax.experimental import pallas as pl
from jax.experimental.pallas import tpu as pltpu


# ----------------------------------------------------------------------------
# Host-side constant matrices (shape-only; built once with numpy at trace time)
# ----------------------------------------------------------------------------
def _scatter_into_padded_flat(h, w):
    """(H*W, Lbuf) 0/1 matrix: dense pixel (i,j) -> margin + padded-flat index.
    x_flat(C, H*W) @ S  gives the zero-haloed, margin-extended flat layout."""
    wp = w + 2
    lp = (h + 2) * wp
    m = wp + 1
    lbuf = lp + 2 * m
    s = np.zeros((h * w, lbuf), np.float32)
    idx = np.arange(h * w)
    i, j = idx // w, idx % w
    s[idx, m + (i + 1) * wp + (j + 1)] = 1.0
    return s


def _upsample_into_padded_flat(h, w):
    """(Lp1, Lbuf2) 0/1 matrix: nearest-2x upsample of the layer-1 interior
    straight into the zero-haloed, margin-extended layer-2 flat layout.
    Rows at layer-1 halo positions are all-zero, so conv1's (discarded) halo
    garbage never propagates."""
    wp1 = w + 2
    lp1 = (h + 2) * wp1
    h2, w2 = 2 * h, 2 * w
    wp2 = w2 + 2
    lp2 = (h2 + 2) * wp2
    m2 = wp2 + 1
    lbuf2 = lp2 + 2 * m2
    r = np.zeros((lp1, lbuf2), np.float32)
    oi = np.arange(h2 * w2) // w2
    oj = np.arange(h2 * w2) % w2
    src = (oi // 2 + 1) * wp1 + (oj // 2 + 1)          # padded-flat source index
    dst = m2 + (oi + 1) * wp2 + (oj + 1)               # margin+padded-flat dest
    r[src, dst] = 1.0
    return r


def _interior_mask_flat(h, w):
    """(1, Lp) 0/1 mask: 1 at interior padded-flat positions, 0 at halos."""
    wp = w + 2
    p = np.arange((h + 2) * wp)
    r, c = p // wp, p % wp
    m = ((r >= 1) & (r <= h) & (c >= 1) & (c <= w)).astype(np.float32)
    return m.reshape(1, -1)


# ----------------------------------------------------------------------------
# Fused decoder kernel (one batch element per grid step)
# ----------------------------------------------------------------------------
def _decoder_kernel(x_ref, s1_ref, up_ref, w1_ref, b1_ref, w2_ref, b2_ref,
                    w3_ref, b3_ref, mask2_ref, o_ref, xp3_ref, *,
                    wp1, lp1, m1, wp2, lp2, m2):
    f32 = jnp.float32

    def elu(a):
        # ELU(x) = x if x > 0 else exp(x) - 1  (single EUP exp, no divide;
        # argument clamped to <= 0 so exp never overflows on halo garbage).
        return jnp.where(a > 0.0, a, jnp.exp(jnp.minimum(a, 0.0)) - 1.0)

    def conv3x3(src, w_ref, b_ref, wp, lp, m):
        """3x3 'same' conv in padded-flat layout.

        `src` is (Cin, Lbuf) with the real (zero-haloed) data at lane offset m;
        every tap is a static in-register lane slice (offset m + kh*wp + kw),
        fed to a (Cout, Cin) @ (Cin, Lp) MXU matmul.  Outputs at halo lanes are
        garbage and are masked / discarded downstream."""
        cout = w_ref.shape[1]
        acc = jnp.zeros((cout, lp), f32)
        t = 0
        for kh in (-1, 0, 1):
            for kw in (-1, 0, 1):
                off = m + kh * wp + kw
                tap = src[:, off:off + lp]                       # static slice
                acc = acc + jnp.dot(w_ref[t], tap, preferred_element_type=f32)
                t += 1
        return acc + b_ref[...]

    # ---- conv1 (Cin -> Ch) + ELU --------------------------------------------
    x_flat = x_ref[0].astype(f32)                                  # (Cin, H*W)
    x1 = jnp.dot(x_flat, s1_ref[...], preferred_element_type=f32)  # (Cin, Lbuf1)
    y1 = elu(conv3x3(x1, w1_ref, b1_ref, wp1, lp1, m1))            # (Ch, Lp1)

    # ---- nearest-2x upsample + re-pad: ONE matmul for all channels -----------
    x2 = jnp.dot(y1, up_ref[...], preferred_element_type=f32)      # (Ch, Lbuf2)

    # ---- conv2 (Ch -> Ch) + ELU, halos forced back to zero -------------------
    y2 = elu(conv3x3(x2, w2_ref, b2_ref, wp2, lp2, m2)) * mask2_ref[...]

    # ---- conv3 input staging: only the thin margin strips are (re)zeroed -----
    nch = xp3_ref.shape[0]
    xp3_ref[:, :m2] = jnp.zeros((nch, m2), f32)
    xp3_ref[:, m2 + lp2:] = jnp.zeros((nch, m2), f32)
    xp3_ref[:, m2:m2 + lp2] = y2
    x3 = xp3_ref[...]                                              # (Ch, Lbuf2)

    # ---- conv3 (Ch -> 1) + exact sigmoid, lane-dense flat store --------------
    y3 = conv3x3(x3, w3_ref, b3_ref, wp2, lp2, m2)                 # (1, Lp2)
    o_ref[0] = (1.0 / (1.0 + jnp.exp(-y3))).astype(o_ref.dtype)


# ----------------------------------------------------------------------------
# Wrapper
# ----------------------------------------------------------------------------
def vit2_decoder_forward(x_nchw, params):
    """Forward pass of VIT2Decoder_light_ada. Input NCHW, output NCHW (B,1,2H,2W)."""
    b, cin, h, w = x_nchw.shape
    ch = params["w1"].shape[-1]
    h2, w2 = 2 * h, 2 * w
    wp1, hp1 = w + 2, h + 2
    lp1, m1 = hp1 * wp1, wp1 + 1
    lbuf1 = lp1 + 2 * m1
    wp2, hp2 = w2 + 2, h2 + 2
    lp2, m2 = hp2 * wp2, wp2 + 1
    lbuf2 = lp2 + 2 * m2
    hw = h * w

    # Shape-only constants (hoisted out of the kernel; fetched once, VMEM-resident).
    s1 = jnp.asarray(_scatter_into_padded_flat(h, w))           # (H*W, Lbuf1)
    up = jnp.asarray(_upsample_into_padded_flat(h, w))          # (Lp1, Lbuf2)
    mask2 = jnp.asarray(_interior_mask_flat(h2, w2))            # (1, Lp2)

    def taps(wgt):   # (3, 3, Ci, Co) HWIO  ->  (9, Co, Ci) per-tap transposed
        ci, co = wgt.shape[2], wgt.shape[3]
        return jnp.transpose(wgt.reshape(9, ci, co), (0, 2, 1)).astype(jnp.float32)

    w1t, w2t, w3t = taps(params["w1"]), taps(params["w2"]), taps(params["w3"])
    b1 = params["b1"].reshape(-1, 1).astype(jnp.float32)
    b2 = params["b2"].reshape(-1, 1).astype(jnp.float32)
    b3 = params["b3"].reshape(-1, 1).astype(jnp.float32)

    # Free contiguous reshape; keep the original dtype (cast happens in-kernel).
    x_flat = x_nchw.reshape(b, cin, hw)

    kernel = functools.partial(_decoder_kernel, wp1=wp1, lp1=lp1, m1=m1,
                               wp2=wp2, lp2=lp2, m2=m2)

    const = lambda *_: tuple(0 for _ in _)   # noqa: E731  (unused; explicit below)

    out_flat = pl.pallas_call(
        kernel,
        out_shape=jax.ShapeDtypeStruct((b, 1, lp2), jnp.float32),
        grid=(b,),
        in_specs=[
            pl.BlockSpec((1, cin, hw), lambda bb: (bb, 0, 0)),      # x
            pl.BlockSpec((hw, lbuf1), lambda bb: (0, 0)),           # scatter S1
            pl.BlockSpec((lp1, lbuf2), lambda bb: (0, 0)),          # upsample R
            pl.BlockSpec((9, ch, cin), lambda bb: (0, 0, 0)),       # w1 taps
            pl.BlockSpec((ch, 1), lambda bb: (0, 0)),               # b1
            pl.BlockSpec((9, ch, ch), lambda bb: (0, 0, 0)),        # w2 taps
            pl.BlockSpec((ch, 1), lambda bb: (0, 0)),               # b2
            pl.BlockSpec((9, 1, ch), lambda bb: (0, 0, 0)),         # w3 taps
            pl.BlockSpec((1, 1), lambda bb: (0, 0)),                # b3
            pl.BlockSpec((1, lp2), lambda bb: (0, 0)),              # interior mask
        ],
        out_specs=pl.BlockSpec((1, 1, lp2), lambda bb: (bb, 0, 0)),
        scratch_shapes=[
            pltpu.VMEM((ch, lbuf2), jnp.float32),   # conv3 input staging buffer
        ],
        compiler_params=pltpu.CompilerParams(
            dimension_semantics=("parallel",),
            vmem_limit_bytes=32 * 1024 * 1024),
    )(x_flat, s1, up, w1t, b1, w2t, b2, w3t, b3, mask2)

    # Wrapper-side layout plumbing only: drop halos of the padded-flat slab.
    out = out_flat.reshape(b, hp2, wp2)[:, 1:1 + h2, 1:1 + w2]
    return out.reshape(b, 1, h2, w2)


def init_decoder_params(cin=4, ch=8, key=jax.random.PRNGKey(0)):
    k1, k2, k3, k4, k5, k6 = jax.random.split(key, 6)
    s = 0.1
    return {
        "w1": jax.random.normal(k1, (3, 3, cin, ch), jnp.float32) * s,   # HWIO
        "b1": jax.random.normal(k4, (ch,), jnp.float32) * s,
        "w2": jax.random.normal(k2, (3, 3, ch, ch), jnp.float32) * s,
        "b2": jax.random.normal(k5, (ch,), jnp.float32) * s,
        "w3": jax.random.normal(k3, (3, 3, ch, 1), jnp.float32) * s,
        "b3": jax.random.normal(k6, (1,), jnp.float32) * s,
    }


# Pure-JAX reference (same math) for a numerical self-check.
def _reference_forward(x_nchw, params):
    def conv(x, wgt, bias):
        y = jax.lax.conv_general_dilated(
            x, wgt, window_strides=(1, 1), padding="SAME",
            dimension_numbers=("NCHW", "HWIO", "NCHW"))
        return y + bias.reshape(1, -1, 1, 1)

    y = jax.nn.elu(conv(x_nchw, params["w1"], params["b1"]))
    y = jnp.repeat(jnp.repeat(y, 2, axis=2), 2, axis=3)      # nearest 2x
    y = jax.nn.elu(conv(y, params["w2"], params["b2"]))
    return jax.nn.sigmoid(conv(y, params["w3"], params["b3"]))


if __name__ == "__main__":
    key = jax.random.PRNGKey(0)
    kx, kp = jax.random.split(key)

    # small NCHW input consistent with the module's conv-decoder forward
    B, C, H, W = 2, 4, 16, 16
    x = jax.random.normal(kx, (B, C, H, W), jnp.float32)
    params = init_decoder_params(cin=C, ch=8, key=kp)

    out = jax.block_until_ready(jax.jit(vit2_decoder_forward)(x, params))

    assert out.shape == (B, 1, 2 * H, 2 * W), out.shape
    assert bool(jnp.all(jnp.isfinite(out)))

    ref = jax.block_until_ready(_reference_forward(x, params))
    max_err = float(jnp.max(jnp.abs(out - ref)))
    # exact sigmoid + exp(x)-1 ELU -> tight tolerance (only summation-order noise)
    assert max_err < 1e-4, f"max abs err vs XLA reference: {max_err}"

    print("KERNEL_OK")
</pallas_src>

<mosaic_0001>
module attributes {stable_mosaic.version = 11 : i64} {
  func.func @_decoder_kernel(%arg0: i32, %arg1: memref<1x4x256xf32, #tpu.memory_space<vmem>>, %arg2: memref<256x362xf32, #tpu.memory_space<vmem>>, %arg3: memref<324x1226xf32, #tpu.memory_space<vmem>>, %arg4: memref<9x8x4xf32, #tpu.memory_space<vmem>>, %arg5: memref<8x1xf32, #tpu.memory_space<vmem>>, %arg6: memref<9x8x8xf32, #tpu.memory_space<vmem>>, %arg7: memref<8x1xf32, #tpu.memory_space<vmem>>, %arg8: memref<9x1x8xf32, #tpu.memory_space<vmem>>, %arg9: memref<1x1xf32, #tpu.memory_space<vmem>>, %arg10: memref<1x1156xf32, #tpu.memory_space<vmem>>, %arg11: memref<1x1x1156xf32, #tpu.memory_space<vmem>>, %arg12: memref<8x1226xf32, #tpu.memory_space<vmem>>) attributes {dimension_semantics = [#tpu.dimension_semantics<parallel>], iteration_bounds = array<i64: 2>, scalar_prefetch = 0 : i64, scratch_operands = 1 : i64, tpu.core_type = #tpu.core_type<tc>, window_params = [{transform_indices = @transform_0, window_bounds = array<i64: 1, 4, 256>}, {pipeline_mode = #tpu.pipeline_mode<synchronous>, transform_indices = @transform_1, window_bounds = array<i64: 256, 362>}, {pipeline_mode = #tpu.pipeline_mode<synchronous>, transform_indices = @transform_2, window_bounds = array<i64: 324, 1226>}, {pipeline_mode = #tpu.pipeline_mode<synchronous>, transform_indices = @transform_3, window_bounds = array<i64: 9, 8, 4>}, {pipeline_mode = #tpu.pipeline_mode<synchronous>, transform_indices = @transform_4, window_bounds = array<i64: 8, 1>}, {pipeline_mode = #tpu.pipeline_mode<synchronous>, transform_indices = @transform_5, window_bounds = array<i64: 9, 8, 8>}, {pipeline_mode = #tpu.pipeline_mode<synchronous>, transform_indices = @transform_6, window_bounds = array<i64: 8, 1>}, {pipeline_mode = #tpu.pipeline_mode<synchronous>, transform_indices = @transform_7, window_bounds = array<i64: 9, 1, 8>}, {pipeline_mode = #tpu.pipeline_mode<synchronous>, transform_indices = @transform_8, window_bounds = array<i64: 1, 1>}, {pipeline_mode = #tpu.pipeline_mode<synchronous>, transform_indices = @transform_9, window_bounds = array<i64: 1, 1156>}, {transform_indices = @transform_10, window_bounds = array<i64: 1, 1, 1156>}]} {
    %c0 = arith.constant 0 : index
    %c0_0 = arith.constant 0 : index
    %c0_1 = arith.constant 0 : index
    %0 = vector.load %arg1[%c0, %c0_0, %c0_1] : memref<1x4x256xf32, #tpu.memory_space<vmem>>, vector<1x4x256xf32>
    %1 = vector.shape_cast %0 : vector<1x4x256xf32> to vector<4x256xf32>
    %c0_2 = arith.constant 0 : index
    %c0_3 = arith.constant 0 : index
    %2 = vector.load %arg2[%c0_2, %c0_3] : memref<256x362xf32, #tpu.memory_space<vmem>>, vector<256x362xf32>
    %cst = arith.constant dense<0.000000e+00> : vector<4x362xf32>
    %3 = tpu.matmul %1, %2, %cst {dimension_numbers = #tpu.dot_dimension_numbers<[1], [0], [0], [1], [0, 0, 1, 1], [], []>} : vector<4x256xf32>, vector<256x362xf32>, vector<4x362xf32> -> vector<4x362xf32>
    %cst_4 = arith.constant 0.000000e+00 : f32
    %4 = vector.broadcast %cst_4 : f32 to vector<8x324xf32>
    %5 = vector.extract_strided_slice %3 {offsets = [0, 0], sizes = [4, 324], strides = [1, 1]} : vector<4x362xf32> to vector<4x324xf32>
    %c0_5 = arith.constant 0 : index
    %c0_6 = arith.constant 0 : index
    %c0_7 = arith.constant 0 : index
    %6 = vector.load %arg4[%c0_5, %c0_6, %c0_7] : memref<9x8x4xf32, #tpu.memory_space<vmem>>, vector<1x8x4xf32>
    %7 = vector.shape_cast %6 : vector<1x8x4xf32> to vector<8x4xf32>
    %cst_8 = arith.constant dense<0.000000e+00> : vector<8x324xf32>
    %8 = tpu.matmul %7, %5, %cst_8 {dimension_numbers = #tpu.dot_dimension_numbers<[1], [0], [0], [1], [0, 0, 1, 1], [], []>} : vector<8x4xf32>, vector<4x324xf32>, vector<8x324xf32> -> vector<8x324xf32>
    %9 = arith.addf %4, %8 : vector<8x324xf32>
    %10 = vector.extract_strided_slice %3 {offsets = [0, 1], sizes = [4, 324], strides = [1, 1]} : vector<4x362xf32> to vector<4x324xf32>
    %c1 = arith.constant 1 : index
    %c0_9 = arith.constant 0 : index
    %c0_10 = arith.constant 0 : index
    %11 = vector.load %arg4[%c1, %c0_9, %c0_10] : memref<9x8x4xf32, #tpu.memory_space<vmem>>, vector<1x8x4xf32>
    %12 = vector.shape_cast %11 : vector<1x8x4xf32> to vector<8x4xf32>
    %cst_11 = arith.constant dense<0.000000e+00> : vector<8x324xf32>
    %13 = tpu.matmul %12, %10, %cst_11 {dimension_numbers = #tpu.dot_dimension_numbers<[1], [0], [0], [1], [0, 0, 1, 1], [], []>} : vector<8x4xf32>, vector<4x324xf32>, vector<8x324xf32> -> vector<8x324xf32>
    %14 = arith.addf %9, %13 : vector<8x324xf32>
    %15 = vector.extract_strided_slice %3 {offsets = [0, 2], sizes = [4, 324], strides = [1, 1]} : vector<4x362xf32> to vector<4x324xf32>
    %c2 = arith.constant 2 : index
    %c0_12 = arith.constant 0 : index
    %c0_13 = arith.constant 0 : index
    %16 = vector.load %arg4[%c2, %c0_12, %c0_13] : memref<9x8x4xf32, #tpu.memory_space<vmem>>, vector<1x8x4xf32>
    %17 = vector.shape_cast %16 : vector<1x8x4xf32> to vector<8x4xf32>
    %cst_14 = arith.constant dense<0.000000e+00> : vector<8x324xf32>
    %18 = tpu.matmul %17, %15, %cst_14 {dimension_numbers = #tpu.dot_dimension_numbers<[1], [0], [0], [1], [0, 0, 1, 1], [], []>} : vector<8x4xf32>, vector<4x324xf32>, vector<8x324xf32> -> vector<8x324xf32>
    %19 = arith.addf %14, %18 : vector<8x324xf32>
    %20 = vector.extract_strided_slice %3 {offsets = [0, 18], sizes = [4, 324], strides = [1, 1]} : vector<4x362xf32> to vector<4x324xf32>
    %c3 = arith.constant 3 : index
    %c0_15 = arith.constant 0 : index
    %c0_16 = arith.constant 0 : index
    %21 = vector.load %arg4[%c3, %c0_15, %c0_16] : memref<9x8x4xf32, #tpu.memory_space<vmem>>, vector<1x8x4xf32>
    %22 = vector.shape_cast %21 : vector<1x8x4xf32> to vector<8x4xf32>
    %cst_17 = arith.constant dense<0.000000e+00> : vector<8x324xf32>
    %23 = tpu.matmul %22, %20, %cst_17 {dimension_numbers = #tpu.dot_dimension_numbers<[1], [0], [0], [1], [0, 0, 1, 1], [], []>} : vector<8x4xf32>, vector<4x324xf32>, vector<8x324xf32> -> vector<8x324xf32>
    %24 = arith.addf %19, %23 : vector<8x324xf32>
    %25 = vector.extract_strided_slice %3 {offsets = [0, 19], sizes = [4, 324], strides = [1, 1]} : vector<4x362xf32> to vector<4x324xf32>
    %c4 = arith.constant 4 : index
    %c0_18 = arith.constant 0 : index
    %c0_19 = arith.constant 0 : index
    %26 = vector.load %arg4[%c4, %c0_18, %c0_19] : memref<9x8x4xf32, #tpu.memory_space<vmem>>, vector<1x8x4xf32>
    %27 = vector.shape_cast %26 : vector<1x8x4xf32> to vector<8x4xf32>
    %cst_20 = arith.constant dense<0.000000e+00> : vector<8x324xf32>
    %28 = tpu.matmul %27, %25, %cst_20 {dimension_numbers = #tpu.dot_dimension_numbers<[1], [0], [0], [1], [0, 0, 1, 1], [], []>} : vector<8x4xf32>, vector<4x324xf32>, vector<8x324xf32> -> vector<8x324xf32>
    %29 = arith.addf %24, %28 : vector<8x324xf32>
    %30 = vector.extract_strided_slice %3 {offsets = [0, 20], sizes = [4, 324], strides = [1, 1]} : vector<4x362xf32> to vector<4x324xf32>
    %c5 = arith.constant 5 : index
    %c0_21 = arith.constant 0 : index
    %c0_22 = arith.constant 0 : index
    %31 = vector.load %arg4[%c5, %c0_21, %c0_22] : memref<9x8x4xf32, #tpu.memory_space<vmem>>, vector<1x8x4xf32>
    %32 = vector.shape_cast %31 : vector<1x8x4xf32> to vector<8x4xf32>
    %cst_23 = arith.constant dense<0.000000e+00> : vector<8x324xf32>
    %33 = tpu.matmul %32, %30, %cst_23 {dimension_numbers = #tpu.dot_dimension_numbers<[1], [0], [0], [1], [0, 0, 1, 1], [], []>} : vector<8x4xf32>, vector<4x324xf32>, vector<8x324xf32> -> vector<8x324xf32>
    %34 = arith.addf %29, %33 : vector<8x324xf32>
    %35 = vector.extract_strided_slice %3 {offsets = [0, 36], sizes = [4, 324], strides = [1, 1]} : vector<4x362xf32> to vector<4x324xf32>
    %c6 = arith.constant 6 : index
    %c0_24 = arith.constant 0 : index
    %c0_25 = arith.constant 0 : index
    %36 = vector.load %arg4[%c6, %c0_24, %c0_25] : memref<9x8x4xf32, #tpu.memory_space<vmem>>, vector<1x8x4xf32>
    %37 = vector.shape_cast %36 : vector<1x8x4xf32> to vector<8x4xf32>
    %cst_26 = arith.constant dense<0.000000e+00> : vector<8x324xf32>
    %38 = tpu.matmul %37, %35, %cst_26 {dimension_numbers = #tpu.dot_dimension_numbers<[1], [0], [0], [1], [0, 0, 1, 1], [], []>} : vector<8x4xf32>, vector<4x324xf32>, vector<8x324xf32> -> vector<8x324xf32>
    %39 = arith.addf %34, %38 : vector<8x324xf32>
    %40 = vector.extract_strided_slice %3 {offsets = [0, 37], sizes = [4, 324], strides = [1, 1]} : vector<4x362xf32> to vector<4x324xf32>
    %c7 = arith.constant 7 : index
    %c0_27 = arith.constant 0 : index
    %c0_28 = arith.constant 0 : index
    %41 = vector.load %arg4[%c7, %c0_27, %c0_28] : memref<9x8x4xf32, #tpu.memory_space<vmem>>, vector<1x8x4xf32>
    %42 = vector.shape_cast %41 : vector<1x8x4xf32> to vector<8x4xf32>
    %cst_29 = arith.constant dense<0.000000e+00> : vector<8x324xf32>
    %43 = tpu.matmul %42, %40, %cst_29 {dimension_numbers = #tpu.dot_dimension_numbers<[1], [0], [0], [1], [0, 0, 1, 1], [], []>} : vector<8x4xf32>, vector<4x324xf32>, vector<8x324xf32> -> vector<8x324xf32>
    %44 = arith.addf %39, %43 : vector<8x324xf32>
    %45 = vector.extract_strided_slice %3 {offsets = [0, 38], sizes = [4, 324], strides = [1, 1]} : vector<4x362xf32> to vector<4x324xf32>
    %c8 = arith.constant 8 : index
    %c0_30 = arith.constant 0 : index
    %c0_31 = arith.constant 0 : index
    %46 = vector.load %arg4[%c8, %c0_30, %c0_31] : memref<9x8x4xf32, #tpu.memory_space<vmem>>, vector<1x8x4xf32>
    %47 = vector.shape_cast %46 : vector<1x8x4xf32> to vector<8x4xf32>
    %cst_32 = arith.constant dense<0.000000e+00> : vector<8x324xf32>
    %48 = tpu.matmul %47, %45, %cst_32 {dimension_numbers = #tpu.dot_dimension_numbers<[1], [0], [0], [1], [0, 0, 1, 1], [], []>} : vector<8x4xf32>, vector<4x324xf32>, vector<8x324xf32> -> vector<8x324xf32>
    %49 = arith.addf %44, %48 : vector<8x324xf32>
    %c0_33 = arith.constant 0 : index
    %c0_34 = arith.constant 0 : index
    %50 = vector.load %arg5[%c0_33, %c0_34] : memref<8x1xf32, #tpu.memory_space<vmem>>, vector<8x1xf32>
    %51 = vector.broadcast %50 : vector<8x1xf32> to vector<8x324xf32>
    %52 = arith.addf %49, %51 : vector<8x324xf32>
    %cst_35 = arith.constant 0.000000e+00 : f32
    %53 = vector.broadcast %cst_35 : f32 to vector<8x324xf32>
    %54 = arith.cmpf ogt, %52, %53 : vector<8x324xf32>
    %cst_36 = arith.constant 0.000000e+00 : f32
    %55 = vector.broadcast %cst_36 : f32 to vector<8x324xf32>
    %56 = arith.minimumf %52, %55 : vector<8x324xf32>
    %57 = math.exp %56 : vector<8x324xf32>
    %cst_37 = arith.constant 1.000000e+00 : f32
    %58 = vector.broadcast %cst_37 : f32 to vector<8x324xf32>
    %59 = arith.subf %57, %58 : vector<8x324xf32>
    %60 = arith.select %54, %52, %59 : vector<8x324xi1>, vector<8x324xf32>
    %c0_38 = arith.constant 0 : index
    %c0_39 = arith.constant 0 : index
    %61 = vector.load %arg3[%c0_38, %c0_39] : memref<324x1226xf32, #tpu.memory_space<vmem>>, vector<324x1226xf32>
    %cst_40 = arith.constant dense<0.000000e+00> : vector<8x1226xf32>
    %62 = tpu.matmul %60, %61, %cst_40 {dimension_numbers = #tpu.dot_dimension_numbers<[1], [0], [0], [1], [0, 0, 1, 1], [], []>} : vector<8x324xf32>, vector<324x1226xf32>, vector<8x1226xf32> -> vector<8x1226xf32>
    %cst_41 = arith.constant 0.000000e+00 : f32
    %63 = vector.broadcast %cst_41 : f32 to vector<8x1156xf32>
    %64 = vector.extract_strided_slice %62 {offsets = [0, 0], sizes = [8, 1156], strides = [1, 1]} : vector<8x1226xf32> to vector<8x1156xf32>
    %c0_42 = arith.constant 0 : index
    %c0_43 = arith.constant 0 : index
    %c0_44 = arith.constant 0 : index
    %65 = vector.load %arg6[%c0_42, %c0_43, %c0_44] : memref<9x8x8xf32, #tpu.memory_space<vmem>>, vector<1x8x8xf32>
    %66 = vector.shape_cast %65 : vector<1x8x8xf32> to vector<8x8xf32>
    %cst_45 = arith.constant dense<0.000000e+00> : vector<8x1156xf32>
    %67 = tpu.matmul %66, %64, %cst_45 {dimension_numbers = #tpu.dot_dimension_numbers<[1], [0], [0], [1], [0, 0, 1, 1], [], []>} : vector<8x8xf32>, vector<8x1156xf32>, vector<8x1156xf32> -> vector<8x1156xf32>
    %68 = arith.addf %63, %67 : vector<8x1156xf32>
    %69 = vector.extract_strided_slice %62 {offsets = [0, 1], sizes = [8, 1156], strides = [1, 1]} : vector<8x1226xf32> to vector<8x1156xf32>
    %c1_46 = arith.constant 1 : index
    %c0_47 = arith.constant 0 : index
    %c0_48 = arith.constant 0 : index
    %70 = vector.load %arg6[%c1_46, %c0_47, %c0_48] : memref<9x8x8xf32, #tpu.memory_space<vmem>>, vector<1x8x8xf32>
    %71 = vector.shape_cast %70 : vector<1x8x8xf32> to vector<8x8xf32>
    %cst_49 = arith.constant dense<0.000000e+00> : vector<8x1156xf32>
    %72 = tpu.matmul %71, %69, %cst_49 {dimension_numbers = #tpu.dot_dimension_numbers<[1], [0], [0], [1], [0, 0, 1, 1], [], []>} : vector<8x8xf32>, vector<8x1156xf32>, vector<8x1156xf32> -> vector<8x1156xf32>
    %73 = arith.addf %68, %72 : vector<8x1156xf32>
    %74 = vector.extract_strided_slice %62 {offsets = [0, 2], sizes = [8, 1156], strides = [1, 1]} : vector<8x1226xf32> to vector<8x1156xf32>
    %c2_50 = arith.constant 2 : index
    %c0_51 = arith.constant 0 : index
    %c0_52 = arith.constant 0 : index
    %75 = vector.load %arg6[%c2_50, %c0_51, %c0_52] : memref<9x8x8xf32, #tpu.memory_space<vmem>>, vector<1x8x8xf32>
    %76 = vector.shape_cast %75 : vector<1x8x8xf32> to vector<8x8xf32>
    %cst_53 = arith.constant dense<0.000000e+00> : vector<8x1156xf32>
    %77 = tpu.matmul %76, %74, %cst_53 {dimension_numbers = #tpu.dot_dimension_numbers<[1], [0], [0], [1], [0, 0, 1, 1], [], []>} : vector<8x8xf32>, vector<8x1156xf32>, vector<8x1156xf32> -> vector<8x1156xf32>
    %78 = arith.addf %73, %77 : vector<8x1156xf32>
    %79 = vector.extract_strided_slice %62 {offsets = [0, 34], sizes = [8, 1156], strides = [1, 1]} : vector<8x1226xf32> to vector<8x1156xf32>
    %c3_54 = arith.constant 3 : index
    %c0_55 = arith.constant 0 : index
    %c0_56 = arith.constant 0 : index
    %80 = vector.load %arg6[%c3_54, %c0_55, %c0_56] : memref<9x8x8xf32, #tpu.memory_space<vmem>>, vector<1x8x8xf32>
    %81 = vector.shape_cast %80 : vector<1x8x8xf32> to vector<8x8xf32>
    %cst_57 = arith.constant dense<0.000000e+00> : vector<8x1156xf32>
    %82 = tpu.matmul %81, %79, %cst_57 {dimension_numbers = #tpu.dot_dimension_numbers<[1], [0], [0], [1], [0, 0, 1, 1], [], []>} : vector<8x8xf32>, vector<8x1156xf32>, vector<8x1156xf32> -> vector<8x1156xf32>
    %83 = arith.addf %78, %82 : vector<8x1156xf32>
    %84 = vector.extract_strided_slice %62 {offsets = [0, 35], sizes = [8, 1156], strides = [1, 1]} : vector<8x1226xf32> to vector<8x1156xf32>
    %c4_58 = arith.constant 4 : index
    %c0_59 = arith.constant 0 : index
    %c0_60 = arith.constant 0 : index
    %85 = vector.load %arg6[%c4_58, %c0_59, %c0_60] : memref<9x8x8xf32, #tpu.memory_space<vmem>>, vector<1x8x8xf32>
    %86 = vector.shape_cast %85 : vector<1x8x8xf32> to vector<8x8xf32>
    %cst_61 = arith.constant dense<0.000000e+00> : vector<8x1156xf32>
    %87 = tpu.matmul %86, %84, %cst_61 {dimension_numbers = #tpu.dot_dimension_numbers<[1], [0], [0], [1], [0, 0, 1, 1], [], []>} : vector<8x8xf32>, vector<8x1156xf32>, vector<8x1156xf32> -> vector<8x1156xf32>
    %88 = arith.addf %83, %87 : vector<8x1156xf32>
    %89 = vector.extract_strided_slice %62 {offsets = [0, 36], sizes = [8, 1156], strides = [1, 1]} : vector<8x1226xf32> to vector<8x1156xf32>
    %c5_62 = arith.constant 5 : index
    %c0_63 = arith.constant 0 : index
    %c0_64 = arith.constant 0 : index
    %90 = vector.load %arg6[%c5_62, %c0_63, %c0_64] : memref<9x8x8xf32, #tpu.memory_space<vmem>>, vector<1x8x8xf32>
    %91 = vector.shape_cast %90 : vector<1x8x8xf32> to vector<8x8xf32>
    %cst_65 = arith.constant dense<0.000000e+00> : vector<8x1156xf32>
    %92 = tpu.matmul %91, %89, %cst_65 {dimension_numbers = #tpu.dot_dimension_numbers<[1], [0], [0], [1], [0, 0, 1, 1], [], []>} : vector<8x8xf32>, vector<8x1156xf32>, vector<8x1156xf32> -> vector<8x1156xf32>
    %93 = arith.addf %88, %92 : vector<8x1156xf32>
    %94 = vector.extract_strided_slice %62 {offsets = [0, 68], sizes = [8, 1156], strides = [1, 1]} : vector<8x1226xf32> to vector<8x1156xf32>
    %c6_66 = arith.constant 6 : index
    %c0_67 = arith.constant 0 : index
    %c0_68 = arith.constant 0 : index
    %95 = vector.load %arg6[%c6_66, %c0_67, %c0_68] : memref<9x8x8xf32, #tpu.memory_space<vmem>>, vector<1x8x8xf32>
    %96 = vector.shape_cast %95 : vector<1x8x8xf32> to vector<8x8xf32>
    %cst_69 = arith.constant dense<0.000000e+00> : vector<8x1156xf32>
    %97 = tpu.matmul %96, %94, %cst_69 {dimension_numbers = #tpu.dot_dimension_numbers<[1], [0], [0], [1], [0, 0, 1, 1], [], []>} : vector<8x8xf32>, vector<8x1156xf32>, vector<8x1156xf32> -> vector<8x1156xf32>
    %98 = arith.addf %93, %97 : vector<8x1156xf32>
    %99 = vector.extract_strided_slice %62 {offsets = [0, 69], sizes = [8, 1156], strides = [1, 1]} : vector<8x1226xf32> to vector<8x1156xf32>
    %c7_70 = arith.constant 7 : index
    %c0_71 = arith.constant 0 : index
    %c0_72 = arith.constant 0 : index
    %100 = vector.load %arg6[%c7_70, %c0_71, %c0_72] : memref<9x8x8xf32, #tpu.memory_space<vmem>>, vector<1x8x8xf32>
    %101 = vector.shape_cast %100 : vector<1x8x8xf32> to vector<8x8xf32>
    %cst_73 = arith.constant dense<0.000000e+00> : vector<8x1156xf32>
    %102 = tpu.matmul %101, %99, %cst_73 {dimension_numbers = #tpu.dot_dimension_numbers<[1], [0], [0], [1], [0, 0, 1, 1], [], []>} : vector<8x8xf32>, vector<8x1156xf32>, vector<8x1156xf32> -> vector<8x1156xf32>
    %103 = arith.addf %98, %102 : vector<8x1156xf32>
    %104 = vector.extract_strided_slice %62 {offsets = [0, 70], sizes = [8, 1156], strides = [1, 1]} : vector<8x1226xf32> to vector<8x1156xf32>
    %c8_74 = arith.constant 8 : index
    %c0_75 = arith.constant 0 : index
    %c0_76 = arith.constant 0 : index
    %105 = vector.load %arg6[%c8_74, %c0_75, %c0_76] : memref<9x8x8xf32, #tpu.memory_space<vmem>>, vector<1x8x8xf32>
    %106 = vector.shape_cast %105 : vector<1x8x8xf32> to vector<8x8xf32>
    %cst_77 = arith.constant dense<0.000000e+00> : vector<8x1156xf32>
    %107 = tpu.matmul %106, %104, %cst_77 {dimension_numbers = #tpu.dot_dimension_numbers<[1], [0], [0], [1], [0, 0, 1, 1], [], []>} : vector<8x8xf32>, vector<8x1156xf32>, vector<8x1156xf32> -> vector<8x1156xf32>
    %108 = arith.addf %103, %107 : vector<8x1156xf32>
    %c0_78 = arith.constant 0 : index
    %c0_79 = arith.constant 0 : index
    %109 = vector.load %arg7[%c0_78, %c0_79] : memref<8x1xf32, #tpu.memory_space<vmem>>, vector<8x1xf32>
    %110 = vector.broadcast %109 : vector<8x1xf32> to vector<8x1156xf32>
    %111 = arith.addf %108, %110 : vector<8x1156xf32>
    %cst_80 = arith.constant 0.000000e+00 : f32
    %112 = vector.broadcast %cst_80 : f32 to vector<8x1156xf32>
    %113 = arith.cmpf ogt, %111, %112 : vector<8x1156xf32>
    %cst_81 = arith.constant 0.000000e+00 : f32
    %114 = vector.broadcast %cst_81 : f32 to vector<8x1156xf32>
    %115 = arith.minimumf %111, %114 : vector<8x1156xf32>
    %116 = math.exp %115 : vector<8x1156xf32>
    %cst_82 = arith.constant 1.000000e+00 : f32
    %117 = vector.broadcast %cst_82 : f32 to vector<8x1156xf32>
    %118 = arith.subf %116, %117 : vector<8x1156xf32>
    %119 = arith.select %113, %111, %118 : vector<8x1156xi1>, vector<8x1156xf32>
    %c0_83 = arith.constant 0 : index
    %c0_84 = arith.constant 0 : index
    %120 = vector.load %arg10[%c0_83, %c0_84] : memref<1x1156xf32, #tpu.memory_space<vmem>>, vector<1x1156xf32>
    %121 = vector.broadcast %120 : vector<1x1156xf32> to vector<8x1156xf32>
    %122 = arith.mulf %119, %121 : vector<8x1156xf32>
    %cst_85 = arith.constant 0.000000e+00 : f32
    %123 = vector.broadcast %cst_85 : f32 to vector<8x35xf32>
    %c0_86 = arith.constant 0 : index
    %c0_87 = arith.constant 0 : index
    %124 = vector.load %arg12[%c0_86, %c0_87] : memref<8x1226xf32, #tpu.memory_space<vmem>>, vector<8x35xf32>
    tpu.vector_store %arg12[%c0_86, %c0_87], %123 {strides = array<i32>} : memref<8x1226xf32, #tpu.memory_space<vmem>>, vector<8x35xf32>,
    %cst_88 = arith.constant 0.000000e+00 : f32
    %125 = vector.broadcast %cst_88 : f32 to vector<8x35xf32>
    %c0_89 = arith.constant 0 : index
    %c1191 = arith.constant 1191 : index
    %126 = vector.load %arg12[%c0_89, %c1191] : memref<8x1226xf32, #tpu.memory_space<vmem>>, vector<8x35xf32>
    tpu.vector_store %arg12[%c0_89, %c1191], %125 {strides = array<i32>} : memref<8x1226xf32, #tpu.memory_space<vmem>>, vector<8x35xf32>,
    %c0_90 = arith.constant 0 : index
    %c35 = arith.constant 35 : index
    %127 = vector.load %arg12[%c0_90, %c35] : memref<8x1226xf32, #tpu.memory_space<vmem>>, vector<8x1156xf32>
    tpu.vector_store %arg12[%c0_90, %c35], %122 {strides = array<i32>} : memref<8x1226xf32, #tpu.memory_space<vmem>>, vector<8x1156xf32>,
    %c0_91 = arith.constant 0 : index
    %c0_92 = arith.constant 0 : index
    %128 = vector.load %arg12[%c0_91, %c0_92] : memref<8x1226xf32, #tpu.memory_space<vmem>>, vector<8x1226xf32>
    %cst_93 = arith.constant 0.000000e+00 : f32
    %129 = vector.broadcast %cst_93 : f32 to vector<1x1156xf32>
    %130 = vector.extract_strided_slice %128 {offsets = [0, 0], sizes = [8, 1156], strides = [1, 1]} : vector<8x1226xf32> to vector<8x1156xf32>
    %c0_94 = arith.constant 0 : index
    %c0_95 = arith.constant 0 : index
    %c0_96 = arith.constant 0 : index
    %131 = vector.load %arg8[%c0_94, %c0_95, %c0_96] : memref<9x1x8xf32, #tpu.memory_space<vmem>>, vector<1x1x8xf32>
    %132 = vector.shape_cast %131 : vector<1x1x8xf32> to vector<1x8xf32>
    %cst_97 = arith.constant dense<0.000000e+00> : vector<1x1156xf32>
    %133 = tpu.matmul %132, %130, %cst_97 {dimension_numbers = #tpu.dot_dimension_numbers<[1], [0], [0], [1], [0, 0, 1, 1], [], []>} : vector<1x8xf32>, vector<8x1156xf32>, vector<1x1156xf32> -> vector<1x1156xf32>
    %134 = arith.addf %129, %133 : vector<1x1156xf32>
    %135 = vector.extract_strided_slice %128 {offsets = [0, 1], sizes = [8, 1156], strides = [1, 1]} : vector<8x1226xf32> to vector<8x1156xf32>
    %c1_98 = arith.constant 1 : index
    %c0_99 = arith.constant 0 : index
    %c0_100 = arith.constant 0 : index
    %136 = vector.load %arg8[%c1_98, %c0_99, %c0_100] : memref<9x1x8xf32, #tpu.memory_space<vmem>>, vector<1x1x8xf32>
    %137 = vector.shape_cast %136 : vector<1x1x8xf32> to vector<1x8xf32>
    %cst_101 = arith.constant dense<0.000000e+00> : vector<1x1156xf32>
    %138 = tpu.matmul %137, %135, %cst_101 {dimension_numbers = #tpu.dot_dimension_numbers<[1], [0], [0], [1], [0, 0, 1, 1], [], []>} : vector<1x8xf32>, vector<8x1156xf32>, vector<1x1156xf32> -> vector<1x1156xf32>
    %139 = arith.addf %134, %138 : vector<1x1156xf32>
    %140 = vector.extract_strided_slice %128 {offsets = [0, 2], sizes = [8, 1156], strides = [1, 1]} : vector<8x1226xf32> to vector<8x1156xf32>
    %c2_102 = arith.constant 2 : index
    %c0_103 = arith.constant 0 : index
    %c0_104 = arith.constant 0 : index
    %141 = vector.load %arg8[%c2_102, %c0_103, %c0_104] : memref<9x1x8xf32, #tpu.memory_space<vmem>>, vector<1x1x8xf32>
    %142 = vector.shape_cast %141 : vector<1x1x8xf32> to vector<1x8xf32>
    %cst_105 = arith.constant dense<0.000000e+00> : vector<1x1156xf32>
    %143 = tpu.matmul %142, %140, %cst_105 {dimension_numbers = #tpu.dot_dimension_numbers<[1], [0], [0], [1], [0, 0, 1, 1], [], []>} : vector<1x8xf32>, vector<8x1156xf32>, vector<1x1156xf32> -> vector<1x1156xf32>
    %144 = arith.addf %139, %143 : vector<1x1156xf32>
    %145 = vector.extract_strided_slice %128 {offsets = [0, 34], sizes = [8, 1156], strides = [1, 1]} : vector<8x1226xf32> to vector<8x1156xf32>
    %c3_106 = arith.constant 3 : index
    %c0_107 = arith.constant 0 : index
    %c0_108 = arith.constant 0 : index
    %146 = vector.load %arg8[%c3_106, %c0_107, %c0_108] : memref<9x1x8xf32, #tpu.memory_space<vmem>>, vector<1x1x8xf32>
    %147 = vector.shape_cast %146 : vector<1x1x8xf32> to vector<1x8xf32>
    %cst_109 = arith.constant dense<0.000000e+00> : vector<1x1156xf32>
    %148 = tpu.matmul %147, %145, %cst_109 {dimension_numbers = #tpu.dot_dimension_numbers<[1], [0], [0], [1], [0, 0, 1, 1], [], []>} : vector<1x8xf32>, vector<8x1156xf32>, vector<1x1156xf32> -> vector<1x1156xf32>
    %149 = arith.addf %144, %148 : vector<1x1156xf32>
    %150 = vector.extract_strided_slice %128 {offsets = [0, 35], sizes = [8, 1156], strides = [1, 1]} : vector<8x1226xf32> to vector<8x1156xf32>
    %c4_110 = arith.constant 4 : index
    %c0_111 = arith.constant 0 : index
    %c0_112 = arith.constant 0 : index
    %151 = vector.load %arg8[%c4_110, %c0_111, %c0_112] : memref<9x1x8xf32, #tpu.memory_space<vmem>>, vector<1x1x8xf32>
    %152 = vector.shape_cast %151 : vector<1x1x8xf32> to vector<1x8xf32>
    %cst_113 = arith.constant dense<0.000000e+00> : vector<1x1156xf32>
    %153 = tpu.matmul %152, %150, %cst_113 {dimension_numbers = #tpu.dot_dimension_numbers<[1], [0], [0], [1], [0, 0, 1, 1], [], []>} : vector<1x8xf32>, vector<8x1156xf32>, vector<1x1156xf32> -> vector<1x1156xf32>
    %154 = arith.addf %149, %153 : vector<1x1156xf32>
    %155 = vector.extract_strided_slice %128 {offsets = [0, 36], sizes = [8, 1156], strides = [1, 1]} : vector<8x1226xf32> to vector<8x1156xf32>
    %c5_114 = arith.constant 5 : index
    %c0_115 = arith.constant 0 : index
    %c0_116 = arith.constant 0 : index
    %156 = vector.load %arg8[%c5_114, %c0_115, %c0_116] : memref<9x1x8xf32, #tpu.memory_space<vmem>>, vector<1x1x8xf32>
    %157 = vector.shape_cast %156 : vector<1x1x8xf32> to vector<1x8xf32>
    %cst_117 = arith.constant dense<0.000000e+00> : vector<1x1156xf32>
    %158 = tpu.matmul %157, %155, %cst_117 {dimension_numbers = #tpu.dot_dimension_numbers<[1], [0], [0], [1], [0, 0, 1, 1], [], []>} : vector<1x8xf32>, vector<8x1156xf32>, vector<1x1156xf32> -> vector<1x1156xf32>
    %159 = arith.addf %154, %158 : vector<1x1156xf32>
    %160 = vector.extract_strided_slice %128 {offsets = [0, 68], sizes = [8, 1156], strides = [1, 1]} : vector<8x1226xf32> to vector<8x1156xf32>
    %c6_118 = arith.constant 6 : index
    %c0_119 = arith.constant 0 : index
    %c0_120 = arith.constant 0 : index
    %161 = vector.load %arg8[%c6_118, %c0_119, %c0_120] : memref<9x1x8xf32, #tpu.memory_space<vmem>>, vector<1x1x8xf32>
    %162 = vector.shape_cast %161 : vector<1x1x8xf32> to vector<1x8xf32>
    %cst_121 = arith.constant dense<0.000000e+00> : vector<1x1156xf32>
    %163 = tpu.matmul %162, %160, %cst_121 {dimension_numbers = #tpu.dot_dimension_numbers<[1], [0], [0], [1], [0, 0, 1, 1], [], []>} : vector<1x8xf32>, vector<8x1156xf32>, vector<1x1156xf32> -> vector<1x1156xf32>
    %164 = arith.addf %159, %163 : vector<1x1156xf32>
    %165 = vector.extract_strided_slice %128 {offsets = [0, 69], sizes = [8, 1156], strides = [1, 1]} : vector<8x1226xf32> to vector<8x1156xf32>
    %c7_122 = arith.constant 7 : index
    %c0_123 = arith.constant 0 : index
    %c0_124 = arith.constant 0 : index
    %166 = vector.load %arg8[%c7_122, %c0_123, %c0_124] : memref<9x1x8xf32, #tpu.memory_space<vmem>>, vector<1x1x8xf32>
    %167 = vector.shape_cast %166 : vector<1x1x8xf32> to vector<1x8xf32>
    %cst_125 = arith.constant dense<0.000000e+00> : vector<1x1156xf32>
    %168 = tpu.matmul %167, %165, %cst_125 {dimension_numbers = #tpu.dot_dimension_numbers<[1], [0], [0], [1], [0, 0, 1, 1], [], []>} : vector<1x8xf32>, vector<8x1156xf32>, vector<1x1156xf32> -> vector<1x1156xf32>
    %169 = arith.addf %164, %168 : vector<1x1156xf32>
    %170 = vector.extract_strided_slice %128 {offsets = [0, 70], sizes = [8, 1156], strides = [1, 1]} : vector<8x1226xf32> to vector<8x1156xf32>
    %c8_126 = arith.constant 8 : index
    %c0_127 = arith.constant 0 : index
    %c0_128 = arith.constant 0 : index
    %171 = vector.load %arg8[%c8_126, %c0_127, %c0_128] : memref<9x1x8xf32, #tpu.memory_space<vmem>>, vector<1x1x8xf32>
    %172 = vector.shape_cast %171 : vector<1x1x8xf32> to vector<1x8xf32>
    %cst_129 = arith.constant dense<0.000000e+00> : vector<1x1156xf32>
    %173 = tpu.matmul %172, %170, %cst_129 {dimension_numbers = #tpu.dot_dimension_numbers<[1], [0], [0], [1], [0, 0, 1, 1], [], []>} : vector<1x8xf32>, vector<8x1156xf32>, vector<1x1156xf32> -> vector<1x1156xf32>
    %174 = arith.addf %169, %173 : vector<1x1156xf32>
    %c0_130 = arith.constant 0 : index
    %c0_131 = arith.constant 0 : index
    %175 = vector.load %arg9[%c0_130, %c0_131] : memref<1x1xf32, #tpu.memory_space<vmem>>, vector<1x1xf32>
    %176 = vector.broadcast %175 : vector<1x1xf32> to vector<1x1156xf32>
    %177 = arith.addf %174, %176 : vector<1x1156xf32>
    %cst_132 = arith.constant 0.000000e+00 : f32
    %178 = vector.broadcast %cst_132 : f32 to vector<1x1156xf32>
    %179 = arith.subf %178, %177 : vector<1x1156xf32>
    %180 = math.exp %179 : vector<1x1156xf32>
    %cst_133 = arith.constant 1.000000e+00 : f32
    %181 = vector.broadcast %cst_133 : f32 to vector<1x1156xf32>
    %182 = arith.addf %181, %180 : vector<1x1156xf32>
    %cst_134 = arith.constant 1.000000e+00 : f32
    %183 = vector.broadcast %cst_134 : f32 to vector<1x1156xf32>
    %184 = arith.divf %183, %182 : vector<1x1156xf32>
    %c0_135 = arith.constant 0 : index
    %c0_136 = arith.constant 0 : index
    %c0_137 = arith.constant 0 : index
    %185 = vector.load %arg11[%c0_135, %c0_136, %c0_137] : memref<1x1x1156xf32, #tpu.memory_space<vmem>>, vector<1x1x1156xf32>
    %186 = vector.shape_cast %185 : vector<1x1x1156xf32> to vector<1x1156xf32>
    %187 = vector.shape_cast %184 : vector<1x1156xf32> to vector<1x1x1156xf32>
    tpu.vector_store %arg11[%c0_135, %c0_136, %c0_137], %187 {strides = array<i32>} : memref<1x1x1156xf32, #tpu.memory_space<vmem>>, vector<1x1x1156xf32>,
    return
  }
  func.func @transform_0(%arg0: i32) -> (i32, i32, i32) {
    %c0_i32 = arith.constant 0 : i32
    %c0_i32_0 = arith.constant 0 : i32
    %c0_i32_1 = arith.constant 0 : i32
    return %arg0, %c0_i32, %c0_i32_0 : i32, i32, i32
  }
  func.func @transform_1(%arg0: i32) -> (i32, i32) {
    %c0_i32 = arith.constant 0 : i32
    %c0_i32_0 = arith.constant 0 : i32
    %c0_i32_1 = arith.constant 0 : i32
    return %c0_i32, %c0_i32_0 : i32, i32
  }
  func.func @transform_2(%arg0: i32) -> (i32, i32) {
    %c0_i32 = arith.constant 0 : i32
    %c0_i32_0 = arith.constant 0 : i32
    %c0_i32_1 = arith.constant 0 : i32
    return %c0_i32, %c0_i32_0 : i32, i32
  }
  func.func @transform_3(%arg0: i32) -> (i32, i32, i32) {
    %c0_i32 = arith.constant 0 : i32
    %c0_i32_0 = arith.constant 0 : i32
    %c0_i32_1 = arith.constant 0 : i32
    %c0_i32_2 = arith.constant 0 : i32
    return %c0_i32, %c0_i32_0, %c0_i32_1 : i32, i32, i32
  }
  func.func @transform_4(%arg0: i32) -> (i32, i32) {
    %c0_i32 = arith.constant 0 : i32
    %c0_i32_0 = arith.constant 0 : i32
    %c0_i32_1 = arith.constant 0 : i32
    return %c0_i32, %c0_i32_0 : i32, i32
  }
  func.func @transform_5(%arg0: i32) -> (i32, i32, i32) {
    %c0_i32 = arith.constant 0 : i32
    %c0_i32_0 = arith.constant 0 : i32
    %c0_i32_1 = arith.constant 0 : i32
    %c0_i32_2 = arith.constant 0 : i32
    return %c0_i32, %c0_i32_0, %c0_i32_1 : i32, i32, i32
  }
  func.func @transform_6(%arg0: i32) -> (i32, i32) {
    %c0_i32 = arith.constant 0 : i32
    %c0_i32_0 = arith.constant 0 : i32
    %c0_i32_1 = arith.constant 0 : i32
    return %c0_i32, %c0_i32_0 : i32, i32
  }
  func.func @transform_7(%arg0: i32) -> (i32, i32, i32) {
    %c0_i32 = arith.constant 0 : i32
    %c0_i32_0 = arith.constant 0 : i32
    %c0_i32_1 = arith.constant 0 : i32
    %c0_i32_2 = arith.constant 0 : i32
    return %c0_i32, %c0_i32_0, %c0_i32_1 : i32, i32, i32
  }
  func.func @transform_8(%arg0: i32) -> (i32, i32) {
    %c0_i32 = arith.constant 0 : i32
    %c0_i32_0 = arith.constant 0 : i32
    %c0_i32_1 = arith.constant 0 : i32
    return %c0_i32, %c0_i32_0 : i32, i32
  }
  func.func @transform_9(%arg0: i32) -> (i32, i32) {
    %c0_i32 = arith.constant 0 : i32
    %c0_i32_0 = arith.constant 0 : i32
    %c0_i32_1 = arith.constant 0 : i32
    return %c0_i32, %c0_i32_0 : i32, i32
  }
  func.func @transform_10(%arg0: i32) -> (i32, i32, i32) {
    %c0_i32 = arith.constant 0 : i32
    %c0_i32_0 = arith.constant 0 : i32
    %c0_i32_1 = arith.constant 0 : i32
    return %arg0, %c0_i32, %c0_i32_0 : i32, i32, i32
  }
}

</mosaic_0001>

<bundles_post_ra>
// kernel: vit2_decoder_forward.1
= control target key start
LH: loop header
LB: loop body
LE: loop exit
PB: predicated region body
PF: predicated region fallthrough
CT: control target
= control target key end

     0   :  { %s13570_s0 = inlined_call_operand.vmem [shape: f32[2,4,256], index: 0, kind: input, shape index: {}]   ;;  %s13571_s1 = inlined_call_operand.hbm [shape: f32[256,362], index: 1, kind: input, shape index: {}]   ;;  %s13572_s2 = inlined_call_operand.hbm [shape: f32[324,1226], index: 2, kind: input, shape index: {}]   ;;  %s13573_s3 = inlined_call_operand.vmem [shape: f32[9,8,4], index: 3, kind: input, shape index: {}]   ;;  %s13574_s4 = inlined_call_operand.vmem [shape: f32[8,1], index: 4, kind: input, shape index: {}]   ;;  %s13575_s5 = inlined_call_operand.vmem [shape: f32[9,8,8], index: 5, kind: input, shape index: {}]   ;;  %s13576_s6 = inlined_call_operand.vmem [shape: f32[8,1], index: 6, kind: input, shape index: {}]   ;;  %s13577_s7 = inlined_call_operand.hbm [shape: f32[9,1,8], index: 7, kind: input, shape index: {}]   ;;  %s13578_s8 = inlined_call_operand.<no memory space> [shape: f32[1,1], index: 8, kind: input, shape index: {}]   ;;  %s13579_s9 = inlined_call_operand.hbm [shape: f32[1,1156], index: 9, kind: input, shape index: {}]   ;;  %s13580_s10 = inlined_call_operand.vmem [shape: f32[2,1,1156], index: 10, kind: output, shape index: {}]  }
   0x1   :  { %v15_v0 = vstv %s13578_s8 }
   0x2   :  { %16 = vst [vmem:[#allocation3] sm:$0x1] %v15_v0 }
   0x3   :  { %17 = vsyncpa [#allocation5], 0 }
   0x4   :  { %18 = vsyncpa [#allocation7], 0 }
   0x5   :  { %19 = vsyncpa [#allocation10], 0  ;;  %s12381_s15 = smov 0  }
   0x6 LB: > { %s12295_s16 = smov [#allocation6]   ;;  %s12387_s18 = sadd.s32 4294967295, %s12293_s15   ;;  %s12293_s15 = sphi %s12381_s15, %s25_s15  }
   0x7   : > { %s296_s17 = sshll.u32 %s12295_s16, 4  ;;  %p11045_p0 = scmp.ge.s32.totalorder %s12293_s15, 1  ;;  %s12392_s17 = int_to_ptr.vmem [resolvable:$true] %s296_s17 }
   0x8   : > { %p271_p1 = scmp.lt.s32.totalorder %s12293_s15, 3  ;;  %p13581_p2 = scmp.eq.s32.totalorder %s12387_s18, 0 }
   0x9   : > { %s12296_s19 = smov [#allocation4]   ;;  %s12297_s22 = smov [#allocation8]  }
   0xa   : > { %p12394_p3 = pnand %p11045_p0, %p271_p1  ;;  %s283_s20 = sshll.u32 %s12296_s19, 4  ;;  %s12400_s20 = int_to_ptr.vmem [resolvable:$true] %s283_s20 }
   0xb   : > { %s12408_s23 = sshll.u32 %s12297_s22, 4  ;;  %s12163_s26 = scalar_lea.hbm %s13572_s2, 52480  ;;  %s322_s23 = int_to_ptr.vmem [resolvable:$true] %s12408_s23 }
   0xc   : > { %s13583_s8 = scalar_select %p12394_p3, 1, 0 }
   0xd   : > { %p12037_p4 = pneg %p12394_p3  ;;  %p12164_p6 = scmp.ne.s32.totalorder %s13572_s2, %s12163_s26 }
   0xe   : > { %p12170_p10 = scmp.lt.u32.totalorder %s12163_s26, %s13572_s2 }
   0xf   : > { %p12404_p5 = pnand %p13581_p2, %p12037_p4 }
  0x11   : > { %p12418_p7 = pneg %p12404_p5 }
  0x13   : > { %p12166_p8 = pnand %p12418_p7, %p12164_p6 }
  0x15   : > { %p12167_p9 = pneg %p12166_p8 }
  0x17   : > { %p12172_p11 = pnand %p12170_p10, %p12167_p9 }
  0x19   : > { %12175 = shalt.err (!%p12172_p11)
}
  0x1a   : > { %s12176_s12 = scalar_lea.vmem %s12392_s17, 52480  ;;  %p12184_p1 = scmp.lt.s32.totalorder %s12392_s17, %s12392_s17 }
  0x1b   : > { %p12177_p12 = scmp.ne.s32.totalorder %s12392_s17, %s12176_s12  ;;  %p12185_p4 = scmp.lt.s32.totalorder %s12176_s12, %s12176_s12 }
  0x1d   : > { %p12179_p13 = pnand %p12177_p12, %p12418_p7  ;;  %p12186_p6 = por %p12185_p4, %p12184_p1 }
  0x1f   : > { %p12180_p0 = pneg %p12179_p13 }
  0x21   : > { %p12187_p8 = pnand %p12186_p6, %p12180_p0 }
  0x23   : > { %12190 = shalt.err (!%p12187_p8)
}
  0x24   : > { %s12298_s13 = smov 1280   ;;  %s12299_s14 = smov 80  }
  0x25   : > { %12043 = dma.hbm_to_vmem [thread:$0]  (!%p12404_p5), %s13572_s2, 52480, %s12392_s17, [#allocation7], %s12298_s13, %s12298_s13, %s12299_s14  }
  0x26   : > { %s12191_s25 = scalar_lea.hbm %s13571_s1, 12288 }
  0x27   : > { %p12192_p9 = scmp.ne.s32.totalorder %s13571_s1, %s12191_s25  ;;  %p12198_p12 = scmp.lt.u32.totalorder %s12191_s25, %s13571_s1 }
  0x29   : > { %p12194_p10 = pnand %p12192_p9, %p12418_p7 }
  0x2b   : > { %p12195_p11 = pneg %p12194_p10 }
  0x2d   : > { %p12200_p13 = pnand %p12198_p12, %p12195_p11 }
  0x2f   : > { %12203 = shalt.err (!%p12200_p13)
}
  0x30   : > { %s12204_s17 = scalar_lea.vmem %s12400_s20, 12288  ;;  %p12212_p6 = scmp.lt.s32.totalorder %s12400_s20, %s12400_s20 }
  0x31   : > { %p12205_p0 = scmp.ne.s32.totalorder %s12400_s20, %s12204_s17  ;;  %p12213_p8 = scmp.lt.s32.totalorder %s12204_s17, %s12204_s17 }
  0x33   : > { %p12207_p1 = pnand %p12205_p0, %p12418_p7  ;;  %p12214_p9 = por %p12213_p8, %p12212_p6 }
  0x35   : > { %p12208_p4 = pneg %p12207_p1 }
  0x37   : > { %p12215_p10 = pnand %p12214_p9, %p12208_p4 }
  0x39   : > { %12218 = shalt.err (!%p12215_p10)
}
  0x3a   : > { %s12300_s11 = smov 384   ;;  %s12301_s12 = smov 24  }
  0x3b   : > { %12040 = dma.hbm_to_vmem [thread:$0]  (!%p12404_p5), %s13571_s1, 12288, %s12400_s20, [#allocation5], %s12300_s11, %s12300_s11, %s12301_s12  }
  0x3c   : > { %s12219_s22 = scalar_lea.hbm %s13577_s7, 144 }
  0x3d   : > { %p12220_p11 = scmp.ne.s32.totalorder %s13577_s7, %s12219_s22  ;;  %p12226_p0 = scmp.lt.u32.totalorder %s12219_s22, %s13577_s7 }
  0x3f   : > { %p12222_p12 = pnand %p12220_p11, %p12418_p7 }
  0x41   : > { %p12223_p13 = pneg %p12222_p12 }
  0x43   : > { %p12228_p1 = pnand %p12226_p0, %p12223_p13 }
  0x45   : > { %12231 = shalt.err (!%p12228_p1)
}
  0x46   : > { %s12232_s28 = scalar_lea.vmem %s322_s23, 144  ;;  %s12239_s20 = scalar_lea.vmem %s322_s23, 160 }
  0x47   : > { %p12233_p4 = scmp.ne.s32.totalorder %s322_s23, %s12232_s28  ;;  %p12240_p9 = scmp.lt.s32.totalorder %s322_s23, %s322_s23 }
  0x48   : > { %p12241_p10 = scmp.lt.s32.totalorder %s12239_s20, %s12232_s28 }
  0x49   : > { %p12235_p6 = pnand %p12233_p4, %p12418_p7 }
  0x4a   : > { %p12242_p2 = por %p12241_p10, %p12240_p9 }
  0x4b   : > { %p12236_p8 = pneg %p12235_p6 }
  0x4d   : > { %p12243_p3 = pnand %p12242_p2, %p12236_p8 }
  0x4f   : > { %12246 = shalt.err (!%p12243_p3)
}
  0x50   : > { %s12302_s30 = smov 16   ;;  %s12303_s17 = smov 1  }
  0x51   : > { %12046 = dma.hbm_to_vmem [thread:$0]  (!%p12404_p5), %s13577_s7, 144, %s322_s23, [#allocation7], %s12302_s30, %s12302_s30, %s12303_s17  }
  0x52   : > { %s12304_s13 = smov [#allocation9]   ;;  %s12247_s22 = scalar_lea.hbm %s13579_s9, 160 }
  0x53   : > { %s338_s14 = sshll.u32 %s12304_s13, 4  ;;  %p12248_p2 = scmp.ne.s32.totalorder %s13579_s9, %s12247_s22  ;;  %s339_s14 = int_to_ptr.vmem [resolvable:$true] %s338_s14 }
  0x54   : > { %p12254_p12 = scmp.lt.u32.totalorder %s12247_s22, %s13579_s9 }
  0x55   : > { %p12250_p3 = pnand %p12248_p2, %p12418_p7 }
  0x57   : > { %p12251_p11 = pneg %p12250_p3 }
  0x59   : > { %p12256_p13 = pnand %p12254_p12, %p12251_p11 }
  0x5b   : > { %12259 = shalt.err (!%p12256_p13)
}
  0x5c   : > { %s12260_s23 = scalar_lea.vmem %s339_s14, 160  ;;  %p12268_p6 = scmp.lt.s32.totalorder %s339_s14, %s339_s14 }
  0x5d   : > { %p12261_p0 = scmp.ne.s32.totalorder %s339_s14, %s12260_s23  ;;  %p12269_p8 = scmp.lt.s32.totalorder %s12260_s23, %s12260_s23 }
  0x5f   : > { %p12263_p1 = pnand %p12261_p0, %p12418_p7  ;;  %p12270_p9 = por %p12269_p8, %p12268_p6 }
  0x61   : > { %p12264_p4 = pneg %p12263_p1 }
  0x63   : > { %p12271_p10 = pnand %p12270_p9, %p12264_p4 }
  0x65   : > { %12274 = shalt.err (!%p12271_p10)
}
  0x66   : > { %12049 = dma.hbm_to_vmem [thread:$0]  (!%p12404_p5), %s13579_s9, 160, %s339_s14, [#allocation10]  }
  0x67   : > { %p13586_p2 = scmp.ne.s32.totalorder %s13583_s8, 0 }
  0x68   : > { %p13587_p3 = scmp.eq.s32.totalorder (!%p13586_p2), %s12387_s18, 0 }
  0x69   : > { %359 = sbr.rel (%p13586_p2) target bundleno = 2430 (0x97e), region = 60 }
  0x70   : > { %12280 = dma.done.wait (%p13587_p3), [#allocation5], 12288   ;;  %p13588_p7 = pmov %p13587_p3 }
  0x71   : > { %p13589_p11 = pmov %p13587_p3 }
  0x72   : > { %12282 = vsyncadd (%p13588_p7), [#allocation5], 4294955008 }
  0x73   : > { %12284 = dma.done.wait (%p13589_p11), [#allocation7], 52624   ;;  %p13590_p12 = pmov %p13587_p3 }
  0x74   : > { %p13591_p13 = pmov %p13587_p3 }
  0x75   : > { %12286 = vsyncadd (%p13590_p12), [#allocation7], 4294914672 }
  0x76   : > { %12288 = dma.done.wait (%p13591_p13), [#allocation10], 160   ;;  %p13592_p5 = pmov %p13587_p3 }
  0x77   : > { %v419_v1 = vld [vmem:[#allocation4 + $0x8] sm:$0xff]  ;;  %v422_v2 = vld [vmem:[#allocation4 + $0x20] sm:$0xff]  ;;  %v421_v5 = vld [vmem:[#allocation4 + $0x18] sm:$0xff]  ;;  %p408_p0 = scmp.lt.s32.totalorder %s12387_s18, 1  ;;  %vm12306_vm0 = vmmov 0   ;;  %s12307_s17 = smov 126  }
  0x78   : > { %12290 = vsyncadd (%p13592_p5), [#allocation10], 4294967136  ;;  %v418_v3 = vld [vmem:[#allocation4] sm:$0xff]  ;;  %v11338_v4 = vpack.c.bf16 %v422_v2, %v419_v1  ;;  %v425_v6 = vld [vmem:[#allocation4 + $0x38] sm:$0xff]  ;;  %s12308_s11 = smov 127   ;;  %s12309_s12 = smov 110  }
  0x79   : > { %v428_v7 = vld [vmem:[#allocation4 + $0x50] sm:$0xff]  ;;  %v11340_v8 = vpack.c.bf16 %v421_v5, %v418_v3  ;;  %v427_v11 = vld [vmem:[#allocation4 + $0x48] sm:$0xff]  ;;  %v434_v13 = vld [vmem:[#allocation4 + $0x80] sm:$0xff]  ;;  %s13594_s18 = smov (!%p408_p0, %s12387_s18), 1  ;;  %s12310_s13 = smov 109   ;;  %vm677_vm1 = vcmask 1043456  }
  0x7a   : > { %v11342_v9 = vpack.c.bf16 %v428_v7, %v425_v6  ;;  %v424_v10 = vld [vmem:[#allocation4 + $0x30] sm:$0xff]  ;;  %v431_v12 = vld [vmem:[#allocation4 + $0x68] sm:$0xff]  ;;  %11339 = vmatprep.subr.bf16.mxu1 %v11338_v4  ;;  %v430_v16 = vld [vmem:[#allocation4 + $0x60] sm:$0xff]  ;;  %s11239_s8 = sshll.u32 %s13594_s18, 3  ;;  %s12311_s14 = smov 108   ;;  %vm673_vm2 = vcmask 31744  }
  0x7b   : > { %11341 = vmatpush1.bf16.msra.mxu1 %v11340_v8  ;;  %v11344_v14 = vpack.c.bf16 %v427_v11, %v424_v10  ;;  %v11346_v15 = vpack.c.bf16 %v434_v13, %v431_v12  ;;  %v433_v17 = vld [vmem:[#allocation4 + $0x78] sm:$0xff]  ;;  %v440_v19 = vld [vmem:[#allocation4 + $0xb0] sm:$0xff]  ;;  %v439_v23 = vld [vmem:[#allocation4 + $0xa8] sm:$0xff]  ;;  %s412_s30 = scalar_lea.vmem %s13570_s0, %s11239_s8  ;;  %s12312_s16 = smov 92   ;;  %vm983_vm3 = vcmask 1031168   ;;  %vm1147_vm4 = vcmask 900096  }
  0x7c   : > { %11343 = vmatprep.subr.bf16.mxu1 %v11342_v9  ;;  %v437_v18 = vld [vmem:[#allocation4 + $0x98] sm:$0xff]  ;;  %v11348_v20 = vpack.c.bf16 %v433_v17, %v430_v16  ;;  %v436_v22 = vld [vmem:[#allocation4 + $0x90] sm:$0xff]  ;;  %v443_v24 = vld [vmem:[#allocation4 + $0xc8] sm:$0xff]  ;;  %s12313_s19 = smov 91   ;;  %s12314_s22 = smov 90   ;;  %vm1311_vm5 = vcmask 891904  }
  0x7d   : > { %v11350_v21 = vpack.c.bf16 %v440_v19, %v437_v18  ;;  %v446_v25 = vld [vmem:[#allocation4 + $0xe0] sm:$0xff]  ;;  %v11352_v26 = vpack.c.bf16 %v439_v23, %v436_v22  ;;  %v445_v29 = vld [vmem:[#allocation4 + $0xd8] sm:$0xff]  ;;  %v452_v31 = vld [vmem:[#allocation4 + $0x110] sm:$0xff]  ;;  %vm1475_vm6 = vcmask 883712   ;;  %vm1639_vm7 = vcmask 752640   ;;  %s12316_s20 = smov 94  }
  0x7e   : > { %v11354_v27 = vpack.c.bf16 %v446_v25, %v443_v24  ;;  %v442_v28 = vld [vmem:[#allocation4 + $0xc0] sm:$0xff]  ;;  %v449_v30 = vld [vmem:[#allocation4 + $0xf8] sm:$0xff]  ;;  %v448_v34 = vld [vmem:[#allocation4 + $0xf0] sm:$0xff]  ;;  %vm670_vm8 = vcmask 1039360   ;;  %vm1803_vm9 = vcmask 744448   ;;  %vm1967_vm10 = vcmask 736256  }
  0x7f   : > { %11345 = vmatpush1.bf16.msra.mxu1 %v11344_v14  ;;  %v11356_v32 = vpack.c.bf16 %v445_v29, %v442_v28  ;;  %v11358_v33 = vpack.c.bf16 %v452_v31, %v449_v30  ;;  %v451_v35 = vld [vmem:[#allocation4 + $0x108] sm:$0xff]  ;;  %v458_v37 = vld [vmem:[#allocation4 + $0x140] sm:$0xff]  ;;  %v457_v41 = vld [vmem:[#allocation4 + $0x138] sm:$0xff]  ;;  %vm2560_vm13 = vcmask 556032   ;;  %vm3356_vm15 = vcmask 64512   ;;  %s12317_s8 = smov 93  }
  0x80   : > { %11347 = vmatprep.subr.bf16.mxu1 %v11346_v15  ;;  %v455_v36 = vld [vmem:[#allocation4 + $0x128] sm:$0xff]  ;;  %v11360_v38 = vpack.c.bf16 %v451_v35, %v448_v34  ;;  %v454_v40 = vld [vmem:[#allocation4 + $0x120] sm:$0xff]  ;;  %v461_v43 = vld [vmem:[#allocation4 + $0x158] sm:$0xff]  ;;  %s12318_s21 = smov 60   ;;  %s12319_s29 = smov 59  }
  0x81   : > { %v11362_v39 = vpack.c.bf16 %v458_v37, %v455_v36  ;;  %v12521_v42 = vld [vmem:[%s412_s30] sm:$0xff]  ;;  %v11364_v46 = vpack.c.bf16 %v457_v41, %v454_v40  ;;  %v470_v51 = vld [vmem:[#allocation4 + $0x1a0] sm:$0xff]  ;;  %v469_v55 = vld [vmem:[#allocation4 + $0x198] sm:$0xff]  ;;  %s12321_s26 = smov 35  }
  0x82   : > { %v464_v44 = vld [vmem:[#allocation4 + $0x170] sm:$0xff]  ;;  %v12525_v45 = vcombine.high %v12521_v42, %v12521_v42  ;;  %v463_v49 = vld [vmem:[#allocation4 + $0x168] sm:$0xff]  ;;  %v466_v54 = vld [vmem:[#allocation4 + $0x180] sm:$0xff] }
  0x83   : > { %11349 = vmatpush1.bf16.msra.mxu1 %v11348_v20  ;;  %v11366_v47 = vpack.c.bf16 %v464_v44, %v461_v43  ;;  %v460_v48 = vld [vmem:[#allocation4 + $0x150] sm:$0xff]  ;;  %v467_v50 = vld [vmem:[#allocation4 + $0x188] sm:$0xff]  ;;  %v473_v56 = vld [vmem:[#allocation4 + $0x1b8] sm:$0xff]  ;;  %v11372_v58 = vpack.c.bf16 %v469_v55, %v466_v54 }
  0x84   : > { %11351 = vmatprep.subr.bf16.mxu1 %v11350_v21  ;;  %581 = vmatprep.mubr.f32.mxu1 %v12525_v45  ;;  %v11368_v52 = vpack.c.bf16 %v463_v49, %v460_v48  ;;  %v11370_v53 = vpack.c.bf16 %v470_v51, %v467_v50  ;;  %v476_v57 = vld [vmem:[#allocation4 + $0x1d0] sm:$0xff]  ;;  %v475_v61 = vld [vmem:[#allocation4 + $0x1c8] sm:$0xff]  ;;  %v482_v63 = vld [vmem:[#allocation4 + $0x200] sm:$0xff] }
  0x85   : > { %v11374_v59 = vpack.c.bf16 %v476_v57, %v473_v56  ;;  %v472_v60 = vld [vmem:[#allocation4 + $0x1b0] sm:$0xff]  ;;  %v479_v62 = vld [vmem:[#allocation4 + $0x1e8] sm:$0xff]  ;;  %v478_v2 = vld [vmem:[#allocation4 + $0x1e0] sm:$0xff] }
  0x86   : > { %v11376_v0 = vpack.c.bf16 %v475_v61, %v472_v60  ;;  %v11378_v1 = vpack.c.bf16 %v482_v63, %v479_v62  ;;  %v481_v3 = vld [vmem:[#allocation4 + $0x1f8] sm:$0xff]  ;;  %v488_v5 = vld [vmem:[#allocation4 + $0x230] sm:$0xff]  ;;  %v487_v9 = vld [vmem:[#allocation4 + $0x228] sm:$0xff] }
  0x87   : > { %11353 = vmatpush1.bf16.msra.mxu1 %v11352_v26  ;;  %v485_v4 = vld [vmem:[#allocation4 + $0x218] sm:$0xff]  ;;  %v11380_v6 = vpack.c.bf16 %v481_v3, %v478_v2  ;;  %v484_v8 = vld [vmem:[#allocation4 + $0x210] sm:$0xff]  ;;  %v491_v10 = vld [vmem:[#allocation4 + $0x248] sm:$0xff] }
  0x88   : > { %11355 = vmatprep.subr.bf16.mxu1 %v11354_v27  ;;  %v11382_v7 = vpack.c.bf16 %v488_v5, %v485_v4  ;;  %v494_v11 = vld [vmem:[#allocation4 + $0x260] sm:$0xff]  ;;  %v11384_v12 = vpack.c.bf16 %v487_v9, %v484_v8  ;;  %v493_v15 = vld [vmem:[#allocation4 + $0x258] sm:$0xff]  ;;  %v500_v17 = vld [vmem:[#allocation4 + $0x290] sm:$0xff] }
  0x89   : > { %v11386_v13 = vpack.c.bf16 %v494_v11, %v491_v10  ;;  %v490_v14 = vld [vmem:[#allocation4 + $0x240] sm:$0xff]  ;;  %v497_v16 = vld [vmem:[#allocation4 + $0x278] sm:$0xff]  ;;  %v496_v20 = vld [vmem:[#allocation4 + $0x270] sm:$0xff] }
  0x8a   : > { %v11388_v18 = vpack.c.bf16 %v493_v15, %v490_v14  ;;  %v11390_v19 = vpack.c.bf16 %v500_v17, %v497_v16  ;;  %v499_v21 = vld [vmem:[#allocation4 + $0x288] sm:$0xff]  ;;  %v506_v23 = vld [vmem:[#allocation4 + $0x2c0] sm:$0xff]  ;;  %v505_v27 = vld [vmem:[#allocation4 + $0x2b8] sm:$0xff] }
  0x8b   : > { %11357 = vmatpush1.bf16.msra.mxu1 %v11356_v32  ;;  %v503_v22 = vld [vmem:[#allocation4 + $0x2a8] sm:$0xff]  ;;  %v11392_v24 = vpack.c.bf16 %v499_v21, %v496_v20  ;;  %v502_v26 = vld [vmem:[#allocation4 + $0x2a0] sm:$0xff]  ;;  %v509_v28 = vld [vmem:[#allocation4 + $0x2d8] sm:$0xff]  ;;  %v12305_v20 = vmov 0.0  }
  0x8c   : > { %11359 = vmatprep.subr.bf16.mxu1 %v11358_v33  ;;  %v11394_v25 = vpack.c.bf16 %v506_v23, %v503_v22  ;;  %v512_v29 = vld [vmem:[#allocation4 + $0x2f0] sm:$0xff]  ;;  %v11396_v30 = vpack.c.bf16 %v505_v27, %v502_v26  ;;  %v511_v33 = vld [vmem:[#allocation4 + $0x2e8] sm:$0xff]  ;;  %v474_v40 = vld [vmem:[#allocation4 + $0x1c0] sm:$0xff]  ;;  %748 = vmatprep.mubr.f32.mxu0 %v12305_v20  ;;  %v12315_v26 = vmov 0  }
  0x8d   : > { %v11398_v31 = vpack.c.bf16 %v512_v29, %v509_v28  ;;  %v508_v32 = vld [vmem:[#allocation4 + $0x2d0] sm:$0xff]  ;;  %v471_v35 = vld [vmem:[#allocation4 + $0x1a8] sm:$0xff]  ;;  %v477_v41 = vld [vmem:[#allocation4 + $0x1d8] sm:$0xff]  ;;  %12094 = vset.pattern.permute.xlu0 %v12315_v26  ;;  %12095 = vset.pattern.permute.xlu1 %v12315_v26 }
  0x8e   : > { %v468_v34 = vld [vmem:[#allocation4 + $0x190] sm:$0xff]  ;;  %v11400_v36 = vpack.c.bf16 %v511_v33, %v508_v32  ;;  %v11406_v44 = vpack.c.bf16 %v477_v41, %v474_v40  ;;  %v483_v49 = vld [vmem:[#allocation4 + $0x208] sm:$0xff]  ;;  %v486_v54 = vld [vmem:[#allocation4 + $0x220] sm:$0xff] }
  0x8f   : > { %11361 = vmatpush1.bf16.msra.mxu1 %v11360_v38  ;;  %v11402_v37 = vpack.c.bf16 %v471_v35, %v468_v34  ;;  %v420_v38 = vld [vmem:[#allocation4 + $0x10] sm:$0xff]  ;;  %v489_v55 = vld [vmem:[#allocation4 + $0x238] sm:$0xff]  ;;  %v495_v61 = vld [vmem:[#allocation4 + $0x268] sm:$0xff] }
  0x90   : > { %11363 = vmatprep.subr.bf16.mxu1 %v11362_v39  ;;  %v423_v39 = vld [vmem:[#allocation4 + $0x28] sm:$0xff]  ;;  %v480_v48 = vld [vmem:[#allocation4 + $0x1f0] sm:$0xff]  ;;  %v11414_v57 = vpack.c.bf16 %v489_v55, %v486_v54  ;;  %v501_v2 = vld [vmem:[#allocation4 + $0x298] sm:$0xff] }
  0x91   : > { %v11404_v43 = vpack.c.bf16 %v423_v39, %v420_v38  ;;  %v11410_v51 = vpack.c.bf16 %v483_v49, %v480_v48  ;;  %v492_v60 = vld [vmem:[#allocation4 + $0x250] sm:$0xff]  ;;  %v450_v5 = vld [vmem:[#allocation4 + $0x100] sm:$0xff]  ;;  %v507_v8 = vld [vmem:[#allocation4 + $0x2c8] sm:$0xff] }
  0x92   : > { %v11418_v63 = vpack.c.bf16 %v495_v61, %v492_v60  ;;  %v456_v11 = vld [vmem:[#allocation4 + $0x130] sm:$0xff]  ;;  %v513_v14 = vld [vmem:[#allocation4 + $0x2f8] sm:$0xff]  ;;  %v462_v17 = vld [vmem:[#allocation4 + $0x160] sm:$0xff] }
  0x93   : > { %11365 = vmatpush1.bf16.msra.mxu1 %v11364_v46  ;;  %v426_v46 = vld [vmem:[#allocation4 + $0x40] sm:$0xff]  ;;  %v12550_v27 = vld [vmem:[%s13573_s3 + $0x8] sm:$0xff]  ;;  %v11081_v54 = vld [vmem:[%s13573_s3 + $0x20] sm:$0xff] }
  0x94   : > { %11367 = vmatprep.subr.bf16.mxu1 %v11366_v47  ;;  %v429_v47 = vld [vmem:[#allocation4 + $0x58] sm:$0xff] }
  0x95   : > { %v11408_v50 = vpack.c.bf16 %v429_v47, %v426_v46  ;;  %v11075_v46 = vld [vmem:[%s13573_s3 + $0x18] sm:$0xff]  ;;  %v11087_v61 = vld [vmem:[%s13573_s3 + $0x28] sm:$0xff] }
  0x96   : > { %v2181_v26 = vld [vmem:[#allocation6 + $0xf8] sm:$0xff] }
  0x97   : > { %11369 = vmatpush1.bf16.msra.mxu1 %v11368_v52  ;;  %v432_v52 = vld [vmem:[#allocation4 + $0x70] sm:$0xff] }
  0x98   : > { %11371 = vmatprep.subr.bf16.mxu1 %v11370_v53  ;;  %v435_v53 = vld [vmem:[#allocation4 + $0x88] sm:$0xff] }
  0x99   : > { %v11412_v56 = vpack.c.bf16 %v435_v53, %v432_v52 }
  0x9b   : > { %11373 = vmatpush1.bf16.msra.mxu1 %v11372_v58  ;;  %v438_v58 = vld [vmem:[#allocation4 + $0xa0] sm:$0xff] }
  0x9c   : > { %11375 = vmatprep.subr.bf16.mxu1 %v11374_v59  ;;  %v441_v59 = vld [vmem:[#allocation4 + $0xb8] sm:$0xff] }
  0x9d   : > { %v11416_v62 = vpack.c.bf16 %v441_v59, %v438_v58 }
  0x9f   : > { %11377 = vmatpush1.bf16.msra.mxu1 %v11376_v0  ;;  %v444_v0 = vld [vmem:[#allocation4 + $0xd0] sm:$0xff] }
  0xa0   : > { %11379 = vmatprep.subr.bf16.mxu1 %v11378_v1  ;;  %v498_v1 = vld [vmem:[#allocation4 + $0x280] sm:$0xff] }
  0xa1   : > { %v11422_v4 = vpack.c.bf16 %v501_v2, %v498_v1 }
  0xa3   : > { %11381 = vmatpush1.bf16.msra.mxu1 %v11380_v6  ;;  %v453_v6 = vld [vmem:[#allocation4 + $0x118] sm:$0xff] }
  0xa4   : > { %11383 = vmatprep.subr.bf16.mxu1 %v11382_v7  ;;  %v504_v7 = vld [vmem:[#allocation4 + $0x2b0] sm:$0xff]  ;;  %v11424_v9 = vpack.c.bf16 %v453_v6, %v450_v5 }
  0xa5   : > { %v11426_v10 = vpack.c.bf16 %v507_v8, %v504_v7 }
  0xa7   : > { %11385 = vmatpush1.bf16.msra.mxu1 %v11384_v12  ;;  %v459_v12 = vld [vmem:[#allocation4 + $0x148] sm:$0xff] }
  0xa8   : > { %11387 = vmatprep.subr.bf16.mxu1 %v11386_v13  ;;  %v510_v13 = vld [vmem:[#allocation4 + $0x2e0] sm:$0xff]  ;;  %v11428_v15 = vpack.c.bf16 %v459_v12, %v456_v11  ;;  %v11105_v12 = vld [vmem:[%s13573_s3 + $0x40] sm:$0xff] }
  0xa9   : > { %v11430_v16 = vpack.c.bf16 %v513_v14, %v510_v13  ;;  %v2151_v13 = vld [vmem:[#allocation6 + $0x8] sm:$0xff]  ;;  %v2161_v14 = vld [vmem:[#allocation6 + $0x58] sm:$0xff] }
  0xab   : > { %11389 = vmatpush1.bf16.msra.mxu1 %v11388_v18  ;;  %v465_v18 = vld [vmem:[#allocation4 + $0x178] sm:$0xff] }
  0xac   : > { %11391 = vmatprep.subr.bf16.mxu1 %v11390_v19  ;;  %v11432_v19 = vpack.c.bf16 %v465_v18, %v462_v17  ;;  %v2163_v17 = vld [vmem:[#allocation6 + $0x68] sm:$0xff]  ;;  %v2150_v18 = vld [vmem:[#allocation6] sm:$0xff] }
  0xaf   : > { %11393 = vmatpush1.bf16.msra.mxu1 %v11392_v24 }
  0xb0   : > { %11395 = vmatprep.subr.bf16.mxu1 %v11394_v25 }
  0xb3   : > { %11397 = vmatpush1.bf16.msra.mxu1 %v11396_v30  ;;  %v658_v30 = vld [vmem:[%s13573_s3] sm:$0xff] }
  0xb4   : > { %11399 = vmatprep.subr.bf16.mxu1 %v11398_v31 }
  0xb7   : > { %11401 = vmatpush1.bf16.msra.mxu1 %v11400_v36 }
  0xb8   : > { %11403 = vmatprep.subr.bf16.mxu1 %v11402_v37  ;;  %v11069_v37 = vld [vmem:[%s13573_s3 + $0x10] sm:$0xff] }
  0xba   : > { %582 = vmatmul.mubr.f32.vlgmr.msra.gmra.mrb[0].mxu1 %v12521_v42 }
  0xbb   : > { %11405 = vmatpush3.bf16.msra.mxu1 %v11404_v43  ;;  %652 = vmatprep.mubr.f32.mxu1 %v12525_v45  ;;  %v447_v45 = vld [vmem:[#allocation4 + $0xe8] sm:$0xff] }
  0xbc   : > { %11407 = vmatprep.subr.bf16.mxu1 %v11406_v44  ;;  %v11420_v3 = vpack.c.bf16 %v447_v45, %v444_v0 }
  0xbf   : > { %11409 = vmatpush3.bf16.msra.mxu1 %v11408_v50 }
  0xc0   : > { %11411 = vmatprep.subr.bf16.mxu1 %v11410_v51 }
  0xc3   : > { %11413 = vmatpush3.bf16.msra.mxu1 %v11412_v56 }
  0xc4   : > { %11415 = vmatprep.subr.bf16.mxu1 %v11414_v57 }
  0xc7   : > { %11417 = vmatpush3.bf16.msra.mxu1 %v11416_v62 }
  0xc8   : > { %11419 = vmatprep.subr.bf16.mxu1 %v11418_v63 }
  0xcb   : > { %11421 = vmatpush3.bf16.msra.mxu1 %v11420_v3  ;;  %v11093_v3 = vld [vmem:[%s13573_s3 + $0x30] sm:$0xff] }
  0xcc   : > { %11423 = vmatprep.subr.bf16.mxu1 %v11422_v4 }
  0xcf   : > { %11425 = vmatpush3.bf16.msra.mxu1 %v11424_v9 }
  0xd0   : > { %11427 = vmatprep.subr.bf16.mxu1 %v11426_v10  ;;  %v11099_v10 = vld [vmem:[%s13573_s3 + $0x38] sm:$0xff] }
  0xd3   : > { %11429 = vmatpush3.bf16.msra.mxu1 %v11428_v15  ;;  %v2153_v15 = vld [vmem:[#allocation6 + $0x18] sm:$0xff] }
  0xd4   : > { %11431 = vmatprep.subr.bf16.mxu1 %v11430_v16  ;;  %v11434_v16 = vpack.c.bf16 %v2161_v14, %v2151_v13 }
  0xd7   : > { %11433 = vmatpush3.bf16.msra.mxu1 %v11432_v19  ;;  %v2160_v19 = vld [vmem:[#allocation6 + $0x50] sm:$0xff] }
  0xd8   : > { %11293 = vmatprep.subr.mxu1 %v12305_v20 }
  0xda   : > { %653 = vmatmul.mubr.f32.vlgmr.msra.gmra.mrb[2].mxu1 %v12521_v42  ;;  %v2123_v42 = vld [vmem:[%s13574_s4] sm:$0xff] }
  0xdb   : > { %11295 = vmatprep.mubr.msk.f32.mxu1 %vm12306_vm0, %v12305_v20 }
 0x18d   : > { %v583_v21 = vpop.f32.mrb[0].mxu1 }
 0x18e   : > { %v585_v22 = vpop.f32.mrb[1].mxu1 }
 0x1ad   : > { %v11272_v23 = vpop.f32.mrb[2].mxu1 }
 0x1ae   : > { %v11273_v24 = vpop.f32.mrb[3].mxu1 }
 0x1af   : > { %v11274_v25 = vadd.f32 %v11273_v24, %v11272_v23  ;;  %v2152_v23 = vld [vmem:[#allocation6 + $0x10] sm:$0xff]  ;;  %v2162_v24 = vld [vmem:[#allocation6 + $0x60] sm:$0xff] }
 0x1b1   : > { %981 = vrot.lane.b32.xlu1 %v11274_v25, %s12307_s17  ;;  %668 = vrot.lane.b32.xlu0 %v11274_v25, %s12308_s11 }
 0x1b5   : > { %977 = vrot.lane.b32.xlu1 %v583_v21, %s12307_s17  ;;  %979 = vrot.lane.b32.xlu0 %v585_v22, %s12307_s17 }
 0x1b9   : > { %1145 = vrot.lane.b32.xlu1 %v11274_v25, %s12309_s12  ;;  %1143 = vrot.lane.b32.xlu0 %v585_v22, %s12309_s12 }
 0x1bd   : > { %1307 = vrot.lane.b32.xlu1 %v585_v22, %s12310_s13  ;;  %1141 = vrot.lane.b32.xlu0 %v583_v21, %s12309_s12 }
 0x1c1   : > { %1305 = vrot.lane.b32.xlu1 %v583_v21, %s12310_s13  ;;  %1309 = vrot.lane.b32.xlu0 %v11274_v25, %s12310_s13  ;;  %s12320_s13 = smov 58  }
 0x1c5   : > { %1473 = vrot.lane.b32.xlu1 %v11274_v25, %s12311_s14  ;;  %1471 = vrot.lane.b32.xlu0 %v585_v22, %s12311_s14 }
 0x1c9   : > { %1635 = vrot.lane.b32.xlu1 %v585_v22, %s12312_s16  ;;  %1469 = vrot.lane.b32.xlu0 %v583_v21, %s12311_s14 }
 0x1cd   : > { %1633 = vrot.lane.b32.xlu1 %v583_v21, %s12312_s16  ;;  %1637 = vrot.lane.b32.xlu0 %v11274_v25, %s12312_s16 }
 0x1d1   : > { %1801 = vrot.lane.b32.xlu1 %v11274_v25, %s12313_s19  ;;  %1799 = vrot.lane.b32.xlu0 %v585_v22, %s12313_s19 }
 0x1d5   : > { %666 = vrot.lane.b32.xlu1 %v585_v22, %s12308_s11  ;;  %1797 = vrot.lane.b32.xlu0 %v583_v21, %s12313_s19 }
 0x1d9   : > { %1965 = vrot.lane.b32.xlu1 %v11274_v25, %s12314_s22  ;;  %1963 = vrot.lane.b32.xlu0 %v585_v22, %s12314_s22 }
 0x1dd   : > { %1961 = vrot.lane.b32.xlu1 %v583_v21, %s12314_s22  ;;  %664 = vrot.lane.b32.xlu0 %v583_v21, %s12308_s11 }
 0x1e1   : > { %2126 = vperm.xlu0 %12094, %v2123_v42   ;;  %v2171_v42 = vld [vmem:[#allocation6 + $0xa8] sm:$0xff] }
 0x223   : > { %v982_v28 = vpop.permute.xlu1 %981  ;;  %v12552_v29 = vpop.permute.xlu0 %668 }
 0x224   : > { %11294 = vmatpush3.msk.msra.mxu1 %vm677_vm1, %v12552_v29 }
 0x225   : > { %11296 = vmatmul.mubr.msk.f32.vlgmr.msra.gmra.mrb[4].mxu1 %vm673_vm2, %v12550_v27  ;;  %11064 = vmatprep.subr.msk.mxu1 %vm677_vm1, %v585_v22  ;;  %v11436_v22 = vpack.c.bf16 %v2160_v19, %v2150_v18  ;;  %v2262_v19 = vld [vmem:[#allocation6 + $0x380] sm:$0xff] }
 0x226   : > { %11065 = vmatpush1.msk.msra.mxu1 %vm677_vm1, %v583_v21  ;;  %898 = vmatprep.mubr.f32.mxu1 %v12305_v20  ;;  %v11514_v21 = vpack.c.bf16 %v2163_v17, %v2153_v15  ;;  %v2250_v15 = vld [vmem:[#allocation6 + $0x320] sm:$0xff]  ;;  %v2252_v17 = vld [vmem:[#allocation6 + $0x330] sm:$0xff] }
 0x227   : > { %v978_v31 = vpop.permute.xlu1 %977  ;;  %v980_v32 = vpop.permute.xlu0 %979  ;;  %11298 = vmatprep.subr.mxu1 %v12305_v20 }
 0x228   : > { %v985_v33 = vsel %vm983_vm3, %v980_v32, %v982_v28  ;;  %v984_v36 = vsel %vm983_vm3, %v978_v31, %v980_v32  ;;  %v2180_v31 = vld [vmem:[#allocation6 + $0xf0] sm:$0xff] }
 0x229   : > { %11066 = vmatmul.mubr.msk.f32.vlgmr.msra.gmra.mrb[6].mxu1 %vm673_vm2, %v658_v30 }
 0x22a   : > { %11299 = vmatpush3.msk.msra.mxu1 %vm677_vm1, %v11274_v25  ;;  %11300 = vmatprep.mubr.msk.f32.mxu1 %vm12306_vm0, %v12305_v20  ;;  %v11516_v25 = vpack.c.bf16 %v2162_v24, %v2152_v23  ;;  %v2273_v23 = vld [vmem:[#allocation6 + $0x3d8] sm:$0xff]  ;;  %v2283_v24 = vld [vmem:[#allocation6 + $0x428] sm:$0xff] }
 0x22b   : > { %11070 = vmatprep.subr.msk.mxu1 %vm677_vm1, %v985_v33  ;;  %v1146_v34 = vpop.permute.xlu1 %1145  ;;  %v1144_v35 = vpop.permute.xlu0 %1143 }
 0x22c   : > { %v1149_v40 = vsel %vm1147_vm4, %v1144_v35, %v1146_v34 }
 0x22d   : > { %11301 = vmatmul.mubr.msk.f32.vlgmr.msra.gmra.mrb[8].mxu1 %vm673_vm2, %v658_v30  ;;  %v2170_v30 = vld [vmem:[#allocation6 + $0xa0] sm:$0xff] }
 0x22e   : > { %11071 = vmatpush1.msk.msra.mxu1 %vm677_vm1, %v984_v36  ;;  %1059 = vmatprep.mubr.f32.mxu1 %v12305_v20  ;;  %v11440_v33 = vpack.c.bf16 %v2180_v31, %v2170_v30  ;;  %v2272_v30 = vld [vmem:[#allocation6 + $0x3d0] sm:$0xff]  ;;  %v2282_v31 = vld [vmem:[#allocation6 + $0x420] sm:$0xff] }
 0x22f   : > { %v1308_v38 = vpop.permute.xlu1 %1307  ;;  %v1142_v39 = vpop.permute.xlu0 %1141  ;;  %11303 = vmatprep.subr.mxu1 %v12305_v20 }
 0x230   : > { %v1148_v44 = vsel %vm1147_vm4, %v1142_v39, %v1144_v35  ;;  %v2182_v35 = vld [vmem:[#allocation6 + $0x100] sm:$0xff]  ;;  %v2193_v39 = vld [vmem:[#allocation6 + $0x158] sm:$0xff]  ;;  %vm6143_vm4 = vcmask 482304  }
 0x231   : > { %11072 = vmatmul.mubr.msk.f32.vlgmr.msra.gmra.mrb[6].mxu1 %vm673_vm2, %v11069_v37 }
 0x232   : > { %11304 = vmatpush3.msk.msra.mxu1 %vm677_vm1, %v982_v28  ;;  %11305 = vmatprep.mubr.msk.f32.mxu1 %vm12306_vm0, %v12305_v20  ;;  %v11438_v28 = vpack.c.bf16 %v2181_v26, %v2171_v42  ;;  %v11536_v42 = vpack.c.bf16 %v2262_v19, %v2252_v17  ;;  %v2362_v17 = vld [vmem:[#allocation6 + $0x6a0] sm:$0xff]  ;;  %v2371_v19 = vld [vmem:[#allocation6 + $0x6e8] sm:$0xff] }
 0x233   : > { %11076 = vmatprep.subr.msk.mxu1 %vm677_vm1, %v1149_v40  ;;  %v1306_v41 = vpop.permute.xlu1 %1305  ;;  %v12584_v43 = vpop.permute.xlu0 %1309 }
 0x234   : > { %v1313_v49 = vsel %vm1311_vm5, %v1308_v38, %v12584_v43  ;;  %v1312_v52 = vsel %vm1311_vm5, %v1306_v41, %v1308_v38  ;;  %v2201_v38 = vld [vmem:[#allocation6 + $0x198] sm:$0xff]  ;;  %v2203_v41 = vld [vmem:[#allocation6 + $0x1a8] sm:$0xff]  ;;  %vm6553_vm5 = vcmask 474112  }
 0x235   : > { %11306 = vmatmul.mubr.msk.f32.vlgmr.msra.gmra.mrb[10].mxu1 %vm673_vm2, %v11069_v37  ;;  %v2191_v37 = vld [vmem:[#allocation6 + $0x148] sm:$0xff] }
 0x236   : > { %11077 = vmatpush1.msk.msra.mxu1 %vm677_vm1, %v1148_v44  ;;  %1223 = vmatprep.mubr.f32.mxu1 %v12305_v20  ;;  %v11442_v40 = vpack.c.bf16 %v2201_v38, %v2191_v37  ;;  %v2200_v44 = vld [vmem:[#allocation6 + $0x190] sm:$0xff]  ;;  %v2303_v38 = vld [vmem:[#allocation6 + $0x4c8] sm:$0xff] }
 0x237   : > { %v12592_v47 = vpop.permute.xlu1 %1473  ;;  %v1472_v48 = vpop.permute.xlu0 %1471  ;;  %11308 = vmatprep.subr.mxu1 %v12305_v20 }
 0x238   : > { %v1477_v53 = vsel %vm1475_vm6, %v1472_v48, %v12592_v47 }
 0x239   : > { %11078 = vmatmul.mubr.msk.f32.vlgmr.msra.gmra.mrb[6].mxu1 %vm673_vm2, %v11075_v46 }
 0x23a   : > { %11309 = vmatpush3.msk.msra.mxu1 %vm677_vm1, %v1146_v34  ;;  %11310 = vmatprep.mubr.msk.f32.mxu1 %vm12306_vm0, %v12305_v20  ;;  %v2172_v34 = vld [vmem:[#allocation6 + $0xb0] sm:$0xff] }
 0x23b   : > { %11082 = vmatprep.subr.msk.mxu1 %vm677_vm1, %v1313_v49  ;;  %v1636_v50 = vpop.permute.xlu1 %1635  ;;  %v1470_v51 = vpop.permute.xlu0 %1469  ;;  %v11520_v36 = vpack.c.bf16 %v2182_v35, %v2172_v34  ;;  %v2202_v49 = vld [vmem:[#allocation6 + $0x1a0] sm:$0xff]  ;;  %v2291_v34 = vld [vmem:[#allocation6 + $0x468] sm:$0xff]  ;;  %v2301_v35 = vld [vmem:[#allocation6 + $0x4b8] sm:$0xff] }
 0x23c   : > { %v1476_v58 = vsel %vm1475_vm6, %v1470_v51, %v1472_v48  ;;  %v2192_v48 = vld [vmem:[#allocation6 + $0x150] sm:$0xff]  ;;  %v11462_v37 = vpack.c.bf16 %v2301_v35, %v2291_v34  ;;  %v2403_v35 = vld [vmem:[#allocation6 + $0x7e8] sm:$0xff]  ;;  %vm7081_vm6 = vcmask 285696  }
 0x23d   : > { %11311 = vmatmul.mubr.msk.f32.vlgmr.msra.gmra.mrb[12].mxu1 %vm673_vm2, %v11075_v46  ;;  %v11522_v46 = vpack.c.bf16 %v2203_v41, %v2193_v39  ;;  %v11524_v51 = vpack.c.bf16 %v2202_v49, %v2192_v48  ;;  %v2290_v39 = vld [vmem:[#allocation6 + $0x460] sm:$0xff]  ;;  %v2311_v48 = vld [vmem:[#allocation6 + $0x508] sm:$0xff]  ;;  %v2321_v49 = vld [vmem:[#allocation6 + $0x558] sm:$0xff]  ;;  %7082 = vst.msk [vmem:[#allocation2] sm:$0xff] %vm7081_vm6, %v12305_v20 }
 0x23e   : > { %11083 = vmatpush1.msk.msra.mxu1 %vm677_vm1, %v1312_v52  ;;  %1387 = vmatprep.mubr.f32.mxu1 %v12305_v20  ;;  %v2221_v52 = vld [vmem:[#allocation6 + $0x238] sm:$0xff] }
 0x23f   : > { %11088 = vmatprep.subr.msk.mxu1 %vm677_vm1, %v1477_v53  ;;  %v1634_v55 = vpop.permute.xlu1 %1633  ;;  %v1638_v56 = vpop.permute.xlu0 %1637  ;;  %v2213_v53 = vld [vmem:[#allocation6 + $0x1f8] sm:$0xff] }
 0x240   : > { %v1641_v57 = vsel %vm1639_vm7, %v1636_v50, %v1638_v56  ;;  %v1640_v45 = vsel %vm1639_vm7, %v1634_v55, %v1636_v50  ;;  %v2211_v50 = vld [vmem:[#allocation6 + $0x1e8] sm:$0xff] }
 0x241   : > { %11084 = vmatmul.mubr.msk.f32.vlgmr.msra.gmra.mrb[6].mxu1 %vm673_vm2, %v11081_v54  ;;  %v11446_v55 = vpack.c.bf16 %v2221_v52, %v2211_v50  ;;  %v2313_v50 = vld [vmem:[#allocation6 + $0x518] sm:$0xff]  ;;  %v2323_v52 = vld [vmem:[#allocation6 + $0x568] sm:$0xff] }
 0x242   : > { %11089 = vmatpush1.msk.msra.mxu1 %vm677_vm1, %v1476_v58  ;;  %1551 = vmatprep.mubr.f32.mxu1 %v12305_v20  ;;  %v2220_v58 = vld [vmem:[#allocation6 + $0x230] sm:$0xff] }
 0x243   : > { %11094 = vmatprep.subr.msk.mxu1 %vm677_vm1, %v1641_v57  ;;  %v1802_v59 = vpop.permute.xlu1 %1801  ;;  %v1800_v60 = vpop.permute.xlu0 %1799  ;;  %v2210_v57 = vld [vmem:[#allocation6 + $0x1e0] sm:$0xff] }
 0x244   : > { %v1805_v1 = vsel %vm1803_vm9, %v1800_v60, %v1802_v59 }
 0x247   : > { %v667_v62 = vpop.permute.xlu1 %666  ;;  %v1798_v63 = vpop.permute.xlu0 %1797 }
 0x248   : > { %v672_v0 = vsel %vm670_vm8, %v667_v62, %v12552_v29  ;;  %v1804_v7 = vsel %vm1803_vm9, %v1798_v63, %v1800_v60  ;;  %v2183_v29 = vld [vmem:[#allocation6 + $0x108] sm:$0xff]  ;;  %v11448_v60 = vpack.c.bf16 %v2220_v58, %v2210_v57  ;;  %v2241_v63 = vld [vmem:[#allocation6 + $0x2d8] sm:$0xff]  ;;  %v2312_v57 = vld [vmem:[#allocation6 + $0x510] sm:$0xff] }
 0x249   : > { %11059 = vmatprep.subr.msk.mxu0 %vm677_vm1, %v672_v0  ;;  %11090 = vmatmul.mubr.msk.f32.vlgmr.msra.gmra.mrb[6].mxu1 %vm673_vm2, %v11087_v61  ;;  %v2322_v58 = vld [vmem:[#allocation6 + $0x560] sm:$0xff] }
 0x24a   : > { %11095 = vmatpush1.msk.msra.mxu1 %vm677_vm1, %v1640_v45  ;;  %1715 = vmatprep.mubr.f32.mxu1 %v12305_v20 }
 0x24b   : > { %11100 = vmatprep.subr.msk.mxu1 %vm677_vm1, %v1805_v1  ;;  %v1964_v2 = vpop.permute.xlu0 %1963  ;;  %v1966_v4 = vpop.permute.xlu1 %1965  ;;  %v2233_v1 = vld [vmem:[#allocation6 + $0x298] sm:$0xff] }
 0x24c   : > { %v1969_v8 = vsel %vm1967_vm10, %v1964_v2, %v1966_v4 }
 0x24f   : > { %v665_v5 = vpop.permute.xlu0 %664  ;;  %v1962_v9 = vpop.permute.xlu1 %1961 }
 0x250   : > { %v671_v6 = vsel %vm670_vm8, %v665_v5, %v667_v62  ;;  %v1968_v11 = vsel %vm1967_vm10, %v1962_v9, %v1964_v2  ;;  %v2231_v62 = vld [vmem:[#allocation6 + $0x288] sm:$0xff]  ;;  %v2240_v5 = vld [vmem:[#allocation6 + $0x2d0] sm:$0xff]  ;;  %v2261_v9 = vld [vmem:[#allocation6 + $0x378] sm:$0xff] }
 0x251   : > { %11060 = vmatpush1.msk.msra.mxu0 %vm677_vm1, %v671_v6  ;;  %11096 = vmatmul.mubr.msk.f32.vlgmr.msra.gmra.mrb[6].mxu1 %vm673_vm2, %v11093_v3  ;;  %v11450_v45 = vpack.c.bf16 %v2241_v63, %v2231_v62  ;;  %v2243_v2 = vld [vmem:[#allocation6 + $0x2e8] sm:$0xff]  ;;  %v2232_v6 = vld [vmem:[#allocation6 + $0x290] sm:$0xff]  ;;  %v2333_v62 = vld [vmem:[#allocation6 + $0x5b8] sm:$0xff] }
 0x252   : > { %11101 = vmatpush1.msk.msra.mxu1 %vm677_vm1, %v1804_v7  ;;  %11061 = vmatmul.mubr.msk.f32.vlgmr.msra.gmra.mrb[0].mxu0 %vm673_vm2, %v12550_v27  ;;  %v2173_v27 = vld [vmem:[#allocation6 + $0xb8] sm:$0xff]  ;;  %v2242_v7 = vld [vmem:[#allocation6 + $0x2e0] sm:$0xff] }
 0x253   : > { %11313 = vmatprep.subr.mxu0 %v12305_v20  ;;  %11106 = vmatprep.subr.msk.mxu1 %vm677_vm1, %v1969_v8  ;;  %v11518_v32 = vpack.c.bf16 %v2183_v29, %v2173_v27  ;;  %v2251_v8 = vld [vmem:[#allocation6 + $0x328] sm:$0xff]  ;;  %v11532_v13 = vpack.c.bf16 %v2242_v7, %v2232_v6  ;;  %v2270_v27 = vld [vmem:[#allocation6 + $0x3c0] sm:$0xff]  ;;  %v11538_v29 = vpack.c.bf16 %v2283_v24, %v2273_v23 }
 0x254   : > { %11314 = vmatpush3.msk.msra.mxu0 %vm677_vm1, %v12584_v43  ;;  %11315 = vmatprep.mubr.msk.f32.mxu0 %vm12306_vm0, %v12305_v20  ;;  %v2190_v43 = vld [vmem:[#allocation6 + $0x140] sm:$0xff]  ;;  %v11454_v14 = vpack.c.bf16 %v2261_v9, %v2251_v8  ;;  %v2351_v7 = vld [vmem:[#allocation6 + $0x648] sm:$0xff]  ;;  %v2361_v8 = vld [vmem:[#allocation6 + $0x698] sm:$0xff] }
 0x255   : > { %11318 = vmatprep.subr.mxu0 %v12305_v20  ;;  %1879 = vmatprep.mubr.f32.mxu1 %v12305_v20  ;;  %v2353_v9 = vld [vmem:[#allocation6 + $0x658] sm:$0xff]  ;;  %v2383_v24 = vld [vmem:[#allocation6 + $0x748] sm:$0xff] }
 0x256   : > { %11316 = vmatmul.mubr.msk.f32.vlgmr.msra.gmra.mrb[2].mxu0 %vm673_vm2, %v11081_v54  ;;  %v2223_v54 = vld [vmem:[#allocation6 + $0x248] sm:$0xff] }
 0x257   : > { %11319 = vmatpush3.msk.msra.mxu0 %vm677_vm1, %v12592_v47  ;;  %11320 = vmatprep.mubr.msk.f32.mxu0 %vm12306_vm0, %v12305_v20  ;;  %v11444_v47 = vpack.c.bf16 %v2200_v44, %v2190_v43  ;;  %v2292_v44 = vld [vmem:[#allocation6 + $0x470] sm:$0xff] }
 0x258   : > { %11323 = vmatprep.subr.mxu0 %v12305_v20 }
 0x259   : > { %11102 = vmatmul.mubr.msk.f32.vlgmr.msra.gmra.mrb[6].mxu1 %vm673_vm2, %v11099_v10 }
 0x25a   : > { %11107 = vmatpush1.msk.msra.mxu1 %vm677_vm1, %v1968_v11  ;;  %11321 = vmatmul.mubr.msk.f32.vlgmr.msra.gmra.mrb[4].mxu0 %vm673_vm2, %v11087_v61  ;;  %v2222_v61 = vld [vmem:[#allocation6 + $0x240] sm:$0xff] }
 0x25b   : > { %11324 = vmatpush3.msk.msra.mxu0 %vm677_vm1, %v1638_v56  ;;  %11325 = vmatprep.mubr.msk.f32.mxu0 %vm12306_vm0, %v12305_v20  ;;  %v11526_v56 = vpack.c.bf16 %v2223_v54, %v2213_v53  ;;  %v2310_v53 = vld [vmem:[#allocation6 + $0x500] sm:$0xff]  ;;  %v2320_v54 = vld [vmem:[#allocation6 + $0x550] sm:$0xff] }
 0x25c   : > { %11328 = vmatprep.subr.mxu0 %v12305_v20  ;;  %2043 = vmatprep.mubr.f32.mxu1 %v12305_v20 }
 0x25d   : > { %11515 = vmatprep.subr.bf16.mxu1 %v11514_v21  ;;  %v2271_v21 = vld [vmem:[#allocation6 + $0x3c8] sm:$0xff] }
 0x25e   : > { %11326 = vmatmul.mubr.msk.f32.vlgmr.msra.gmra.mrb[6].mxu0 %vm673_vm2, %v11093_v3  ;;  %v2230_v3 = vld [vmem:[#allocation6 + $0x280] sm:$0xff] }
 0x25f   : > { %11329 = vmatpush3.msk.msra.mxu0 %vm677_vm1, %v1802_v59  ;;  %11330 = vmatprep.mubr.msk.f32.mxu0 %vm12306_vm0, %v12305_v20  ;;  %v2212_v59 = vld [vmem:[#allocation6 + $0x1f0] sm:$0xff]  ;;  %v11452_v11 = vpack.c.bf16 %v2240_v5, %v2230_v3  ;;  %v2342_v5 = vld [vmem:[#allocation6 + $0x600] sm:$0xff] }
 0x260   : > { %11333 = vmatprep.subr.mxu0 %v12305_v20  ;;  %v11528_v0 = vpack.c.bf16 %v2222_v61, %v2212_v59  ;;  %v11548_v59 = vpack.c.bf16 %v2322_v58, %v2312_v57  ;;  %v2341_v61 = vld [vmem:[#allocation6 + $0x5f8] sm:$0xff]  ;;  %v2431_v57 = vld [vmem:[#allocation6 + $0x8c8] sm:$0xff] }
 0x261   : > { %11108 = vmatmul.mubr.msk.f32.vlgmr.msra.gmra.mrb[6].mxu1 %vm673_vm2, %v11105_v12  ;;  %v2441_v58 = vld [vmem:[#allocation6 + $0x918] sm:$0xff] }
 0x262   : > { %11331 = vmatmul.mubr.msk.f32.vlgmr.msra.gmra.mrb[8].mxu0 %vm673_vm2, %v11099_v10  ;;  %11517 = vmatpush1.bf16.msra.mxu1 %v11516_v25  ;;  %v2253_v10 = vld [vmem:[#allocation6 + $0x338] sm:$0xff] }
 0x263   : > { %11334 = vmatpush3.msk.msra.mxu0 %vm677_vm1, %v1966_v4  ;;  %11335 = vmatprep.mubr.msk.f32.mxu0 %vm12306_vm0, %v12305_v20  ;;  %v11530_v4 = vpack.c.bf16 %v2243_v2, %v2233_v1  ;;  %v2340_v1 = vld [vmem:[#allocation6 + $0x5f0] sm:$0xff]  ;;  %vm4504_vm0 = vcmask 769024  }
 0x264   : > { %11435 = vmatprep.subr.bf16.mxu0 %v11434_v16  ;;  %11519 = vmatprep.subr.bf16.mxu1 %v11518_v32  ;;  %v2260_v16 = vld [vmem:[#allocation6 + $0x370] sm:$0xff] }
 0x265   : > { %v11456_v25 = vpack.c.bf16 %v2260_v16, %v2250_v15  ;;  %v2352_v16 = vld [vmem:[#allocation6 + $0x650] sm:$0xff] }
 0x266   : > { %11336 = vmatmul.mubr.msk.f32.vlgmr.msra.gmra.mrb[10].mxu0 %vm673_vm2, %v11105_v12  ;;  %11521 = vmatpush1.bf16.msra.mxu1 %v11520_v36  ;;  %v2263_v12 = vld [vmem:[#allocation6 + $0x388] sm:$0xff]  ;;  %v2293_v36 = vld [vmem:[#allocation6 + $0x478] sm:$0xff]  ;;  %vm5733_vm2 = vcmask 490496  }
 0x267   : > { %11437 = vmatpush1.bf16.msra.mxu0 %v11436_v22  ;;  %11523 = vmatprep.subr.bf16.mxu1 %v11522_v46  ;;  %v11534_v18 = vpack.c.bf16 %v2263_v12, %v2253_v10  ;;  %v2281_v22 = vld [vmem:[#allocation6 + $0x418] sm:$0xff]  ;;  %v11542_v41 = vpack.c.bf16 %v2303_v38, %v2293_v36  ;;  %v2302_v46 = vld [vmem:[#allocation6 + $0x4c0] sm:$0xff]  ;;  %v11474_v10 = vpack.c.bf16 %v2361_v8, %v2351_v7  ;;  %v2463_v7 = vld [vmem:[#allocation6 + $0x9c8] sm:$0xff] }
 0x268   : > { %11439 = vmatprep.subr.bf16.mxu0 %v11438_v28  ;;  %v11458_v26 = vpack.c.bf16 %v2281_v22, %v2271_v21  ;;  %v2280_v28 = vld [vmem:[#allocation6 + $0x410] sm:$0xff]  ;;  %v2350_v12 = vld [vmem:[#allocation6 + $0x640] sm:$0xff]  ;;  %v2381_v21 = vld [vmem:[#allocation6 + $0x738] sm:$0xff] }
 0x269   : > { %v11460_v32 = vpack.c.bf16 %v2280_v28, %v2270_v27  ;;  %v2373_v22 = vld [vmem:[#allocation6 + $0x6f8] sm:$0xff]  ;;  %v11478_v23 = vpack.c.bf16 %v2381_v21, %v2371_v19  ;;  %v2372_v28 = vld [vmem:[#allocation6 + $0x6f0] sm:$0xff]  ;;  %v2390_v36 = vld [vmem:[#allocation6 + $0x780] sm:$0xff] }
 0x26a   : > { %11525 = vmatpush1.bf16.msra.mxu1 %v11524_v51  ;;  %v11466_v51 = vpack.c.bf16 %v2321_v49, %v2311_v48  ;;  %v2423_v49 = vld [vmem:[#allocation6 + $0x888] sm:$0xff] }
 0x26b   : > { %11441 = vmatpush1.bf16.msra.mxu0 %v11440_v33  ;;  %11527 = vmatprep.subr.bf16.mxu1 %v11526_v56  ;;  %v11540_v33 = vpack.c.bf16 %v2282_v31, %v2272_v30  ;;  %v11468_v56 = vpack.c.bf16 %v2320_v54, %v2310_v53  ;;  %v2391_v31 = vld [vmem:[#allocation6 + $0x788] sm:$0xff]  ;;  %v2412_v54 = vld [vmem:[#allocation6 + $0x830] sm:$0xff] }
 0x26c   : > { %11443 = vmatprep.subr.bf16.mxu0 %v11442_v40  ;;  %v2300_v40 = vld [vmem:[#allocation6 + $0x4b0] sm:$0xff]  ;;  %v2167_v21 = vld [vmem:[#allocation6 + $0x88] sm:$0xff] }
 0x26d   : > { %v11464_v43 = vpack.c.bf16 %v2300_v40, %v2290_v39  ;;  %v2392_v40 = vld [vmem:[#allocation6 + $0x790] sm:$0xff] }
 0x26e   : > { %11529 = vmatpush1.bf16.msra.mxu1 %v11528_v0  ;;  %v2343_v0 = vld [vmem:[#allocation6 + $0x608] sm:$0xff] }
 0x26f   : > { %11445 = vmatpush1.bf16.msra.mxu0 %v11444_v47  ;;  %11531 = vmatprep.subr.bf16.mxu1 %v11530_v4  ;;  %v11544_v47 = vpack.c.bf16 %v2302_v46, %v2292_v44  ;;  %v11550_v2 = vpack.c.bf16 %v2343_v0, %v2333_v62  ;;  %v2332_v4 = vld [vmem:[#allocation6 + $0x5b0] sm:$0xff]  ;;  %v2411_v44 = vld [vmem:[#allocation6 + $0x828] sm:$0xff]  ;;  %v2421_v46 = vld [vmem:[#allocation6 + $0x878] sm:$0xff] }
 0x270   : > { %11447 = vmatprep.subr.bf16.mxu0 %v11446_v55  ;;  %v11546_v55 = vpack.c.bf16 %v2323_v52, %v2313_v50  ;;  %v11552_v6 = vpack.c.bf16 %v2342_v5, %v2332_v4  ;;  %v11486_v48 = vpack.c.bf16 %v2421_v46, %v2411_v44  ;;  %v2410_v50 = vld [vmem:[#allocation6 + $0x820] sm:$0xff]  ;;  %v2461_v5 = vld [vmem:[#allocation6 + $0x9b8] sm:$0xff] }
 0x271   : > { %v2430_v62 = vld [vmem:[#allocation6 + $0x8c0] sm:$0xff] }
 0x272   : > { %11533 = vmatpush1.bf16.msra.mxu1 %v11532_v13  ;;  %v2360_v13 = vld [vmem:[#allocation6 + $0x690] sm:$0xff] }
 0x273   : > { %11449 = vmatpush1.bf16.msra.mxu0 %v11448_v60  ;;  %11535 = vmatprep.subr.bf16.mxu1 %v11534_v18  ;;  %v2331_v60 = vld [vmem:[#allocation6 + $0x5a8] sm:$0xff]  ;;  %v11476_v15 = vpack.c.bf16 %v2360_v13, %v2350_v12  ;;  %v11556_v18 = vpack.c.bf16 %v2362_v17, %v2352_v16  ;;  %v2452_v12 = vld [vmem:[#allocation6 + $0x970] sm:$0xff]  ;;  %v2481_v17 = vld [vmem:[#allocation6 + $0xa58] sm:$0xff] }
 0x274   : > { %11451 = vmatprep.subr.bf16.mxu0 %v11450_v45  ;;  %v11470_v63 = vpack.c.bf16 %v2341_v61, %v2331_v60  ;;  %v2330_v45 = vld [vmem:[#allocation6 + $0x5a0] sm:$0xff]  ;;  %v11490_v60 = vpack.c.bf16 %v2441_v58, %v2431_v57  ;;  %v2443_v61 = vld [vmem:[#allocation6 + $0x928] sm:$0xff] }
 0x275   : > { %v11472_v3 = vpack.c.bf16 %v2340_v1, %v2330_v45  ;;  %v2432_v1 = vld [vmem:[#allocation6 + $0x8d0] sm:$0xff]  ;;  %v2471_v16 = vld [vmem:[#allocation6 + $0xa08] sm:$0xff] }
 0x276   : > { %11537 = vmatpush1.bf16.msra.mxu1 %v11536_v42  ;;  %v2380_v42 = vld [vmem:[#allocation6 + $0x730] sm:$0xff]  ;;  %v11498_v19 = vpack.c.bf16 %v2481_v17, %v2471_v16 }
 0x277   : > { %11453 = vmatpush1.bf16.msra.mxu0 %v11452_v11  ;;  %11539 = vmatprep.subr.bf16.mxu1 %v11538_v29  ;;  %v2363_v11 = vld [vmem:[#allocation6 + $0x6a8] sm:$0xff]  ;;  %v2382_v29 = vld [vmem:[#allocation6 + $0x740] sm:$0xff]  ;;  %v2500_v16 = vld [vmem:[#allocation6 + $0xaf0] sm:$0xff] }
 0x278   : > { %11455 = vmatprep.subr.bf16.mxu0 %v11454_v14  ;;  %v11554_v14 = vpack.c.bf16 %v2363_v11, %v2353_v9  ;;  %v11560_v30 = vpack.c.bf16 %v2382_v29, %v2372_v28  ;;  %v2460_v11 = vld [vmem:[#allocation6 + $0x9b0] sm:$0xff] }
 0x27a   : > { %11541 = vmatpush1.bf16.msra.mxu1 %v11540_v33  ;;  %v2393_v33 = vld [vmem:[#allocation6 + $0x798] sm:$0xff] }
 0x27b   : > { %11457 = vmatpush1.bf16.msra.mxu0 %v11456_v25  ;;  %11543 = vmatprep.subr.bf16.mxu1 %v11542_v41  ;;  %v2370_v25 = vld [vmem:[#allocation6 + $0x6e0] sm:$0xff]  ;;  %v11562_v38 = vpack.c.bf16 %v2403_v35, %v2393_v33 }
 0x27c   : > { %11459 = vmatprep.subr.bf16.mxu0 %v11458_v26  ;;  %v11558_v26 = vpack.c.bf16 %v2383_v24, %v2373_v22  ;;  %v11480_v27 = vpack.c.bf16 %v2380_v42, %v2370_v25  ;;  %v2402_v41 = vld [vmem:[#allocation6 + $0x7e0] sm:$0xff] }
 0x27e   : > { %11545 = vmatpush1.bf16.msra.mxu1 %v11544_v47  ;;  %v2413_v47 = vld [vmem:[#allocation6 + $0x838] sm:$0xff] }
 0x27f   : > { %11461 = vmatpush1.bf16.msra.mxu0 %v11460_v32  ;;  %11547 = vmatprep.subr.bf16.mxu1 %v11546_v55  ;;  %v2401_v32 = vld [vmem:[#allocation6 + $0x7d8] sm:$0xff]  ;;  %v11566_v52 = vpack.c.bf16 %v2423_v49, %v2413_v47  ;;  %v2422_v55 = vld [vmem:[#allocation6 + $0x880] sm:$0xff]  ;;  %v2127_v47 = vpop.permute.xlu0 %2126 }
 0x280   : > { %11463 = vmatprep.subr.bf16.mxu0 %v11462_v37  ;;  %v11482_v34 = vpack.c.bf16 %v2401_v32, %v2391_v31  ;;  %v2400_v37 = vld [vmem:[#allocation6 + $0x7d0] sm:$0xff] }
 0x281   : > { %v11484_v39 = vpack.c.bf16 %v2400_v37, %v2390_v36 }
 0x282   : > { %11549 = vmatpush1.bf16.msra.mxu1 %v11548_v59  ;;  %v2433_v59 = vld [vmem:[#allocation6 + $0x8d8] sm:$0xff] }
 0x283   : > { %11465 = vmatpush1.bf16.msra.mxu0 %v11464_v43  ;;  %11551 = vmatprep.subr.bf16.mxu1 %v11550_v2  ;;  %v11564_v43 = vpack.c.bf16 %v2402_v41, %v2392_v40  ;;  %v11570_v0 = vpack.c.bf16 %v2443_v61, %v2433_v59  ;;  %v2442_v2 = vld [vmem:[#allocation6 + $0x920] sm:$0xff] }
 0x284   : > { %11467 = vmatprep.subr.bf16.mxu0 %v11466_v51  ;;  %v2420_v51 = vld [vmem:[#allocation6 + $0x870] sm:$0xff]  ;;  %v11572_v4 = vpack.c.bf16 %v2442_v2, %v2432_v1 }
 0x285   : > { %v11488_v53 = vpack.c.bf16 %v2420_v51, %v2410_v50  ;;  %v2480_v2 = vld [vmem:[#allocation6 + $0xa50] sm:$0xff] }
 0x286   : > { %11553 = vmatpush1.bf16.msra.mxu1 %v11552_v6  ;;  %v2453_v6 = vld [vmem:[#allocation6 + $0x978] sm:$0xff] }
 0x287   : > { %11469 = vmatpush1.bf16.msra.mxu0 %v11468_v56  ;;  %11555 = vmatprep.subr.bf16.mxu1 %v11554_v14  ;;  %v11568_v56 = vpack.c.bf16 %v2422_v55, %v2412_v54  ;;  %v11574_v9 = vpack.c.bf16 %v2463_v7, %v2453_v6  ;;  %v2462_v14 = vld [vmem:[#allocation6 + $0x9c0] sm:$0xff]  ;;  %v2491_v7 = vld [vmem:[#allocation6 + $0xaa8] sm:$0xff] }
 0x288   : > { %11471 = vmatprep.subr.bf16.mxu0 %v11470_v63  ;;  %v2440_v63 = vld [vmem:[#allocation6 + $0x910] sm:$0xff] }
 0x289   : > { %v11492_v45 = vpack.c.bf16 %v2440_v63, %v2430_v62 }
 0x28a   : > { %11557 = vmatpush1.bf16.msra.mxu1 %v11556_v18  ;;  %v2157_v18 = vld [vmem:[#allocation6 + $0x38] sm:$0xff] }
 0x28b   : > { %11473 = vmatpush1.bf16.msra.mxu0 %v11472_v3  ;;  %11559 = vmatprep.subr.bf16.mxu1 %v11558_v26  ;;  %v2451_v3 = vld [vmem:[#allocation6 + $0x968] sm:$0xff]  ;;  %v11674_v22 = vpack.c.bf16 %v2167_v21, %v2157_v18  ;;  %v2186_v21 = vld [vmem:[#allocation6 + $0x120] sm:$0xff] }
 0x28c   : > { %11475 = vmatprep.subr.bf16.mxu0 %v11474_v10  ;;  %v11494_v8 = vpack.c.bf16 %v2461_v5, %v2451_v3  ;;  %v2450_v10 = vld [vmem:[#allocation6 + $0x960] sm:$0xff]  ;;  %v2156_v3 = vld [vmem:[#allocation6 + $0x30] sm:$0xff] }
 0x28d   : > { %v11496_v13 = vpack.c.bf16 %v2460_v11, %v2450_v10  ;;  %v2177_v11 = vld [vmem:[#allocation6 + $0xd8] sm:$0xff] }
 0x28e   : > { %11561 = vmatpush1.bf16.msra.mxu1 %v11560_v30 }
 0x28f   : > { %11477 = vmatpush1.bf16.msra.mxu0 %v11476_v15  ;;  %11563 = vmatprep.subr.bf16.mxu1 %v11562_v38  ;;  %v11576_v15 = vpack.c.bf16 %v2462_v14, %v2452_v12  ;;  %v2187_v12 = vld [vmem:[#allocation6 + $0x128] sm:$0xff] }
 0x290   : > { %11479 = vmatprep.subr.bf16.mxu0 %v11478_v23 }
 0x292   : > { %11565 = vmatpush1.bf16.msra.mxu1 %v11564_v43 }
 0x293   : > { %11481 = vmatpush1.bf16.msra.mxu0 %v11480_v27  ;;  %11567 = vmatprep.subr.bf16.mxu1 %v11566_v52 }
 0x294   : > { %11483 = vmatprep.subr.bf16.mxu0 %v11482_v34 }
 0x296   : > { %11569 = vmatpush1.bf16.msra.mxu1 %v11568_v56 }
 0x297   : > { %11485 = vmatpush1.bf16.msra.mxu0 %v11484_v39  ;;  %11571 = vmatprep.subr.bf16.mxu1 %v11570_v0 }
 0x298   : > { %11487 = vmatprep.subr.bf16.mxu0 %v11486_v48 }
 0x29a   : > { %11573 = vmatpush1.bf16.msra.mxu1 %v11572_v4  ;;  %v2166_v4 = vld [vmem:[#allocation6 + $0x80] sm:$0xff] }
 0x29b   : > { %11489 = vmatpush1.bf16.msra.mxu0 %v11488_v53  ;;  %11575 = vmatprep.subr.bf16.mxu1 %v11574_v9  ;;  %v11676_v14 = vpack.c.bf16 %v2166_v4, %v2156_v3  ;;  %v2503_v3 = vld [vmem:[#allocation6 + $0xb08] sm:$0xff]  ;;  %v2550_v4 = vld [vmem:[#allocation6 + $0xc80] sm:$0xf] }
 0x29c   : > { %11491 = vmatprep.subr.bf16.mxu0 %v11490_v60 }
 0x29e   : > { %11577 = vmatpush1.bf16.msra.mxu1 %v11576_v15  ;;  %v2490_v15 = vld [vmem:[#allocation6 + $0xaa0] sm:$0xff] }
 0x29f   : > { %11493 = vmatpush1.bf16.msra.mxu0 %v11492_v45  ;;  %11675 = vmatprep.subr.bf16.mxu1 %v11674_v22  ;;  %v2470_v45 = vld [vmem:[#allocation6 + $0xa00] sm:$0xff]  ;;  %v2511_v22 = vld [vmem:[#allocation6 + $0xb48] sm:$0xff] }
 0x2a0   : > { %11495 = vmatprep.subr.bf16.mxu0 %v11494_v8  ;;  %v2501_v8 = vld [vmem:[#allocation6 + $0xaf8] sm:$0xff] }
 0x2a1   : > { %v11502_v18 = vpack.c.bf16 %v2501_v8, %v2491_v7  ;;  %v2266_v7 = vld [vmem:[#allocation6 + $0x3a0] sm:$0xff] }
 0x2a3   : > { %11497 = vmatpush1.bf16.msra.mxu0 %v11496_v13  ;;  %v11500_v13 = vpack.c.bf16 %v2480_v2, %v2470_v45  ;;  %v2493_v2 = vld [vmem:[#allocation6 + $0xab8] sm:$0xff] }
 0x2a4   : > { %11499 = vmatprep.subr.bf16.mxu0 %v11498_v19  ;;  %v2176_v19 = vld [vmem:[#allocation6 + $0xd0] sm:$0xff] }
 0x2f8   : > { %v821_v23 = vpop.f32.mrb[4].mxu1 }
 0x2f9   : > { %v11297_v24 = vpop.f32.mrb[5].mxu1 }
 0x2fa   : > { %v11678_v24 = vpack.c.bf16 %v2187_v12, %v2177_v11  ;;  %v2287_v11 = vld [vmem:[#allocation6 + $0x448] sm:$0xff]  ;;  %v11582_v12 = vpack.c.bf16 %v2503_v3, %v2493_v2 }
 0x300   : > { %v971_v25 = vpop.f32.mrb[8].mxu1 }
 0x301   : > { %v972_v42 = vadd.f32 %v971_v25, %v821_v23  ;;  %v11302_v26 = vpop.f32.mrb[9].mxu1  ;;  %v2521_v25 = vld [vmem:[#allocation6 + $0xb98] sm:$0xff] }
 0x302   : > { %v2207_v26 = vld [vmem:[#allocation6 + $0x1c8] sm:$0xff] }
 0x308   : > { %v1132_v27 = vpop.f32.mrb[10].mxu1 }
 0x309   : > { %v1138_v28 = vadd.f32 %v1132_v27, %v972_v42  ;;  %v11307_v29 = vpop.f32.mrb[11].mxu1  ;;  %v2197_v42 = vld [vmem:[#allocation6 + $0x178] sm:$0xff]  ;;  %v11504_v27 = vpack.c.bf16 %v2500_v16, %v2490_v15 }
 0x30a   : > { %v2510_v29 = vld [vmem:[#allocation6 + $0xb40] sm:$0xff] }
 0x310   : > { %v1296_v30 = vpop.f32.mrb[12].mxu1 }
 0x311   : > { %v1302_v31 = vadd.f32 %v1296_v30, %v1138_v28  ;;  %v11312_v32 = vpop.f32.mrb[13].mxu1  ;;  %v11680_v28 = vpack.c.bf16 %v2186_v21, %v2176_v19  ;;  %v2520_v30 = vld [vmem:[#allocation6 + $0xb90] sm:$0xff]  ;;  %v2523_v19 = vld [vmem:[#allocation6 + $0xba8] sm:$0xff] }
 0x312   : > { %v11682_v32 = vpack.c.bf16 %v2207_v26, %v2197_v42  ;;  %v2297_v42 = vld [vmem:[#allocation6 + $0x498] sm:$0xff]  ;;  %v2307_v26 = vld [vmem:[#allocation6 + $0x4e8] sm:$0xff] }
 0x325   : > { %v750_v33 = vpop.f32.mrb[0].mxu0 }
 0x326   : > { %v752_v34 = vpop.f32.mrb[1].mxu0 }
 0x329   : > { %v1460_v35 = vpop.f32.mrb[2].mxu0 }
 0x32a   : > { %v1466_v36 = vadd.f32 %v1460_v35, %v1302_v31  ;;  %v11317_v37 = vpop.f32.mrb[3].mxu0  ;;  %v11506_v31 = vpack.c.bf16 %v2521_v25, %v2511_v22  ;;  %v2531_v35 = vld [vmem:[#allocation6 + $0xbe8] sm:$0xff]  ;;  %v2276_v22 = vld [vmem:[#allocation6 + $0x3f0] sm:$0xff] }
 0x32b   : > { %v2217_v37 = vld [vmem:[#allocation6 + $0x218] sm:$0xff] }
 0x32d   : > { %v1624_v38 = vpop.f32.mrb[4].mxu0 }
 0x32e   : > { %v1630_v39 = vadd.f32 %v1624_v38, %v1466_v36  ;;  %v11322_v40 = vpop.f32.mrb[5].mxu0  ;;  %v2541_v36 = vld [vmem:[#allocation6 + $0xc38] sm:$0xff]  ;;  %v2227_v38 = vld [vmem:[#allocation6 + $0x268] sm:$0xff] }
 0x331   : > { %v1788_v41 = vpop.f32.mrb[6].mxu0 }
 0x332   : > { %v1794_v43 = vadd.f32 %v1788_v41, %v1630_v39  ;;  %v11327_v44 = vpop.f32.mrb[7].mxu0  ;;  %v11508_v39 = vpack.c.bf16 %v2520_v30, %v2510_v29  ;;  %v2530_v41 = vld [vmem:[#allocation6 + $0xbe0] sm:$0xff]  ;;  %v2533_v30 = vld [vmem:[#allocation6 + $0xbf8] sm:$0xff] }
 0x333   : > { %v11686_v44 = vpack.c.bf16 %v2227_v38, %v2217_v37  ;;  %v2327_v37 = vld [vmem:[#allocation6 + $0x588] sm:$0xff] }
 0x334   : > { %v2045_v46 = vpop.f32.mrb[6].mxu1 }
 0x335   : > { %v11834_v48 = vadd.f32 %v2045_v46, %v750_v33  ;;  %v1952_v49 = vpop.f32.mrb[8].mxu0  ;;  %v2047_v50 = vpop.f32.mrb[7].mxu1  ;;  %v2196_v33 = vld [vmem:[#allocation6 + $0x170] sm:$0xff] }
 0x336   : > { %v1958_v51 = vadd.f32 %v1952_v49, %v1794_v43  ;;  %v11835_v52 = vadd.f32 %v2047_v50, %v752_v34  ;;  %v11332_v53 = vpop.f32.mrb[9].mxu0  ;;  %v2206_v34 = vld [vmem:[#allocation6 + $0x1c0] sm:$0xff]  ;;  %v11510_v43 = vpack.c.bf16 %v2541_v36, %v2531_v35  ;;  %v2540_v46 = vld [vmem:[#allocation6 + $0xc30] sm:$0xff]  ;;  %v2237_v49 = vld [vmem:[#allocation6 + $0x2b8] sm:$0xff] }
 0x337   : > { %v2129_v54 = vadd.f32 %v11834_v48, %v2127_v47  ;;  %v11684_v40 = vpack.c.bf16 %v2206_v34, %v2196_v33  ;;  %v2226_v48 = vld [vmem:[#allocation6 + $0x260] sm:$0xff]  ;;  %v2247_v50 = vld [vmem:[#allocation6 + $0x308] sm:$0xff]  ;;  %v2296_v33 = vld [vmem:[#allocation6 + $0x490] sm:$0xff] }
 0x338   : > { %v2130_v55 = vadd.f32 %v11835_v52, %v2127_v47  ;;  %v2306_v34 = vld [vmem:[#allocation6 + $0x4e0] sm:$0xff]  ;;  %v2317_v36 = vld [vmem:[#allocation6 + $0x538] sm:$0xff] }
 0x339   : > { %v2135_v56 = vmin.f32 %v2129_v54, 0.0  ;;  %v2116_v57 = vpop.f32.mrb[10].mxu0  ;;  %vm2132_vm12 = vcmp.gt.f32.partialorder %v2129_v54, 0.0 }
 0x33a   : > { %v2136_v58 = vmin.f32 %v2130_v55, 0.0  ;;  %v2122_v59 = vadd.f32 %v2116_v57, %v1958_v51  ;;  %v11337_v60 = vpop.f32.mrb[11].mxu0  ;;  %vm2133_vm11 = vcmp.gt.f32.partialorder %v2130_v55, 0.0  ;;  %v11512_v51 = vpack.c.bf16 %v2540_v46, %v2530_v41  ;;  %v2246_v57 = vld [vmem:[#allocation6 + $0x300] sm:$0xff] }
 0x33b   : > { %v2138_v61 = vmul.f32 1.442695, %v2135_v56  ;;  %v2236_v56 = vld [vmem:[#allocation6 + $0x2b0] sm:$0xff]  ;;  %v11704_v41 = vpack.c.bf16 %v2306_v34, %v2296_v33  ;;  %v2326_v46 = vld [vmem:[#allocation6 + $0x580] sm:$0xff] }
 0x33c   : > { %v2140_v62 = vmul.f32 1.442695, %v2136_v58  ;;  %v12677_v63 = vadd.f32 %v2127_v47, %v2122_v59  ;;  %v2216_v47 = vld [vmem:[#allocation6 + $0x210] sm:$0xff]  ;;  %v2473_v58 = vld [vmem:[#allocation6 + $0xa18] sm:$0xff]  ;;  %v2483_v59 = vld [vmem:[#allocation6 + $0xa68] sm:$0xff]  ;;  %v11692_v45 = vpack.c.bf16 %v2246_v57, %v2236_v56 }
 0x33d   : > { %12097 = vpow2.f32 %v2138_v61  ;;  %v11688_v52 = vpack.c.bf16 %v2226_v48, %v2216_v47  ;;  %v2472_v60 = vld [vmem:[#allocation6 + $0xa10] sm:$0xff]  ;;  %v2482_v61 = vld [vmem:[#allocation6 + $0xa60] sm:$0xff]  ;;  %v2337_v48 = vld [vmem:[#allocation6 + $0x5d8] sm:$0xff] }
 0x33e   : > { %12099 = vpow2.f32 %v2140_v62  ;;  %v2137_v0 = vmin.f32 %v12677_v63, 0.0  ;;  %v2257_v62 = vld [vmem:[#allocation6 + $0x358] sm:$0xff]  ;;  %v11580_v8 = vpack.c.bf16 %v2482_v61, %v2472_v60  ;;  %vm2134_vm14 = vcmp.gt.f32.partialorder %v12677_v63, 0.0  ;;  %v2164_v56 = vld [vmem:[#allocation6 + $0x70] sm:$0xff]  ;;  %v2406_v34 = vld [vmem:[#allocation6 + $0x800] sm:$0xff] }
 0x33f   : > { %v2336_v57 = vld [vmem:[#allocation6 + $0x5d0] sm:$0xff]  ;;  %v2185_v60 = vld [vmem:[#allocation6 + $0x118] sm:$0xff] }
 0x340   : > { %v2142_v9 = vmul.f32 1.442695, %v2137_v0  ;;  %v2267_v0 = vld [vmem:[#allocation6 + $0x3a8] sm:$0xff]  ;;  %v2552_v61 = vld [vmem:[#allocation6 + $0xc90] sm:$0xf] }
 0x342   : > { %12101 = vpow2.f32 %v2142_v9  ;;  %v11694_v9 = vpack.c.bf16 %v2267_v0, %v2257_v62  ;;  %v2357_v0 = vld [vmem:[#allocation6 + $0x678] sm:$0xff] }
 0x347   : > { %v12098_v1 = vpop.eup %12097 }
 0x348   : > { %v12100_v5 = vpop.eup %12099  ;;  %v11111_v6 = vadd.f32 -1.0, %v12098_v1 }
 0x349   : > { %v11112_v10 = vadd.f32 -1.0, %v12100_v5  ;;  %v11578_v5 = vpack.c.bf16 %v2483_v59, %v2473_v58  ;;  %v2346_v58 = vld [vmem:[#allocation6 + $0x620] sm:$0xff]  ;;  %v2175_v59 = vld [vmem:[#allocation6 + $0xc8] sm:$0xff] }
 0x34a   : > { %v12684_v23 = vsel %vm2132_vm12, %v2129_v54, %v11111_v6  ;;  %v2551_v54 = vld [vmem:[#allocation6 + $0xc88] sm:$0xf]  ;;  %v2256_v6 = vld [vmem:[#allocation6 + $0x350] sm:$0xff]  ;;  %v11712_v2 = vpack.c.bf16 %v2346_v58, %v2336_v57  ;;  %v11598_v3 = vpack.c.bf16 %v2185_v60, %v2175_v59  ;;  %v2446_v60 = vld [vmem:[#allocation6 + $0x940] sm:$0xff] }
 0x34b   : > { %v12680_v17 = vsel %vm2133_vm11, %v2130_v55, %v11112_v10  ;;  %v11690_v55 = vpack.c.bf16 %v2247_v50, %v2237_v49  ;;  %v2277_v10 = vld [vmem:[#allocation6 + $0x3f8] sm:$0xff]  ;;  %v11696_v16 = vpack.c.bf16 %v2266_v7, %v2256_v6  ;;  %v2347_v49 = vld [vmem:[#allocation6 + $0x628] sm:$0xff]  ;;  %v2356_v6 = vld [vmem:[#allocation6 + $0x670] sm:$0xff] }
 0x34c   : > { %2658 = vmatprep.mubr.f32.mxu0 %v12680_v17  ;;  %2800 = vmatprep.mubr.f32.mxu1 %v12680_v17  ;;  %v12102_v53 = vpop.eup %12101  ;;  %v11698_v21 = vpack.c.bf16 %v2287_v11, %v2277_v10  ;;  %v2205_v10 = vld [vmem:[#allocation6 + $0x1b8] sm:$0xff]  ;;  %v2264_v57 = vld [vmem:[#allocation6 + $0x390] sm:$0xff] }
 0x34d   : > { %2659 = vmatmul.mubr.f32.vlgmr.msra.gmra.mrb[12].mxu0 %v12684_v23  ;;  %2801 = vmatmul.mubr.f32.vlgmr.msra.gmra.mrb[14].mxu1 %v12684_v23  ;;  %v11113_v1 = vadd.f32 -1.0, %v12102_v53  ;;  %v2165_v53 = vld [vmem:[#allocation6 + $0x78] sm:$0xff]  ;;  %v2436_v58 = vld [vmem:[#allocation6 + $0x8f0] sm:$0xff] }
 0x34e   : > { %11501 = vmatpush1.bf16.msra.mxu0 %v11500_v13  ;;  %11677 = vmatpush1.bf16.msra.mxu1 %v11676_v14  ;;  %v2492_v13 = vld [vmem:[#allocation6 + $0xab0] sm:$0xff]  ;;  %v2502_v14 = vld [vmem:[#allocation6 + $0xb00] sm:$0xff]  ;;  %v2377_v11 = vld [vmem:[#allocation6 + $0x718] sm:$0xff] }
 0x34f   : > { %3084 = vmatprep.mubr.f32.mxu1 %v12680_v17  ;;  %11503 = vmatprep.subr.bf16.mxu0 %v11502_v18  ;;  %v12694_v15 = vsel %vm2134_vm14, %v12677_v63, %v11113_v1  ;;  %v2513_v18 = vld [vmem:[#allocation6 + $0xb58] sm:$0xff]  ;;  %v11584_v25 = vpack.c.bf16 %v2502_v14, %v2492_v13  ;;  %v2522_v63 = vld [vmem:[#allocation6 + $0xba0] sm:$0xff]  ;;  %vm7083_vm14 = vcmask 605496  }
 0x350   : > { %11679 = vmatprep.subr.bf16.mxu1 %v11678_v24  ;;  %2729 = vmatprep.mubr.f32.mxu0 %v12305_v20  ;;  %v2286_v24 = vld [vmem:[#allocation6 + $0x440] sm:$0xff]  ;;  %7084 = vst.msk [vmem:[#allocation2 + $0x48] sm:$0xff] %vm7083_vm14, %v12305_v20  ;;  %vm7134_vm14 = vcmask 1047832  }
 0x351   : > { %v11700_v29 = vpack.c.bf16 %v2286_v24, %v2276_v22  ;;  %v2386_v24 = vld [vmem:[#allocation6 + $0x760] sm:$0xff] }
 0x352   : > { %11505 = vmatpush1.bf16.msra.mxu0 %v11504_v27  ;;  %11681 = vmatpush1.bf16.msra.mxu1 %v11680_v28  ;;  %v11586_v27 = vpack.c.bf16 %v2523_v19, %v2513_v18  ;;  %v2512_v28 = vld [vmem:[#allocation6 + $0xb50] sm:$0xff]  ;;  %v2194_v18 = vld [vmem:[#allocation6 + $0x160] sm:$0xff] }
 0x353   : > { %11507 = vmatprep.subr.bf16.mxu0 %v11506_v31  ;;  %11683 = vmatprep.subr.bf16.mxu1 %v11682_v32  ;;  %v2543_v31 = vld [vmem:[#allocation6 + $0xc48] sm:$0xff]  ;;  %v11702_v32 = vpack.c.bf16 %v2307_v26, %v2297_v42  ;;  %v11588_v35 = vpack.c.bf16 %v2522_v63, %v2512_v28  ;;  %v2204_v19 = vld [vmem:[#allocation6 + $0x1b0] sm:$0xff]  ;;  %v2225_v42 = vld [vmem:[#allocation6 + $0x258] sm:$0xff] }
 0x354   : > { %v11590_v38 = vpack.c.bf16 %v2543_v31, %v2533_v30  ;;  %v2397_v26 = vld [vmem:[#allocation6 + $0x7b8] sm:$0xff]  ;;  %v11604_v28 = vpack.c.bf16 %v2204_v19, %v2194_v18  ;;  %v2214_v30 = vld [vmem:[#allocation6 + $0x200] sm:$0xff]  ;;  %v2224_v31 = vld [vmem:[#allocation6 + $0x250] sm:$0xff] }
 0x355   : > { %v2294_v18 = vld [vmem:[#allocation6 + $0x480] sm:$0xff]  ;;  %v2304_v19 = vld [vmem:[#allocation6 + $0x4d0] sm:$0xff] }
 0x356   : > { %11509 = vmatpush1.bf16.msra.mxu0 %v11508_v39  ;;  %11685 = vmatpush1.bf16.msra.mxu1 %v11684_v40  ;;  %v2532_v39 = vld [vmem:[#allocation6 + $0xbf0] sm:$0xff]  ;;  %v2542_v40 = vld [vmem:[#allocation6 + $0xc40] sm:$0xff] }
 0x357   : > { %11511 = vmatprep.subr.bf16.mxu0 %v11510_v43  ;;  %11687 = vmatprep.subr.bf16.mxu1 %v11686_v44  ;;  %v11706_v43 = vpack.c.bf16 %v2327_v37, %v2317_v36  ;;  %v2316_v44 = vld [vmem:[#allocation6 + $0x530] sm:$0xff]  ;;  %v11592_v47 = vpack.c.bf16 %v2542_v40, %v2532_v39  ;;  %v2245_v36 = vld [vmem:[#allocation6 + $0x2f8] sm:$0xff]  ;;  %v11608_v39 = vpack.c.bf16 %v2224_v31, %v2214_v30  ;;  %v2314_v30 = vld [vmem:[#allocation6 + $0x520] sm:$0xff] }
 0x358   : > { %v11708_v50 = vpack.c.bf16 %v2326_v46, %v2316_v44  ;;  %v2417_v37 = vld [vmem:[#allocation6 + $0x858] sm:$0xff]  ;;  %v2244_v44 = vld [vmem:[#allocation6 + $0x2f0] sm:$0xff] }
 0x359   : > { %v2416_v46 = vld [vmem:[#allocation6 + $0x850] sm:$0xff] }
 0x35a   : > { %11513 = vmatpush1.bf16.msra.mxu0 %v11512_v51  ;;  %11689 = vmatpush1.bf16.msra.mxu1 %v11688_v52  ;;  %v2553_v51 = vld [vmem:[#allocation6 + $0xc98] sm:$0xf]  ;;  %v2155_v52 = vld [vmem:[#allocation6 + $0x28] sm:$0xff]  ;;  %v2324_v31 = vld [vmem:[#allocation6 + $0x570] sm:$0xff] }
 0x35b   : > { %11114 = vmatprep.subr.msk.mxu0 %vm677_vm1, %v2551_v54  ;;  %11691 = vmatprep.subr.bf16.mxu1 %v11690_v55  ;;  %v11710_v54 = vpack.c.bf16 %v2347_v49, %v2337_v48  ;;  %v2154_v55 = vld [vmem:[#allocation6 + $0x20] sm:$0xff]  ;;  %v11594_v62 = vpack.c.bf16 %v2165_v53, %v2155_v52  ;;  %v2255_v49 = vld [vmem:[#allocation6 + $0x348] sm:$0xff] }
 0x35c   : > { %v11596_v1 = vpack.c.bf16 %v2164_v56, %v2154_v55  ;;  %v2426_v48 = vld [vmem:[#allocation6 + $0x8a0] sm:$0xff]  ;;  %v2447_v52 = vld [vmem:[#allocation6 + $0x948] sm:$0xff] }
 0x35d   : > { %v2254_v56 = vld [vmem:[#allocation6 + $0x340] sm:$0xff] }
 0x35e   : > { %11115 = vmatpush1.msk.msra.mxu0 %vm677_vm1, %v2550_v4  ;;  %11693 = vmatpush1.bf16.msra.mxu1 %v11692_v45  ;;  %v2367_v45 = vld [vmem:[#allocation6 + $0x6c8] sm:$0xff]  ;;  %v2174_v4 = vld [vmem:[#allocation6 + $0xc0] sm:$0xff] }
 0x35f   : > { %11116 = vmatmul.mubr.msk.f32.vlgmr.msra.gmra.mrb[12].mxu0 %vm2560_vm13, %v12694_v15  ;;  %11579 = vmatprep.subr.bf16.mxu0 %v11578_v5  ;;  %v2184_v5 = vld [vmem:[#allocation6 + $0x110] sm:$0xff]  ;;  %v11714_v7 = vpack.c.bf16 %v2367_v45, %v2357_v0  ;;  %v2457_v0 = vld [vmem:[#allocation6 + $0x998] sm:$0xff]  ;;  %v2467_v45 = vld [vmem:[#allocation6 + $0x9e8] sm:$0xff] }
 0x360   : > { %11581 = vmatpush1.bf16.msra.mxu0 %v11580_v8  ;;  %11695 = vmatprep.subr.bf16.mxu1 %v11694_v9  ;;  %v2366_v8 = vld [vmem:[#allocation6 + $0x6c0] sm:$0xff]  ;;  %v2195_v9 = vld [vmem:[#allocation6 + $0x168] sm:$0xff]  ;;  %v11600_v13 = vpack.c.bf16 %v2184_v5, %v2174_v4  ;;  %v2284_v5 = vld [vmem:[#allocation6 + $0x430] sm:$0xff] }
 0x361   : > { %11583 = vmatprep.subr.bf16.mxu0 %v11582_v12  ;;  %2871 = vmatprep.mubr.f32.mxu0 %v12305_v20  ;;  %v2387_v12 = vld [vmem:[#allocation6 + $0x768] sm:$0xff]  ;;  %v11716_v14 = vpack.c.bf16 %v2366_v8, %v2356_v6  ;;  %v2274_v4 = vld [vmem:[#allocation6 + $0x3e0] sm:$0xff]  ;;  %v2456_v6 = vld [vmem:[#allocation6 + $0x990] sm:$0xff] }
 0x362   : > { %11697 = vmatpush1.bf16.msra.mxu1 %v11696_v16  ;;  %v11602_v16 = vpack.c.bf16 %v2205_v10, %v2195_v9  ;;  %v11718_v22 = vpack.c.bf16 %v2387_v12, %v2377_v11  ;;  %v2466_v8 = vld [vmem:[#allocation6 + $0x9e0] sm:$0xff]  ;;  %v2295_v9 = vld [vmem:[#allocation6 + $0x488] sm:$0xff]  ;;  %v2305_v10 = vld [vmem:[#allocation6 + $0x4d8] sm:$0xff] }
 0x363   : > { %11699 = vmatprep.subr.bf16.mxu1 %v11698_v21  ;;  %v2376_v21 = vld [vmem:[#allocation6 + $0x710] sm:$0xff]  ;;  %v2477_v11 = vld [vmem:[#allocation6 + $0xa38] sm:$0xff]  ;;  %v2487_v12 = vld [vmem:[#allocation6 + $0xa88] sm:$0xff] }
 0x364   : > { %11585 = vmatpush1.bf16.msra.mxu0 %v11584_v25  ;;  %v2215_v25 = vld [vmem:[#allocation6 + $0x208] sm:$0xff]  ;;  %v11720_v63 = vpack.c.bf16 %v2386_v24, %v2376_v21  ;;  %v2476_v21 = vld [vmem:[#allocation6 + $0xa30] sm:$0xff]  ;;  %v2486_v24 = vld [vmem:[#allocation6 + $0xa80] sm:$0xff] }
 0x365   : > { %11587 = vmatprep.subr.bf16.mxu0 %v11586_v27  ;;  %v2407_v27 = vld [vmem:[#allocation6 + $0x808] sm:$0xff] }
 0x366   : > { %11701 = vmatpush1.bf16.msra.mxu1 %v11700_v29  ;;  %v11606_v29 = vpack.c.bf16 %v2225_v42, %v2215_v25  ;;  %v11722_v33 = vpack.c.bf16 %v2407_v27, %v2397_v26  ;;  %v2315_v25 = vld [vmem:[#allocation6 + $0x528] sm:$0xff]  ;;  %v2325_v42 = vld [vmem:[#allocation6 + $0x578] sm:$0xff] }
 0x367   : > { %11703 = vmatprep.subr.bf16.mxu1 %v11702_v32  ;;  %v2396_v32 = vld [vmem:[#allocation6 + $0x7b0] sm:$0xff]  ;;  %v2497_v26 = vld [vmem:[#allocation6 + $0xad8] sm:$0xff]  ;;  %v2507_v27 = vld [vmem:[#allocation6 + $0xb28] sm:$0xff] }
 0x368   : > { %11589 = vmatpush1.bf16.msra.mxu0 %v11588_v35  ;;  %v2235_v35 = vld [vmem:[#allocation6 + $0x2a8] sm:$0xff]  ;;  %v11724_v40 = vpack.c.bf16 %v2406_v34, %v2396_v32  ;;  %v2496_v32 = vld [vmem:[#allocation6 + $0xad0] sm:$0xff]  ;;  %v2506_v34 = vld [vmem:[#allocation6 + $0xb20] sm:$0xff] }
 0x369   : > { %11591 = vmatprep.subr.bf16.mxu0 %v11590_v38  ;;  %v2427_v38 = vld [vmem:[#allocation6 + $0x8a8] sm:$0xff] }
 0x36a   : > { %11705 = vmatpush1.bf16.msra.mxu1 %v11704_v41  ;;  %v11610_v41 = vpack.c.bf16 %v2245_v36, %v2235_v35  ;;  %v2335_v35 = vld [vmem:[#allocation6 + $0x5c8] sm:$0xff]  ;;  %v2345_v36 = vld [vmem:[#allocation6 + $0x618] sm:$0xff] }
 0x36b   : > { %11707 = vmatprep.subr.bf16.mxu1 %v11706_v43  ;;  %v2234_v43 = vld [vmem:[#allocation6 + $0x2a0] sm:$0xff] }
 0x36c   : > { %11593 = vmatpush1.bf16.msra.mxu0 %v11592_v47  ;;  %v11726_v47 = vpack.c.bf16 %v2427_v38, %v2417_v37  ;;  %v11612_v53 = vpack.c.bf16 %v2244_v44, %v2234_v43  ;;  %v2517_v37 = vld [vmem:[#allocation6 + $0xb78] sm:$0xff]  ;;  %v2527_v38 = vld [vmem:[#allocation6 + $0xbc8] sm:$0xff]  ;;  %v2334_v43 = vld [vmem:[#allocation6 + $0x5c0] sm:$0xff] }
 0x36d   : > { %11117 = vmatprep.subr.msk.mxu0 %vm677_vm1, %v2553_v51  ;;  %v2437_v51 = vld [vmem:[#allocation6 + $0x8f8] sm:$0xff]  ;;  %v2344_v44 = vld [vmem:[#allocation6 + $0x610] sm:$0xff] }
 0x36e   : > { %11709 = vmatpush1.bf16.msra.mxu1 %v11708_v50  ;;  %v2265_v50 = vld [vmem:[#allocation6 + $0x398] sm:$0xff]  ;;  %v11730_v59 = vpack.c.bf16 %v2447_v52, %v2437_v51  ;;  %v2547_v52 = vld [vmem:[#allocation6 + $0xc68] sm:$0xff] }
 0x36f   : > { %11711 = vmatprep.subr.bf16.mxu1 %v11710_v54  ;;  %v11728_v54 = vpack.c.bf16 %v2426_v48, %v2416_v46  ;;  %v11614_v55 = vpack.c.bf16 %v2265_v50, %v2255_v49  ;;  %v2516_v46 = vld [vmem:[#allocation6 + $0xb70] sm:$0xff]  ;;  %v2526_v48 = vld [vmem:[#allocation6 + $0xbc0] sm:$0xff]  ;;  %v2355_v49 = vld [vmem:[#allocation6 + $0x668] sm:$0xff] }
 0x370   : > { %11118 = vmatpush1.msk.msra.mxu0 %vm677_vm1, %v2552_v61  ;;  %v2275_v61 = vld [vmem:[#allocation6 + $0x3e8] sm:$0xff]  ;;  %v2365_v50 = vld [vmem:[#allocation6 + $0x6b8] sm:$0xff] }
 0x371   : > { %11119 = vmatmul.mubr.msk.f32.vlgmr.msra.gmra.mrb[14].mxu0 %vm2560_vm13, %v12694_v15  ;;  %11595 = vmatprep.subr.bf16.mxu0 %v11594_v62  ;;  %v2285_v62 = vld [vmem:[#allocation6 + $0x438] sm:$0xff] }
 0x372   : > { %11597 = vmatpush1.bf16.msra.mxu0 %v11596_v1  ;;  %2942 = vmatprep.mubr.f32.mxu0 %v12680_v17  ;;  %v11616_v1 = vpack.c.bf16 %v2264_v57, %v2254_v56  ;;  %v2537_v51 = vld [vmem:[#allocation6 + $0xc18] sm:$0xff]  ;;  %v2354_v56 = vld [vmem:[#allocation6 + $0x660] sm:$0xff]  ;;  %v2364_v57 = vld [vmem:[#allocation6 + $0x6b0] sm:$0xff] }
 0x373   : > { %11713 = vmatpush1.bf16.msra.mxu1 %v11712_v2  ;;  %11599 = vmatprep.subr.bf16.mxu0 %v11598_v3  ;;  %v11732_v2 = vpack.c.bf16 %v2446_v60, %v2436_v58  ;;  %v11618_v3 = vpack.c.bf16 %v2285_v62, %v2275_v61  ;;  %v2536_v58 = vld [vmem:[#allocation6 + $0xc10] sm:$0xff]  ;;  %v2546_v60 = vld [vmem:[#allocation6 + $0xc60] sm:$0xff]  ;;  %v2375_v61 = vld [vmem:[#allocation6 + $0x708] sm:$0xff] }
 0x374   : > { %11715 = vmatprep.subr.bf16.mxu1 %v11714_v7  ;;  %v11734_v7 = vpack.c.bf16 %v2467_v45, %v2457_v0  ;;  %v2385_v62 = vld [vmem:[#allocation6 + $0x758] sm:$0xff]  ;;  %v11636_v0 = vpack.c.bf16 %v2364_v57, %v2354_v56  ;;  %v11752_v45 = vpack.c.bf16 %v2546_v60, %v2536_v58  ;;  %v2534_v56 = vld [vmem:[#allocation6 + $0xc00] sm:$0xff]  ;;  %v2544_v57 = vld [vmem:[#allocation6 + $0xc50] sm:$0xff] }
 0x375   : > { %v11672_v58 = vpack.c.bf16 %v2544_v57, %v2534_v56  ;;  %v2159_v60 = vld [vmem:[#allocation6 + $0x48] sm:$0xff]  ;;  %v2338_v57 = vld [vmem:[#allocation6 + $0x5e0] sm:$0xff] }
 0x376   : > { %11601 = vmatpush1.bf16.msra.mxu0 %v11600_v13  ;;  %v11620_v13 = vpack.c.bf16 %v2284_v5, %v2274_v4  ;;  %v2395_v4 = vld [vmem:[#allocation6 + $0x7a8] sm:$0xff]  ;;  %v2405_v5 = vld [vmem:[#allocation6 + $0x7f8] sm:$0xff] }
 0x377   : > { %11717 = vmatpush1.bf16.msra.mxu1 %v11716_v14  ;;  %11603 = vmatprep.subr.bf16.mxu0 %v11602_v16  ;;  %v11736_v14 = vpack.c.bf16 %v2466_v8, %v2456_v6  ;;  %v11622_v16 = vpack.c.bf16 %v2305_v10, %v2295_v9  ;;  %v2557_v6 = vld [vmem:[#allocation6 + $0xcb8] sm:$0xf]  ;;  %v11642_v8 = vpack.c.bf16 %v2405_v5, %v2395_v4  ;;  %v2394_v9 = vld [vmem:[#allocation6 + $0x7a0] sm:$0xff]  ;;  %v2404_v10 = vld [vmem:[#allocation6 + $0x7f0] sm:$0xff] }
 0x378   : > { %11719 = vmatprep.subr.bf16.mxu1 %v11718_v22  ;;  %v11738_v22 = vpack.c.bf16 %v2487_v12, %v2477_v11  ;;  %v2556_v11 = vld [vmem:[#allocation6 + $0xcb0] sm:$0xf]  ;;  %v2415_v12 = vld [vmem:[#allocation6 + $0x848] sm:$0xff] }
 0x37a   : > { %11605 = vmatpush1.bf16.msra.mxu0 %v11604_v28  ;;  %v11624_v28 = vpack.c.bf16 %v2304_v19, %v2294_v18  ;;  %v2414_v18 = vld [vmem:[#allocation6 + $0x840] sm:$0xff]  ;;  %v2424_v19 = vld [vmem:[#allocation6 + $0x890] sm:$0xff] }
 0x37b   : > { %11721 = vmatpush1.bf16.msra.mxu1 %v11720_v63  ;;  %11607 = vmatprep.subr.bf16.mxu0 %v11606_v29  ;;  %v11740_v63 = vpack.c.bf16 %v2486_v24, %v2476_v21  ;;  %v11626_v29 = vpack.c.bf16 %v2325_v42, %v2315_v25  ;;  %v2435_v21 = vld [vmem:[#allocation6 + $0x8e8] sm:$0xff]  ;;  %v11648_v24 = vpack.c.bf16 %v2424_v19, %v2414_v18  ;;  %v2434_v42 = vld [vmem:[#allocation6 + $0x8e0] sm:$0xff] }
 0x37c   : > { %11723 = vmatprep.subr.bf16.mxu1 %v11722_v33  ;;  %v11742_v33 = vpack.c.bf16 %v2507_v27, %v2497_v26  ;;  %v2444_v26 = vld [vmem:[#allocation6 + $0x930] sm:$0xff]  ;;  %v2455_v27 = vld [vmem:[#allocation6 + $0x988] sm:$0xff] }
 0x37e   : > { %11609 = vmatpush1.bf16.msra.mxu0 %v11608_v39  ;;  %v11628_v39 = vpack.c.bf16 %v2324_v31, %v2314_v30  ;;  %v2454_v30 = vld [vmem:[#allocation6 + $0x980] sm:$0xff]  ;;  %v2464_v31 = vld [vmem:[#allocation6 + $0x9d0] sm:$0xff] }
 0x37f   : > { %11725 = vmatpush1.bf16.msra.mxu1 %v11724_v40  ;;  %11611 = vmatprep.subr.bf16.mxu0 %v11610_v41  ;;  %v11744_v40 = vpack.c.bf16 %v2506_v34, %v2496_v32  ;;  %v11630_v41 = vpack.c.bf16 %v2345_v36, %v2335_v35  ;;  %v2475_v32 = vld [vmem:[#allocation6 + $0xa28] sm:$0xff]  ;;  %v11656_v34 = vpack.c.bf16 %v2464_v31, %v2454_v30  ;;  %v2474_v36 = vld [vmem:[#allocation6 + $0xa20] sm:$0xff] }
 0x380   : > { %11727 = vmatprep.subr.bf16.mxu1 %v11726_v47  ;;  %v11746_v47 = vpack.c.bf16 %v2527_v38, %v2517_v37  ;;  %v2484_v37 = vld [vmem:[#allocation6 + $0xa70] sm:$0xff]  ;;  %v2495_v38 = vld [vmem:[#allocation6 + $0xac8] sm:$0xff]  ;;  %v2258_v31 = vld [vmem:[#allocation6 + $0x360] sm:$0xff] }
 0x382   : > { %11613 = vmatpush1.bf16.msra.mxu0 %v11612_v53  ;;  %v11632_v53 = vpack.c.bf16 %v2344_v44, %v2334_v43  ;;  %v2494_v43 = vld [vmem:[#allocation6 + $0xac0] sm:$0xff]  ;;  %v2504_v44 = vld [vmem:[#allocation6 + $0xb10] sm:$0xff] }
 0x383   : > { %11729 = vmatpush1.bf16.msra.mxu1 %v11728_v54  ;;  %11615 = vmatprep.subr.bf16.mxu0 %v11614_v55  ;;  %v11748_v54 = vpack.c.bf16 %v2526_v48, %v2516_v46  ;;  %v11634_v55 = vpack.c.bf16 %v2365_v50, %v2355_v49  ;;  %v2515_v46 = vld [vmem:[#allocation6 + $0xb68] sm:$0xff]  ;;  %v11664_v48 = vpack.c.bf16 %v2504_v44, %v2494_v43  ;;  %v2514_v50 = vld [vmem:[#allocation6 + $0xb60] sm:$0xff] }
 0x384   : > { %11731 = vmatprep.subr.bf16.mxu1 %v11730_v59  ;;  %v11750_v59 = vpack.c.bf16 %v2547_v52, %v2537_v51  ;;  %v2524_v51 = vld [vmem:[#allocation6 + $0xbb0] sm:$0xff]  ;;  %v2535_v52 = vld [vmem:[#allocation6 + $0xc08] sm:$0xff]  ;;  %v2298_v44 = vld [vmem:[#allocation6 + $0x4a0] sm:$0xff] }
 0x386   : > { %11617 = vmatpush1.bf16.msra.mxu0 %v11616_v1  ;;  %v11638_v1 = vpack.c.bf16 %v2385_v62, %v2375_v61  ;;  %v2169_v61 = vld [vmem:[#allocation6 + $0x98] sm:$0xff]  ;;  %v2158_v62 = vld [vmem:[#allocation6 + $0x40] sm:$0xff] }
 0x387   : > { %11733 = vmatpush1.bf16.msra.mxu1 %v11732_v2  ;;  %11619 = vmatprep.subr.bf16.mxu0 %v11618_v3  ;;  %v2374_v2 = vld [vmem:[#allocation6 + $0x700] sm:$0xff]  ;;  %v2384_v3 = vld [vmem:[#allocation6 + $0x750] sm:$0xff] }
 0x388   : > { %11735 = vmatprep.subr.bf16.mxu1 %v11734_v7  ;;  %v11640_v7 = vpack.c.bf16 %v2384_v3, %v2374_v2  ;;  %v2554_v2 = vld [vmem:[#allocation6 + $0xca0] sm:$0xf]  ;;  %v11754_v3 = vpack.c.bf16 %v2169_v61, %v2159_v60  ;;  %v2369_v60 = vld [vmem:[#allocation6 + $0x6d8] sm:$0xff] }
 0x38a   : > { %11621 = vmatpush1.bf16.msra.mxu0 %v11620_v13  ;;  %v2425_v13 = vld [vmem:[#allocation6 + $0x898] sm:$0xff] }
 0x38b   : > { %11737 = vmatpush1.bf16.msra.mxu1 %v11736_v14  ;;  %11623 = vmatprep.subr.bf16.mxu0 %v11622_v16  ;;  %v11644_v14 = vpack.c.bf16 %v2404_v10, %v2394_v9  ;;  %v11646_v16 = vpack.c.bf16 %v2425_v13, %v2415_v12  ;;  %v2209_v9 = vld [vmem:[#allocation6 + $0x1d8] sm:$0xff]  ;;  %v2198_v12 = vld [vmem:[#allocation6 + $0x180] sm:$0xff]  ;;  %v2208_v13 = vld [vmem:[#allocation6 + $0x1d0] sm:$0xff] }
 0x38c   : > { %11739 = vmatprep.subr.bf16.mxu1 %v11738_v22  ;;  %v2445_v22 = vld [vmem:[#allocation6 + $0x938] sm:$0xff]  ;;  %v11764_v18 = vpack.c.bf16 %v2208_v13, %v2198_v12  ;;  %v2408_v12 = vld [vmem:[#allocation6 + $0x810] sm:$0xff]  ;;  %v2419_v13 = vld [vmem:[#allocation6 + $0x868] sm:$0xff] }
 0x38d   : > { %v11650_v25 = vpack.c.bf16 %v2445_v22, %v2435_v21  ;;  %v2218_v21 = vld [vmem:[#allocation6 + $0x220] sm:$0xff]  ;;  %v2228_v22 = vld [vmem:[#allocation6 + $0x270] sm:$0xff] }
 0x38e   : > { %3085 = vmatmul.mubr.f32.vlgmr.msra.gmra.mrb[16].mxu1 %v12684_v23  ;;  %11625 = vmatpush1.bf16.msra.mxu0 %v11624_v28  ;;  %v2465_v28 = vld [vmem:[#allocation6 + $0x9d8] sm:$0xff] }
 0x38f   : > { %11741 = vmatpush1.bf16.msra.mxu1 %v11740_v63  ;;  %11627 = vmatprep.subr.bf16.mxu0 %v11626_v29  ;;  %v11652_v63 = vpack.c.bf16 %v2444_v26, %v2434_v42  ;;  %v11654_v29 = vpack.c.bf16 %v2465_v28, %v2455_v27  ;;  %v11768_v42 = vpack.c.bf16 %v2228_v22, %v2218_v21  ;;  %v2248_v27 = vld [vmem:[#allocation6 + $0x310] sm:$0xff]  ;;  %v2259_v28 = vld [vmem:[#allocation6 + $0x368] sm:$0xff] }
 0x390   : > { %11743 = vmatprep.subr.bf16.mxu1 %v11742_v33  ;;  %3155 = vmatprep.mubr.f32.mxu1 %v12305_v20  ;;  %v2485_v33 = vld [vmem:[#allocation6 + $0xa78] sm:$0xff]  ;;  %v2428_v21 = vld [vmem:[#allocation6 + $0x8b0] sm:$0xff]  ;;  %v2439_v22 = vld [vmem:[#allocation6 + $0x908] sm:$0xff] }
 0x391   : > { %v11658_v35 = vpack.c.bf16 %v2485_v33, %v2475_v32  ;;  %v2268_v32 = vld [vmem:[#allocation6 + $0x3b0] sm:$0xff]  ;;  %v2279_v33 = vld [vmem:[#allocation6 + $0x408] sm:$0xff] }
 0x392   : > { %11629 = vmatpush1.bf16.msra.mxu0 %v11628_v39  ;;  %v2505_v39 = vld [vmem:[#allocation6 + $0xb18] sm:$0xff] }
 0x393   : > { %11745 = vmatpush1.bf16.msra.mxu1 %v11744_v40  ;;  %11631 = vmatprep.subr.bf16.mxu0 %v11630_v41  ;;  %v11660_v40 = vpack.c.bf16 %v2484_v37, %v2474_v36  ;;  %v11662_v41 = vpack.c.bf16 %v2505_v39, %v2495_v38  ;;  %v2278_v37 = vld [vmem:[#allocation6 + $0x400] sm:$0xff]  ;;  %v2288_v38 = vld [vmem:[#allocation6 + $0x450] sm:$0xff]  ;;  %v2299_v39 = vld [vmem:[#allocation6 + $0x4a8] sm:$0xff] }
 0x394   : > { %11747 = vmatprep.subr.bf16.mxu1 %v11746_v47  ;;  %v2525_v47 = vld [vmem:[#allocation6 + $0xbb8] sm:$0xff] }
 0x395   : > { %v11666_v49 = vpack.c.bf16 %v2525_v47, %v2515_v46  ;;  %v2308_v46 = vld [vmem:[#allocation6 + $0x4f0] sm:$0xff]  ;;  %v2319_v47 = vld [vmem:[#allocation6 + $0x548] sm:$0xff] }
 0x396   : > { %11633 = vmatpush1.bf16.msra.mxu0 %v11632_v53  ;;  %v2545_v53 = vld [vmem:[#allocation6 + $0xc58] sm:$0xff] }
 0x397   : > { %11749 = vmatpush1.bf16.msra.mxu1 %v11748_v54  ;;  %11635 = vmatprep.subr.bf16.mxu0 %v11634_v55  ;;  %v11668_v54 = vpack.c.bf16 %v2524_v51, %v2514_v50  ;;  %v11670_v55 = vpack.c.bf16 %v2545_v53, %v2535_v52  ;;  %v2318_v51 = vld [vmem:[#allocation6 + $0x540] sm:$0xff]  ;;  %v2328_v52 = vld [vmem:[#allocation6 + $0x590] sm:$0xff]  ;;  %v2339_v53 = vld [vmem:[#allocation6 + $0x5e8] sm:$0xff] }
 0x398   : > { %11751 = vmatprep.subr.bf16.mxu1 %v11750_v59  ;;  %v2555_v59 = vld [vmem:[#allocation6 + $0xca8] sm:$0xf] }
 0x39a   : > { %11637 = vmatpush1.bf16.msra.mxu0 %v11636_v0  ;;  %v2168_v0 = vld [vmem:[#allocation6 + $0x90] sm:$0xff] }
 0x39b   : > { %11753 = vmatpush1.bf16.msra.mxu1 %v11752_v45  ;;  %11639 = vmatprep.subr.bf16.mxu0 %v11638_v1  ;;  %v2179_v45 = vld [vmem:[#allocation6 + $0xe8] sm:$0xff]  ;;  %v2189_v1 = vld [vmem:[#allocation6 + $0x138] sm:$0xff]  ;;  %v11756_v4 = vpack.c.bf16 %v2168_v0, %v2158_v62  ;;  %v2358_v0 = vld [vmem:[#allocation6 + $0x680] sm:$0xff] }
 0x39c   : > { %11123 = vmatprep.subr.msk.mxu1 %vm677_vm1, %v2557_v6  ;;  %v11758_v5 = vpack.c.bf16 %v2189_v1, %v2179_v45  ;;  %v2178_v6 = vld [vmem:[#allocation6 + $0xe0] sm:$0xff]  ;;  %v2368_v45 = vld [vmem:[#allocation6 + $0x6d0] sm:$0xff]  ;;  %v2379_v1 = vld [vmem:[#allocation6 + $0x728] sm:$0xff] }
 0x39e   : > { %11641 = vmatpush1.bf16.msra.mxu0 %v11640_v7  ;;  %v2188_v7 = vld [vmem:[#allocation6 + $0x130] sm:$0xff] }
 0x39f   : > { %11124 = vmatpush1.msk.msra.mxu1 %vm677_vm1, %v2556_v11  ;;  %11643 = vmatprep.subr.bf16.mxu0 %v11642_v8  ;;  %v2199_v8 = vld [vmem:[#allocation6 + $0x188] sm:$0xff]  ;;  %v11760_v10 = vpack.c.bf16 %v2188_v7, %v2178_v6  ;;  %v2388_v6 = vld [vmem:[#allocation6 + $0x770] sm:$0xff] }
 0x3a0   : > { %11125 = vmatmul.mubr.msk.f32.vlgmr.msra.gmra.mrb[16].mxu1 %vm2560_vm13, %v12694_v15  ;;  %v11762_v11 = vpack.c.bf16 %v2209_v9, %v2199_v8  ;;  %v2399_v7 = vld [vmem:[#allocation6 + $0x7c8] sm:$0xff]  ;;  %v2409_v8 = vld [vmem:[#allocation6 + $0x818] sm:$0xff] }
 0x3a1   : > { %3424 = vmatprep.mubr.f32.mxu1 %v12305_v20 }
 0x3a2   : > { %11645 = vmatpush1.bf16.msra.mxu0 %v11644_v14  ;;  %v2219_v14 = vld [vmem:[#allocation6 + $0x228] sm:$0xff] }
 0x3a3   : > { %11647 = vmatprep.subr.bf16.mxu0 %v11646_v16  ;;  %v2229_v16 = vld [vmem:[#allocation6 + $0x278] sm:$0xff] }
 0x3a4   : > { %v11766_v19 = vpack.c.bf16 %v2229_v16, %v2219_v14  ;;  %v2429_v14 = vld [vmem:[#allocation6 + $0x8b8] sm:$0xff] }
 0x3a6   : > { %11649 = vmatpush1.bf16.msra.mxu0 %v11648_v24  ;;  %v2239_v24 = vld [vmem:[#allocation6 + $0x2c8] sm:$0xff] }
 0x3a7   : > { %11651 = vmatprep.subr.bf16.mxu0 %v11650_v25  ;;  %v2249_v25 = vld [vmem:[#allocation6 + $0x318] sm:$0xff] }
 0x3a8   : > { %v11770_v26 = vpack.c.bf16 %v2249_v25, %v2239_v24  ;;  %v2449_v24 = vld [vmem:[#allocation6 + $0x958] sm:$0xff] }
 0x3aa   : > { %11653 = vmatpush1.bf16.msra.mxu0 %v11652_v63  ;;  %v2269_v63 = vld [vmem:[#allocation6 + $0x3b8] sm:$0xff] }
 0x3ab   : > { %11655 = vmatprep.subr.bf16.mxu0 %v11654_v29  ;;  %v11774_v30 = vpack.c.bf16 %v2269_v63, %v2259_v28  ;;  %v2469_v28 = vld [vmem:[#allocation6 + $0x9f8] sm:$0xff] }
 0x3ae   : > { %11657 = vmatpush1.bf16.msra.mxu0 %v11656_v34  ;;  %v2289_v34 = vld [vmem:[#allocation6 + $0x458] sm:$0xff] }
 0x3af   : > { %11659 = vmatprep.subr.bf16.mxu0 %v11658_v35  ;;  %v11776_v35 = vpack.c.bf16 %v2268_v32, %v2258_v31  ;;  %v11778_v36 = vpack.c.bf16 %v2289_v34, %v2279_v33  ;;  %v2468_v31 = vld [vmem:[#allocation6 + $0x9f0] sm:$0xff]  ;;  %v2479_v32 = vld [vmem:[#allocation6 + $0xa48] sm:$0xff]  ;;  %v2489_v33 = vld [vmem:[#allocation6 + $0xa98] sm:$0xff] }
 0x3b1   : > { %2943 = vmatmul.mubr.f32.vlgmr.msra.gmra.mrb[16].mxu0 %v12684_v23 }
 0x3b2   : > { %11661 = vmatpush1.bf16.msra.mxu0 %v11660_v40  ;;  %3013 = vmatprep.mubr.f32.mxu0 %v12305_v20  ;;  %v2309_v40 = vld [vmem:[#allocation6 + $0x4f8] sm:$0xff] }
 0x3b3   : > { %11663 = vmatprep.subr.bf16.mxu0 %v11662_v41  ;;  %v11780_v41 = vpack.c.bf16 %v2288_v38, %v2278_v37  ;;  %v11782_v43 = vpack.c.bf16 %v2309_v40, %v2299_v39  ;;  %v2488_v37 = vld [vmem:[#allocation6 + $0xa90] sm:$0xff]  ;;  %v2499_v38 = vld [vmem:[#allocation6 + $0xae8] sm:$0xff]  ;;  %v2509_v39 = vld [vmem:[#allocation6 + $0xb38] sm:$0xff] }
 0x3b6   : > { %11665 = vmatpush1.bf16.msra.mxu0 %v11664_v48  ;;  %v2329_v48 = vld [vmem:[#allocation6 + $0x598] sm:$0xff] }
 0x3b7   : > { %11667 = vmatprep.subr.bf16.mxu0 %v11666_v49  ;;  %v11784_v49 = vpack.c.bf16 %v2308_v46, %v2298_v44  ;;  %v11786_v50 = vpack.c.bf16 %v2329_v48, %v2319_v47  ;;  %v2508_v44 = vld [vmem:[#allocation6 + $0xb30] sm:$0xff]  ;;  %v2519_v46 = vld [vmem:[#allocation6 + $0xb88] sm:$0xff]  ;;  %v2529_v47 = vld [vmem:[#allocation6 + $0xbd8] sm:$0xff] }
 0x3ba   : > { %11669 = vmatpush1.bf16.msra.mxu0 %v11668_v54  ;;  %v2349_v54 = vld [vmem:[#allocation6 + $0x638] sm:$0xff] }
 0x3bb   : > { %11671 = vmatprep.subr.bf16.mxu0 %v11670_v55  ;;  %v11788_v55 = vpack.c.bf16 %v2328_v52, %v2318_v51  ;;  %v11790_v56 = vpack.c.bf16 %v2349_v54, %v2339_v53  ;;  %v2528_v51 = vld [vmem:[#allocation6 + $0xbd0] sm:$0xff]  ;;  %v2539_v52 = vld [vmem:[#allocation6 + $0xc28] sm:$0xff]  ;;  %v2549_v53 = vld [vmem:[#allocation6 + $0xc78] sm:$0xff] }
 0x3be   : > { %11673 = vmatpush1.bf16.msra.mxu0 %v11672_v58  ;;  %v2348_v58 = vld [vmem:[#allocation6 + $0x630] sm:$0xff] }
 0x3bf   : > { %11120 = vmatprep.subr.msk.mxu0 %vm677_vm1, %v2555_v59  ;;  %v2359_v59 = vld [vmem:[#allocation6 + $0x688] sm:$0xff]  ;;  %v11792_v61 = vpack.c.bf16 %v2348_v58, %v2338_v57  ;;  %v2548_v57 = vld [vmem:[#allocation6 + $0xc70] sm:$0xff] }
 0x3c0   : > { %v11794_v62 = vpack.c.bf16 %v2369_v60, %v2359_v59  ;;  %v2558_v59 = vld [vmem:[#allocation6 + $0xcc0] sm:$0xf] }
 0x3c2   : > { %11121 = vmatpush1.msk.msra.mxu0 %vm677_vm1, %v2554_v2  ;;  %v2389_v2 = vld [vmem:[#allocation6 + $0x778] sm:$0xff] }
 0x3c3   : > { %11122 = vmatmul.mubr.msk.f32.vlgmr.msra.gmra.mrb[16].mxu0 %vm2560_vm13, %v12694_v15  ;;  %11755 = vmatprep.subr.bf16.mxu0 %v11754_v3  ;;  %v11796_v3 = vpack.c.bf16 %v2368_v45, %v2358_v0 }
 0x3c4   : > { %11757 = vmatpush1.bf16.msra.mxu0 %v11756_v4  ;;  %3226 = vmatprep.mubr.f32.mxu0 %v12680_v17  ;;  %v2238_v17 = vld [vmem:[#allocation6 + $0x2c0] sm:$0xff]  ;;  %v11798_v4 = vpack.c.bf16 %v2389_v2, %v2379_v1 }
 0x3c5   : > { %11759 = vmatprep.subr.bf16.mxu0 %v11758_v5  ;;  %v11772_v29 = vpack.c.bf16 %v2248_v27, %v2238_v17  ;;  %v2378_v5 = vld [vmem:[#allocation6 + $0x720] sm:$0xff]  ;;  %v2448_v17 = vld [vmem:[#allocation6 + $0x950] sm:$0xff]  ;;  %v2459_v27 = vld [vmem:[#allocation6 + $0x9a8] sm:$0xff] }
 0x3c6   : > { %v11800_v9 = vpack.c.bf16 %v2388_v6, %v2378_v5 }
 0x3c8   : > { %11761 = vmatpush1.bf16.msra.mxu0 %v11760_v10  ;;  %v11802_v10 = vpack.c.bf16 %v2409_v8, %v2399_v7 }
 0x3c9   : > { %11763 = vmatprep.subr.bf16.mxu0 %v11762_v11  ;;  %v2398_v11 = vld [vmem:[#allocation6 + $0x7c0] sm:$0xff] }
 0x3ca   : > { %v11804_v16 = vpack.c.bf16 %v2408_v12, %v2398_v11  ;;  %v12761_v11 = vld [vmem:[%s13575_s5 + $0x8] sm:$0xff] }
 0x3cc   : > { %11765 = vmatpush1.bf16.msra.mxu0 %v11764_v18  ;;  %v11806_v18 = vpack.c.bf16 %v2429_v14, %v2419_v13 }
 0x3cd   : > { %11767 = vmatprep.subr.bf16.mxu0 %v11766_v19  ;;  %v2418_v19 = vld [vmem:[#allocation6 + $0x860] sm:$0xff] }
 0x3ce   : > { %v11808_v25 = vpack.c.bf16 %v2428_v21, %v2418_v19 }
 0x3d0   : > { %11769 = vmatpush1.bf16.msra.mxu0 %v11768_v42  ;;  %v11810_v42 = vpack.c.bf16 %v2449_v24, %v2439_v22 }
 0x3d1   : > { %11771 = vmatprep.subr.bf16.mxu0 %v11770_v26  ;;  %v2438_v26 = vld [vmem:[#allocation6 + $0x900] sm:$0xff] }
 0x3d2   : > { %v11812_v63 = vpack.c.bf16 %v2448_v17, %v2438_v26 }
 0x3d4   : > { %11773 = vmatpush1.bf16.msra.mxu0 %v11772_v29  ;;  %v11814_v29 = vpack.c.bf16 %v2469_v28, %v2459_v27 }
 0x3d5   : > { %11775 = vmatprep.subr.bf16.mxu0 %v11774_v30  ;;  %v2458_v30 = vld [vmem:[#allocation6 + $0x9a0] sm:$0xff] }
 0x3d6   : > { %v11816_v34 = vpack.c.bf16 %v2468_v31, %v2458_v30 }
 0x3d8   : > { %11777 = vmatpush1.bf16.msra.mxu0 %v11776_v35  ;;  %v11818_v35 = vpack.c.bf16 %v2489_v33, %v2479_v32 }
 0x3d9   : > { %11779 = vmatprep.subr.bf16.mxu0 %v11778_v36  ;;  %v2478_v36 = vld [vmem:[#allocation6 + $0xa40] sm:$0xff] }
 0x3da   : > { %v11820_v40 = vpack.c.bf16 %v2488_v37, %v2478_v36 }
 0x3dc   : > { %11781 = vmatpush1.bf16.msra.mxu0 %v11780_v41  ;;  %v11822_v41 = vpack.c.bf16 %v2509_v39, %v2499_v38 }
 0x3dd   : > { %11783 = vmatprep.subr.bf16.mxu0 %v11782_v43  ;;  %v2498_v43 = vld [vmem:[#allocation6 + $0xae0] sm:$0xff] }
 0x3de   : > { %v11824_v48 = vpack.c.bf16 %v2508_v44, %v2498_v43 }
 0x3e0   : > { %11785 = vmatpush1.bf16.msra.mxu0 %v11784_v49  ;;  %v11826_v49 = vpack.c.bf16 %v2529_v47, %v2519_v46  ;;  %v6941_v46 = vld [vmem:[%s13576_s6] sm:$0xff] }
 0x3e1   : > { %11787 = vmatprep.subr.bf16.mxu0 %v11786_v50  ;;  %v2518_v50 = vld [vmem:[#allocation6 + $0xb80] sm:$0xff] }
 0x3e2   : > { %v11828_v54 = vpack.c.bf16 %v2528_v51, %v2518_v50  ;;  %v11140_v51 = vld [vmem:[%s13575_s5 + $0x10] sm:$0xff] }
 0x3e4   : > { %11789 = vmatpush1.bf16.msra.mxu0 %v11788_v55  ;;  %v11830_v55 = vpack.c.bf16 %v2549_v53, %v2539_v52 }
 0x3e5   : > { %11791 = vmatprep.subr.bf16.mxu0 %v11790_v56  ;;  %v2538_v56 = vld [vmem:[#allocation6 + $0xc20] sm:$0xff] }
 0x3e6   : > { %v11832_v58 = vpack.c.bf16 %v2548_v57, %v2538_v56 }
 0x3e8   : > { %11793 = vmatpush1.bf16.msra.mxu0 %v11792_v61 }
 0x3e9   : > { %11795 = vmatprep.subr.bf16.mxu0 %v11794_v62 }
 0x3ec   : > { %11797 = vmatpush1.bf16.msra.mxu0 %v11796_v3 }
 0x3ed   : > { %11799 = vmatprep.subr.bf16.mxu0 %v11798_v4 }
 0x3f0   : > { %11801 = vmatpush1.bf16.msra.mxu0 %v11800_v9 }
 0x3f1   : > { %11803 = vmatprep.subr.bf16.mxu0 %v11802_v10 }
 0x3f4   : > { %11805 = vmatpush1.bf16.msra.mxu0 %v11804_v16 }
 0x3f5   : > { %11807 = vmatprep.subr.bf16.mxu0 %v11806_v18 }
 0x3f8   : > { %11809 = vmatpush1.bf16.msra.mxu0 %v11808_v25 }
 0x3f9   : > { %11811 = vmatprep.subr.bf16.mxu0 %v11810_v42 }
 0x3fc   : > { %11813 = vmatpush1.bf16.msra.mxu0 %v11812_v63 }
 0x3fd   : > { %11815 = vmatprep.subr.bf16.mxu0 %v11814_v29 }
 0x400   : > { %11817 = vmatpush1.bf16.msra.mxu0 %v11816_v34  ;;  %v3304_v34 = vld [vmem:[%s13575_s5] sm:$0xff] }
 0x401   : > { %11819 = vmatprep.subr.bf16.mxu0 %v11818_v35 }
 0x403   : > { %3227 = vmatmul.mubr.f32.vlgmr.msra.gmra.mrb[18].mxu0 %v12684_v23  ;;  %v2559_v23 = vld [vmem:[#allocation6 + $0xcc8] sm:$0xf] }
 0x404   : > { %11821 = vmatpush1.bf16.msra.mxu0 %v11820_v40  ;;  %3297 = vmatprep.mubr.f32.mxu0 %v12305_v20 }
 0x405   : > { %11823 = vmatprep.subr.bf16.mxu0 %v11822_v41 }
 0x408   : > { %11825 = vmatpush1.bf16.msra.mxu0 %v11824_v48 }
 0x409   : > { %11827 = vmatprep.subr.bf16.mxu0 %v11826_v49 }
 0x40c   : > { %11829 = vmatpush1.bf16.msra.mxu0 %v11828_v54 }
 0x40d   : > { %11831 = vmatprep.subr.bf16.mxu0 %v11830_v55 }
 0x410   : > { %11833 = vmatpush1.bf16.msra.mxu0 %v11832_v58 }
 0x411   : > { %11126 = vmatprep.subr.msk.mxu0 %vm677_vm1, %v2559_v23 }
 0x414   : > { %11127 = vmatpush1.msk.msra.mxu0 %vm677_vm1, %v2558_v59  ;;  %vm4914_vm1 = vcmask 760832  }
 0x415   : > { %11128 = vmatmul.mubr.msk.f32.vlgmr.msra.gmra.mrb[18].mxu0 %vm2560_vm13, %v12694_v15 }
 0x416   : > { %7275 = vmatprep.mubr.f32.mxu0 %v12305_v20 }
 0x420   : > { %v2802_v60 = vpop.f32.mrb[14].mxu1 }
 0x421   : > { %v2804_v61 = vpop.f32.mrb[15].mxu1 }
 0x432   : > { %v12725_v62 = vpop.f32.mrb[12].mxu0 }
 0x433   : > { %3317 = vrot.lane.b32.xlu0 %v12725_v62, %s12308_s11  ;;  %v12729_v0 = vpop.f32.mrb[13].mxu0 }
 0x434   : > { %3319 = vrot.lane.b32.xlu1 %v12729_v0, %s12308_s11 }
 0x444   : > { %v2873_v45 = vpop.f32.mrb[14].mxu0 }
 0x445   : > { %v12733_v1 = vadd.f32 %v2873_v45, %v2802_v60  ;;  %v2875_v2 = vpop.f32.mrb[15].mxu0 }
 0x446   : > { %v12735_v3 = vadd.f32 %v2875_v2, %v2804_v61 }
 0x447   : > { %3321 = vrot.lane.b32.xlu1 %v12733_v1, %s12308_s11 }
 0x44b   : > { %3323 = vrot.lane.b32.xlu1 %v12735_v3, %s12308_s11 }
 0x473   : > { %v12741_v15 = vpop.f32.mrb[16].mxu1 }
 0x474   : > { %v12743_v4 = vpop.f32.mrb[17].mxu1 }
 0x496   : > { %v12745_v5 = vpop.f32.mrb[16].mxu0 }
 0x497   : > { %3325 = vrot.lane.b32.xlu0 %v12745_v5, %s12308_s11  ;;  %v12749_v6 = vpop.f32.mrb[17].mxu0 }
 0x498   : > { %3327 = vrot.lane.b32.xlu1 %v12749_v6, %s12308_s11 }
 0x49b   : > { %3329 = vrot.lane.b32.xlu0 %v12741_v15, %s12308_s11 }
 0x49c   : > { %3331 = vrot.lane.b32.xlu1 %v12743_v4, %s12308_s11 }
 0x4a5   : > { %v3318_v8 = vpop.permute.xlu0 %3317 }
 0x4a6   : > { %v3320_v7 = vpop.permute.xlu1 %3319 }
 0x4a7   : > { %v3337_v12 = vsel %vm670_vm8, %v3318_v8, %v3320_v7 }
 0x4b9   : > { %v3322_v9 = vpop.permute.xlu1 %3321 }
 0x4ba   : > { %v3338_v10 = vsel %vm670_vm8, %v3320_v7, %v3322_v9 }
 0x4bb   : > { %3360 = vmatprep.subr.mxu1 %v3338_v10 }
 0x4bc   : > { %3361 = vmatpush1.msra.mxu1 %v3337_v12 }
 0x4bd   : > { %11130 = vmatmul.mubr.msk.f32.vlgmr.msra.gmra.mrb[18].mxu1 %vm3356_vm15, %v12761_v11  ;;  %v3324_v16 = vpop.permute.xlu1 %3323 }
 0x4be   : > { %3495 = vmatprep.mubr.f32.mxu1 %v12305_v20  ;;  %v3339_v21 = vsel %vm670_vm8, %v3322_v9, %v3324_v16 }
 0x4e8   : > { %v12767_v13 = vpop.f32.mrb[18].mxu0 }
 0x4e9   : > { %3333 = vrot.lane.b32.xlu0 %v12767_v13, %s12308_s11  ;;  %v12771_v14 = vpop.f32.mrb[19].mxu0 }
 0x4ea   : > { %3335 = vrot.lane.b32.xlu1 %v12771_v14, %s12308_s11 }
 0x4ed   : > { %4077 = vrot.lane.b32.xlu0 %v12729_v0, %s12307_s17 }
 0x4ee   : > { %4079 = vrot.lane.b32.xlu1 %v12733_v1, %s12307_s17 }
 0x4f1   : > { %4075 = vrot.lane.b32.xlu0 %v12725_v62, %s12307_s17 }
 0x4f2   : > { %4081 = vrot.lane.b32.xlu1 %v12735_v3, %s12307_s17 }
 0x4f5   : > { %4083 = vrot.lane.b32.xlu0 %v12745_v5, %s12307_s17 }
 0x4f6   : > { %4085 = vrot.lane.b32.xlu1 %v12749_v6, %s12307_s17 }
 0x4f9   : > { %4087 = vrot.lane.b32.xlu0 %v12741_v15, %s12307_s17 }
 0x4fa   : > { %4089 = vrot.lane.b32.xlu1 %v12743_v4, %s12307_s17 }
 0x4fd   : > { %4091 = vrot.lane.b32.xlu0 %v12767_v13, %s12307_s17 }
 0x4fe   : > { %4093 = vrot.lane.b32.xlu1 %v12771_v14, %s12307_s17 }
 0x501   : > { %4486 = vrot.lane.b32.xlu0 %v12729_v0, %s12316_s20 }
 0x502   : > { %4488 = vrot.lane.b32.xlu1 %v12733_v1, %s12316_s20 }
 0x505   : > { %4484 = vrot.lane.b32.xlu0 %v12725_v62, %s12316_s20 }
 0x506   : > { %4490 = vrot.lane.b32.xlu1 %v12735_v3, %s12316_s20 }
 0x509   : > { %v3326_v18 = vpop.permute.xlu0 %3325  ;;  %4492 = vrot.lane.b32.xlu0 %v12745_v5, %s12316_s20 }
 0x50a   : > { %4494 = vrot.lane.b32.xlu1 %v12749_v6, %s12316_s20  ;;  %v3340_v19 = vsel %vm670_vm8, %v3324_v16, %v3326_v18  ;;  %v3328_v22 = vpop.permute.xlu1 %3327 }
 0x50b   : > { %3431 = vmatprep.subr.mxu1 %v3340_v19  ;;  %v3341_v42 = vsel %vm670_vm8, %v3326_v18, %v3328_v22 }
 0x50c   : > { %3432 = vmatpush1.msra.mxu1 %v3339_v21 }
 0x50d   : > { %v3330_v24 = vpop.permute.xlu0 %3329  ;;  %4496 = vrot.lane.b32.xlu0 %v12741_v15, %s12316_s20  ;;  %11131 = vmatmul.mubr.msk.f32.vlgmr.msra.gmra.mrb[20].mxu1 %vm3356_vm15, %v12761_v11 }
 0x50e   : > { %4498 = vrot.lane.b32.xlu1 %v12743_v4, %s12316_s20  ;;  %v3342_v25 = vsel %vm670_vm8, %v3328_v22, %v3330_v24  ;;  %3566 = vmatprep.mubr.f32.mxu1 %v12305_v20  ;;  %v3332_v26 = vpop.permute.xlu1 %3331 }
 0x50f   : > { %3502 = vmatprep.subr.mxu1 %v3342_v25  ;;  %v3343_v63 = vsel %vm670_vm8, %v3330_v24, %v3332_v26 }
 0x510   : > { %3503 = vmatpush1.msra.mxu1 %v3341_v42 }
 0x511   : > { %4500 = vrot.lane.b32.xlu0 %v12767_v13, %s12316_s20  ;;  %11132 = vmatmul.mubr.msk.f32.vlgmr.msra.gmra.mrb[22].mxu1 %vm3356_vm15, %v12761_v11 }
 0x512   : > { %4502 = vrot.lane.b32.xlu1 %v12771_v14, %s12316_s20  ;;  %3637 = vmatprep.mubr.f32.mxu1 %v12305_v20 }
 0x515   : > { %4896 = vrot.lane.b32.xlu0 %v12729_v0, %s12317_s8 }
 0x516   : > { %4898 = vrot.lane.b32.xlu1 %v12733_v1, %s12317_s8 }
 0x519   : > { %4894 = vrot.lane.b32.xlu0 %v12725_v62, %s12317_s8 }
 0x51a   : > { %4900 = vrot.lane.b32.xlu1 %v12735_v3, %s12317_s8 }
 0x51d   : > { %4902 = vrot.lane.b32.xlu0 %v12745_v5, %s12317_s8 }
 0x51e   : > { %4904 = vrot.lane.b32.xlu1 %v12749_v6, %s12317_s8 }
 0x521   : > { %4906 = vrot.lane.b32.xlu0 %v12741_v15, %s12317_s8 }
 0x522   : > { %4908 = vrot.lane.b32.xlu1 %v12743_v4, %s12317_s8 }
 0x525   : > { %4910 = vrot.lane.b32.xlu0 %v12767_v13, %s12317_s8 }
 0x526   : > { %4912 = vrot.lane.b32.xlu1 %v12771_v14, %s12317_s8 }
 0x529   : > { %5306 = vrot.lane.b32.xlu0 %v12729_v0, %s12312_s16 }
 0x52a   : > { %5308 = vrot.lane.b32.xlu1 %v12733_v1, %s12312_s16 }
 0x52d   : > { %5304 = vrot.lane.b32.xlu0 %v12725_v62, %s12312_s16 }
 0x52e   : > { %5310 = vrot.lane.b32.xlu1 %v12735_v3, %s12312_s16 }
 0x531   : > { %5312 = vrot.lane.b32.xlu0 %v12745_v5, %s12312_s16 }
 0x532   : > { %5314 = vrot.lane.b32.xlu1 %v12749_v6, %s12312_s16 }
 0x535   : > { %5316 = vrot.lane.b32.xlu0 %v12741_v15, %s12312_s16 }
 0x536   : > { %5318 = vrot.lane.b32.xlu1 %v12743_v4, %s12312_s16 }
 0x539   : > { %5320 = vrot.lane.b32.xlu0 %v12767_v13, %s12312_s16 }
 0x53a   : > { %5322 = vrot.lane.b32.xlu1 %v12771_v14, %s12312_s16 }
 0x53d   : > { %5715 = vrot.lane.b32.xlu0 %v12729_v0, %s12318_s21 }
 0x53e   : > { %5717 = vrot.lane.b32.xlu1 %v12733_v1, %s12318_s21 }
 0x541   : > { %5713 = vrot.lane.b32.xlu0 %v12725_v62, %s12318_s21 }
 0x542   : > { %5719 = vrot.lane.b32.xlu1 %v12735_v3, %s12318_s21 }
 0x545   : > { %5721 = vrot.lane.b32.xlu0 %v12745_v5, %s12318_s21 }
 0x546   : > { %5723 = vrot.lane.b32.xlu1 %v12749_v6, %s12318_s21 }
 0x549   : > { %5725 = vrot.lane.b32.xlu0 %v12741_v15, %s12318_s21 }
 0x54a   : > { %5727 = vrot.lane.b32.xlu1 %v12743_v4, %s12318_s21 }
 0x54d   : > { %5729 = vrot.lane.b32.xlu0 %v12767_v13, %s12318_s21 }
 0x54e   : > { %5731 = vrot.lane.b32.xlu1 %v12771_v14, %s12318_s21 }
 0x551   : > { %6125 = vrot.lane.b32.xlu0 %v12729_v0, %s12319_s29 }
 0x552   : > { %6127 = vrot.lane.b32.xlu1 %v12733_v1, %s12319_s29 }
 0x555   : > { %6123 = vrot.lane.b32.xlu0 %v12725_v62, %s12319_s29 }
 0x556   : > { %6129 = vrot.lane.b32.xlu1 %v12735_v3, %s12319_s29 }
 0x559   : > { %6131 = vrot.lane.b32.xlu0 %v12745_v5, %s12319_s29 }
 0x55a   : > { %6133 = vrot.lane.b32.xlu1 %v12749_v6, %s12319_s29 }
 0x55b   : > { %v3334_v17 = vpop.permute.xlu0 %3333 }
 0x55c   : > { %v3336_v27 = vpop.permute.xlu1 %3335  ;;  %v3344_v28 = vsel %vm670_vm8, %v3332_v26, %v3334_v17 }
 0x55d   : > { %6135 = vrot.lane.b32.xlu0 %v12741_v15, %s12319_s29  ;;  %3573 = vmatprep.subr.mxu1 %v3344_v28  ;;  %v3345_v30 = vsel %vm670_vm8, %v3334_v17, %v3336_v27 }
 0x55e   : > { %6137 = vrot.lane.b32.xlu1 %v12743_v4, %s12319_s29  ;;  %3574 = vmatpush1.msra.mxu1 %v3343_v63 }
 0x55f   : > { %v4078_v29 = vpop.permute.xlu0 %4077  ;;  %11133 = vmatmul.mubr.msk.f32.vlgmr.msra.gmra.mrb[24].mxu1 %vm3356_vm15, %v12761_v11  ;;  %3644 = vmatprep.subr.mxu1 %v3336_v27  ;;  %v11152_v27 = vld [vmem:[%s13575_s5 + $0x20] sm:$0xff] }
 0x560   : > { %3645 = vmatpush1.msra.mxu1 %v3345_v30  ;;  %v4080_v31 = vpop.permute.xlu1 %4079  ;;  %3708 = vmatprep.mubr.f32.mxu1 %v12305_v20 }
 0x561   : > { %6139 = vrot.lane.b32.xlu0 %v12767_v13, %s12319_s29  ;;  %3718 = vmatprep.subr.mxu1 %v12729_v0  ;;  %v4096_v43 = vsel %vm983_vm3, %v4078_v29, %v4080_v31 }
 0x562   : > { %6141 = vrot.lane.b32.xlu1 %v12771_v14, %s12319_s29 }
 0x563   : > { %v4076_v32 = vpop.permute.xlu0 %4075  ;;  %11134 = vmatmul.mubr.msk.f32.vlgmr.msra.gmra.mrb[26].mxu1 %vm3356_vm15, %v12761_v11 }
 0x564   : > { %3719 = vmatpush1.msra.mxu1 %v12725_v62  ;;  %v4082_v33 = vpop.permute.xlu1 %4081  ;;  %3782 = vmatprep.mubr.f32.mxu1 %v12305_v20  ;;  %v4095_v47 = vsel %vm983_vm3, %v4076_v32, %v4078_v29 }
 0x565   : > { %3789 = vmatprep.subr.mxu1 %v12735_v3  ;;  %6535 = vrot.lane.b32.xlu0 %v12729_v0, %s12320_s13  ;;  %v4097_v53 = vsel %vm983_vm3, %v4080_v31, %v4082_v33 }
 0x566   : > { %6537 = vrot.lane.b32.xlu1 %v12733_v1, %s12320_s13 }
 0x567   : > { %v4084_v35 = vpop.permute.xlu0 %4083  ;;  %11135 = vmatmul.mubr.msk.f32.vlgmr.msra.gmra.mrb[18].mxu1 %vm3356_vm15, %v3304_v34 }
 0x568   : > { %3790 = vmatpush1.msra.mxu1 %v12733_v1  ;;  %v4086_v36 = vpop.permute.xlu1 %4085  ;;  %3853 = vmatprep.mubr.f32.mxu1 %v12305_v20  ;;  %v4098_v49 = vsel %vm983_vm3, %v4082_v33, %v4084_v35 }
 0x569   : > { %3860 = vmatprep.subr.mxu1 %v12749_v6  ;;  %6533 = vrot.lane.b32.xlu0 %v12725_v62, %s12320_s13  ;;  %v4099_v57 = vsel %vm983_vm3, %v4084_v35, %v4086_v36 }
 0x56a   : > { %6539 = vrot.lane.b32.xlu1 %v12735_v3, %s12320_s13 }
 0x56b   : > { %v4088_v37 = vpop.permute.xlu0 %4087  ;;  %11136 = vmatmul.mubr.msk.f32.vlgmr.msra.gmra.mrb[20].mxu1 %vm3356_vm15, %v3304_v34 }
 0x56c   : > { %3861 = vmatpush1.msra.mxu1 %v12745_v5  ;;  %v4090_v38 = vpop.permute.xlu1 %4089  ;;  %3924 = vmatprep.mubr.f32.mxu1 %v12305_v20  ;;  %v4100_v54 = vsel %vm983_vm3, %v4086_v36, %v4088_v37 }
 0x56d   : > { %3931 = vmatprep.subr.mxu1 %v12743_v4  ;;  %6541 = vrot.lane.b32.xlu0 %v12745_v5, %s12320_s13  ;;  %v4101_v60 = vsel %vm983_vm3, %v4088_v37, %v4090_v38  ;;  %v11146_v5 = vld [vmem:[%s13575_s5 + $0x18] sm:$0xff] }
 0x56e   : > { %6543 = vrot.lane.b32.xlu1 %v12749_v6, %s12320_s13 }
 0x56f   : > { %v4092_v39 = vpop.permute.xlu0 %4091  ;;  %11137 = vmatmul.mubr.msk.f32.vlgmr.msra.gmra.mrb[22].mxu1 %vm3356_vm15, %v3304_v34 }
 0x570   : > { %3932 = vmatpush1.msra.mxu1 %v12741_v15  ;;  %v4094_v40 = vpop.permute.xlu1 %4093  ;;  %3995 = vmatprep.mubr.f32.mxu1 %v12305_v20  ;;  %v4102_v58 = vsel %vm983_vm3, %v4090_v38, %v4092_v39 }
 0x571   : > { %4002 = vmatprep.subr.mxu1 %v12771_v14  ;;  %6545 = vrot.lane.b32.xlu0 %v12741_v15, %s12320_s13  ;;  %v4103_v0 = vsel %vm983_vm3, %v4092_v39, %v4094_v40 }
 0x572   : > { %6547 = vrot.lane.b32.xlu1 %v12743_v4, %s12320_s13 }
 0x573   : > { %v4487_v41 = vpop.permute.xlu0 %4486  ;;  %11138 = vmatmul.mubr.msk.f32.vlgmr.msra.gmra.mrb[24].mxu1 %vm3356_vm15, %v3304_v34 }
 0x574   : > { %4003 = vmatpush1.msra.mxu1 %v12767_v13  ;;  %v4489_v44 = vpop.permute.xlu1 %4488  ;;  %4066 = vmatprep.mubr.f32.mxu1 %v12305_v20 }
 0x575   : > { %4117 = vmatprep.subr.mxu1 %v4096_v43  ;;  %6549 = vrot.lane.b32.xlu0 %v12767_v13, %s12320_s13  ;;  %v4506_v45 = vsel %vm4504_vm0, %v4487_v41, %v4489_v44 }
 0x576   : > { %6551 = vrot.lane.b32.xlu1 %v12771_v14, %s12320_s13 }
 0x577   : > { %v4485_v48 = vpop.permute.xlu0 %4484  ;;  %11139 = vmatmul.mubr.msk.f32.vlgmr.msra.gmra.mrb[26].mxu1 %vm3356_vm15, %v3304_v34 }
 0x578   : > { %4118 = vmatpush1.msra.mxu1 %v4095_v47  ;;  %v4491_v50 = vpop.permute.xlu1 %4490  ;;  %4181 = vmatprep.mubr.f32.mxu1 %v12305_v20  ;;  %v4505_v2 = vsel %vm4504_vm0, %v4485_v48, %v4487_v41  ;;  %v11158_v48 = vld [vmem:[%s13575_s5 + $0x28] sm:$0xff] }
 0x579   : > { %4188 = vmatprep.subr.mxu1 %v4098_v49  ;;  %6944 = vperm.xlu0 %12094, %v6941_v46   ;;  %v4507_v7 = vsel %vm4504_vm0, %v4489_v44, %v4491_v50 }
 0x57b   : > { %v4493_v52 = vpop.permute.xlu0 %4492  ;;  %11141 = vmatmul.mubr.msk.f32.vlgmr.msra.gmra.mrb[18].mxu1 %vm3356_vm15, %v11140_v51 }
 0x57c   : > { %4189 = vmatpush1.msra.mxu1 %v4097_v53  ;;  %v4495_v55 = vpop.permute.xlu1 %4494  ;;  %4252 = vmatprep.mubr.f32.mxu1 %v12305_v20  ;;  %v4508_v15 = vsel %vm4504_vm0, %v4491_v50, %v4493_v52 }
 0x57d   : > { %4259 = vmatprep.subr.mxu1 %v4100_v54  ;;  %v4509_v11 = vsel %vm4504_vm0, %v4493_v52, %v4495_v55 }
 0x57f   : > { %v4497_v56 = vpop.permute.xlu0 %4496  ;;  %11142 = vmatmul.mubr.msk.f32.vlgmr.msra.gmra.mrb[20].mxu1 %vm3356_vm15, %v11140_v51 }
 0x580   : > { %4260 = vmatpush1.msra.mxu1 %v4099_v57  ;;  %v4499_v23 = vpop.permute.xlu1 %4498  ;;  %4323 = vmatprep.mubr.f32.mxu1 %v12305_v20  ;;  %v4510_v8 = vsel %vm4504_vm0, %v4495_v55, %v4497_v56 }
 0x581   : > { %4330 = vmatprep.subr.mxu1 %v4102_v58  ;;  %v4511_v16 = vsel %vm4504_vm0, %v4497_v56, %v4499_v23 }
 0x583   : > { %v4501_v59 = vpop.permute.xlu0 %4500  ;;  %11143 = vmatmul.mubr.msk.f32.vlgmr.msra.gmra.mrb[22].mxu1 %vm3356_vm15, %v11140_v51 }
 0x584   : > { %4331 = vmatpush1.msra.mxu1 %v4101_v60  ;;  %v4503_v61 = vpop.permute.xlu1 %4502  ;;  %4394 = vmatprep.mubr.f32.mxu1 %v12305_v20  ;;  %v4512_v12 = vsel %vm4504_vm0, %v4499_v23, %v4501_v59 }
 0x585   : > { %4401 = vmatprep.subr.mxu1 %v4094_v40  ;;  %v4513_v21 = vsel %vm4504_vm0, %v4501_v59, %v4503_v61 }
 0x587   : > { %v4897_v62 = vpop.permute.xlu0 %4896  ;;  %11144 = vmatmul.mubr.msk.f32.vlgmr.msra.gmra.mrb[24].mxu1 %vm3356_vm15, %v11140_v51 }
 0x588   : > { %4402 = vmatpush1.msra.mxu1 %v4103_v0  ;;  %v4899_v1 = vpop.permute.xlu1 %4898  ;;  %4465 = vmatprep.mubr.f32.mxu1 %v12305_v20 }
 0x589   : > { %4527 = vmatprep.subr.mxu1 %v4506_v45  ;;  %v4916_v22 = vsel %vm4914_vm1, %v4897_v62, %v4899_v1 }
 0x58b   : > { %v4895_v3 = vpop.permute.xlu0 %4894  ;;  %11145 = vmatmul.mubr.msk.f32.vlgmr.msra.gmra.mrb[26].mxu1 %vm3356_vm15, %v11140_v51 }
 0x58c   : > { %4528 = vmatpush1.msra.mxu1 %v4505_v2  ;;  %v4901_v4 = vpop.permute.xlu1 %4900  ;;  %4591 = vmatprep.mubr.f32.mxu1 %v12305_v20  ;;  %v4915_v25 = vsel %vm4914_vm1, %v4895_v3, %v4897_v62  ;;  %v11164_v2 = vld [vmem:[%s13575_s5 + $0x30] sm:$0xff] }
 0x58d   : > { %4598 = vmatprep.subr.mxu1 %v4508_v15  ;;  %v4917_v63 = vsel %vm4914_vm1, %v4899_v1, %v4901_v4 }
 0x58f   : > { %v4903_v6 = vpop.permute.xlu0 %4902  ;;  %11147 = vmatmul.mubr.msk.f32.vlgmr.msra.gmra.mrb[18].mxu1 %vm3356_vm15, %v11146_v5 }
 0x590   : > { %4599 = vmatpush1.msra.mxu1 %v4507_v7  ;;  %v4905_v9 = vpop.permute.xlu1 %4904  ;;  %4662 = vmatprep.mubr.f32.mxu1 %v12305_v20  ;;  %v4918_v26 = vsel %vm4914_vm1, %v4901_v4, %v4903_v6 }
 0x591   : > { %4669 = vmatprep.subr.mxu1 %v4510_v8  ;;  %v4919_v32 = vsel %vm4914_vm1, %v4903_v6, %v4905_v9 }
 0x593   : > { %v4907_v10 = vpop.permute.xlu0 %4906  ;;  %11148 = vmatmul.mubr.msk.f32.vlgmr.msra.gmra.mrb[20].mxu1 %vm3356_vm15, %v11146_v5 }
 0x594   : > { %4670 = vmatpush1.msra.mxu1 %v4509_v11  ;;  %v4909_v13 = vpop.permute.xlu1 %4908  ;;  %4733 = vmatprep.mubr.f32.mxu1 %v12305_v20  ;;  %v4920_v29 = vsel %vm4914_vm1, %v4905_v9, %v4907_v10 }
 0x595   : > { %4740 = vmatprep.subr.mxu1 %v4512_v12  ;;  %v4921_v36 = vsel %vm4914_vm1, %v4907_v10, %v4909_v13 }
 0x597   : > { %v4911_v14 = vpop.permute.xlu0 %4910  ;;  %11149 = vmatmul.mubr.msk.f32.vlgmr.msra.gmra.mrb[22].mxu1 %vm3356_vm15, %v11146_v5 }
 0x598   : > { %4741 = vmatpush1.msra.mxu1 %v4511_v16  ;;  %v4913_v18 = vpop.permute.xlu1 %4912  ;;  %4804 = vmatprep.mubr.f32.mxu1 %v12305_v20  ;;  %v4922_v33 = vsel %vm4914_vm1, %v4909_v13, %v4911_v14 }
 0x599   : > { %4811 = vmatprep.subr.mxu1 %v4503_v61  ;;  %v4923_v39 = vsel %vm4914_vm1, %v4911_v14, %v4913_v18 }
 0x59b   : > { %v5307_v19 = vpop.permute.xlu0 %5306  ;;  %11150 = vmatmul.mubr.msk.f32.vlgmr.msra.gmra.mrb[24].mxu1 %vm3356_vm15, %v11146_v5 }
 0x59c   : > { %4812 = vmatpush1.msra.mxu1 %v4513_v21  ;;  %v5309_v24 = vpop.permute.xlu1 %5308  ;;  %4875 = vmatprep.mubr.f32.mxu1 %v12305_v20 }
 0x59d   : > { %4937 = vmatprep.subr.mxu1 %v4916_v22  ;;  %v5325_v40 = vsel %vm1639_vm7, %v5307_v19, %v5309_v24 }
 0x59f   : > { %v5305_v42 = vpop.permute.xlu0 %5304  ;;  %11151 = vmatmul.mubr.msk.f32.vlgmr.msra.gmra.mrb[26].mxu1 %vm3356_vm15, %v11146_v5 }
 0x5a0   : > { %4938 = vmatpush1.msra.mxu1 %v4915_v25  ;;  %v5311_v17 = vpop.permute.xlu1 %5310  ;;  %5001 = vmatprep.mubr.f32.mxu1 %v12305_v20  ;;  %v5324_v43 = vsel %vm1639_vm7, %v5305_v42, %v5307_v19  ;;  %v11170_v19 = vld [vmem:[%s13575_s5 + $0x38] sm:$0xff] }
 0x5a1   : > { %5008 = vmatprep.subr.mxu1 %v4918_v26  ;;  %v5326_v50 = vsel %vm1639_vm7, %v5309_v24, %v5311_v17 }
 0x5a3   : > { %v5313_v28 = vpop.permute.xlu0 %5312  ;;  %11153 = vmatmul.mubr.msk.f32.vlgmr.msra.gmra.mrb[18].mxu1 %vm3356_vm15, %v11152_v27 }
 0x5a4   : > { %5009 = vmatpush1.msra.mxu1 %v4917_v63  ;;  %v5315_v30 = vpop.permute.xlu1 %5314  ;;  %5072 = vmatprep.mubr.f32.mxu1 %v12305_v20  ;;  %v5327_v46 = vsel %vm1639_vm7, %v5311_v17, %v5313_v28 }
 0x5a5   : > { %5079 = vmatprep.subr.mxu1 %v4920_v29  ;;  %v5328_v54 = vsel %vm1639_vm7, %v5313_v28, %v5315_v30 }
 0x5a7   : > { %v5317_v31 = vpop.permute.xlu0 %5316  ;;  %11154 = vmatmul.mubr.msk.f32.vlgmr.msra.gmra.mrb[20].mxu1 %vm3356_vm15, %v11152_v27 }
 0x5a8   : > { %5080 = vmatpush1.msra.mxu1 %v4919_v32  ;;  %v5319_v34 = vpop.permute.xlu1 %5318  ;;  %5143 = vmatprep.mubr.f32.mxu1 %v12305_v20  ;;  %v5329_v51 = vsel %vm1639_vm7, %v5315_v30, %v5317_v31 }
 0x5a9   : > { %5150 = vmatprep.subr.mxu1 %v4922_v33  ;;  %v5330_v58 = vsel %vm1639_vm7, %v5317_v31, %v5319_v34 }
 0x5ab   : > { %v5321_v35 = vpop.permute.xlu0 %5320  ;;  %11155 = vmatmul.mubr.msk.f32.vlgmr.msra.gmra.mrb[22].mxu1 %vm3356_vm15, %v11152_v27 }
 0x5ac   : > { %5151 = vmatpush1.msra.mxu1 %v4921_v36  ;;  %v5323_v37 = vpop.permute.xlu1 %5322  ;;  %5214 = vmatprep.mubr.f32.mxu1 %v12305_v20  ;;  %v5331_v55 = vsel %vm1639_vm7, %v5319_v34, %v5321_v35  ;;  %v11176_v36 = vld [vmem:[%s13575_s5 + $0x40] sm:$0xff] }
 0x5ad   : > { %5221 = vmatprep.subr.mxu1 %v4913_v18  ;;  %v5332_v60 = vsel %vm1639_vm7, %v5321_v35, %v5323_v37 }
 0x5af   : > { %v5716_v38 = vpop.permute.xlu0 %5715  ;;  %11156 = vmatmul.mubr.msk.f32.vlgmr.msra.gmra.mrb[24].mxu1 %vm3356_vm15, %v11152_v27 }
 0x5b0   : > { %5222 = vmatpush1.msra.mxu1 %v4923_v39  ;;  %v5718_v41 = vpop.permute.xlu1 %5717  ;;  %5285 = vmatprep.mubr.f32.mxu1 %v12305_v20 }
 0x5b1   : > { %5346 = vmatprep.subr.mxu1 %v5325_v40  ;;  %v5735_v61 = vsel %vm5733_vm2, %v5716_v38, %v5718_v41 }
 0x5b3   : > { %v5714_v44 = vpop.permute.xlu0 %5713  ;;  %11157 = vmatmul.mubr.msk.f32.vlgmr.msra.gmra.mrb[26].mxu1 %vm3356_vm15, %v11152_v27 }
 0x5b4   : > { %5347 = vmatpush1.msra.mxu1 %v5324_v43  ;;  %v5720_v47 = vpop.permute.xlu1 %5719  ;;  %5410 = vmatprep.mubr.f32.mxu1 %v12305_v20  ;;  %v5734_v0 = vsel %vm5733_vm2, %v5714_v44, %v5716_v38 }
 0x5b5   : > { %5417 = vmatprep.subr.mxu1 %v5327_v46  ;;  %v5736_v15 = vsel %vm5733_vm2, %v5718_v41, %v5720_v47 }
 0x5b7   : > { %v5722_v49 = vpop.permute.xlu0 %5721  ;;  %11159 = vmatmul.mubr.msk.f32.vlgmr.msra.gmra.mrb[18].mxu1 %vm3356_vm15, %v11158_v48 }
 0x5b8   : > { %5418 = vmatpush1.msra.mxu1 %v5326_v50  ;;  %v5724_v52 = vpop.permute.xlu1 %5723  ;;  %5481 = vmatprep.mubr.f32.mxu1 %v12305_v20  ;;  %v5737_v1 = vsel %vm5733_vm2, %v5720_v47, %v5722_v49 }
 0x5b9   : > { %5488 = vmatprep.subr.mxu1 %v5329_v51  ;;  %v5738_v6 = vsel %vm5733_vm2, %v5722_v49, %v5724_v52 }
 0x5bb   : > { %v5726_v53 = vpop.permute.xlu0 %5725  ;;  %11160 = vmatmul.mubr.msk.f32.vlgmr.msra.gmra.mrb[20].mxu1 %vm3356_vm15, %v11158_v48 }
 0x5bc   : > { %5489 = vmatpush1.msra.mxu1 %v5328_v54  ;;  %v5728_v56 = vpop.permute.xlu1 %5727  ;;  %5552 = vmatprep.mubr.f32.mxu1 %v12305_v20  ;;  %v5739_v5 = vsel %vm5733_vm2, %v5724_v52, %v5726_v53  ;;  %v7021_v54 = vlaneseq }
 0x5bd   : > { %5559 = vmatprep.subr.mxu1 %v5331_v55  ;;  %v5740_v10 = vsel %vm5733_vm2, %v5726_v53, %v5728_v56 }
 0x5bf   : > { %v5730_v57 = vpop.permute.xlu0 %5729  ;;  %11161 = vmatmul.mubr.msk.f32.vlgmr.msra.gmra.mrb[22].mxu1 %vm3356_vm15, %v11158_v48 }
 0x5c0   : > { %5560 = vmatpush1.msra.mxu1 %v5330_v58  ;;  %v5732_v23 = vpop.permute.xlu1 %5731  ;;  %5623 = vmatprep.mubr.f32.mxu1 %v12305_v20  ;;  %v5741_v7 = vsel %vm5733_vm2, %v5728_v56, %v5730_v57 }
 0x5c1   : > { %5630 = vmatprep.subr.mxu1 %v5323_v37  ;;  %v5742_v12 = vsel %vm5733_vm2, %v5730_v57, %v5732_v23 }
 0x5c3   : > { %v6126_v59 = vpop.permute.xlu0 %6125  ;;  %11162 = vmatmul.mubr.msk.f32.vlgmr.msra.gmra.mrb[24].mxu1 %vm3356_vm15, %v11158_v48 }
 0x5c4   : > { %5631 = vmatpush1.msra.mxu1 %v5332_v60  ;;  %5694 = vmatprep.mubr.f32.mxu1 %v12305_v20  ;;  %v6128_v62 = vpop.permute.xlu1 %6127 }
 0x5c5   : > { %5756 = vmatprep.subr.mxu1 %v5735_v61  ;;  %v6145_v14 = vsel %vm6143_vm4, %v6126_v59, %v6128_v62 }
 0x5c7   : > { %v6124_v45 = vpop.permute.xlu0 %6123  ;;  %11163 = vmatmul.mubr.msk.f32.vlgmr.msra.gmra.mrb[26].mxu1 %vm3356_vm15, %v11158_v48 }
 0x5c8   : > { %5757 = vmatpush1.msra.mxu1 %v5734_v0  ;;  %5820 = vmatprep.mubr.f32.mxu1 %v12305_v20  ;;  %v6130_v4 = vpop.permute.xlu1 %6129  ;;  %v6144_v16 = vsel %vm6143_vm4, %v6124_v45, %v6126_v59 }
 0x5c9   : > { %5827 = vmatprep.subr.mxu1 %v5737_v1  ;;  %v6146_v24 = vsel %vm6143_vm4, %v6128_v62, %v6130_v4  ;;  %v13124_v62 = vshrl.u32 %v7021_v54, 7 }
 0x5cb   : > { %v6132_v3 = vpop.permute.xlu0 %6131  ;;  %11165 = vmatmul.mubr.msk.f32.vlgmr.msra.gmra.mrb[18].mxu1 %vm3356_vm15, %v11164_v2 }
 0x5cc   : > { %5828 = vmatpush1.msra.mxu1 %v5736_v15  ;;  %5891 = vmatprep.mubr.f32.mxu1 %v12305_v20  ;;  %v6134_v9 = vpop.permute.xlu1 %6133  ;;  %v6147_v18 = vsel %vm6143_vm4, %v6130_v4, %v6132_v3 }
 0x5cd   : > { %5898 = vmatprep.subr.mxu1 %v5739_v5  ;;  %v6148_v26 = vsel %vm6143_vm4, %v6132_v3, %v6134_v9 }
 0x5cf   : > { %11166 = vmatmul.mubr.msk.f32.vlgmr.msra.gmra.mrb[20].mxu1 %vm3356_vm15, %v11164_v2  ;;  %v6136_v8 = vpop.permute.xlu0 %6135 }
 0x5d0   : > { %5899 = vmatpush1.msra.mxu1 %v5738_v6  ;;  %5962 = vmatprep.mubr.f32.mxu1 %v12305_v20  ;;  %v6138_v13 = vpop.permute.xlu1 %6137  ;;  %v6149_v25 = vsel %vm6143_vm4, %v6134_v9, %v6136_v8  ;;  %v13133_v6 = vsub.s32 0, %v13124_v62  ;;  %v13136_v9 = vld [vmem:[#allocation9] sm:$0xff] }
 0x5d1   : > { %5969 = vmatprep.subr.mxu1 %v5741_v7  ;;  %v6150_v28 = vsel %vm6143_vm4, %v6136_v8, %v6138_v13 }
 0x5d3   : > { %11167 = vmatmul.mubr.msk.f32.vlgmr.msra.gmra.mrb[22].mxu1 %vm3356_vm15, %v11164_v2  ;;  %v6140_v11 = vpop.permute.xlu0 %6139 }
 0x5d4   : > { %5970 = vmatpush1.msra.mxu1 %v5740_v10  ;;  %6033 = vmatprep.mubr.f32.mxu1 %v12305_v20  ;;  %v6142_v22 = vpop.permute.xlu1 %6141  ;;  %v6151_v27 = vsel %vm6143_vm4, %v6138_v13, %v6140_v11  ;;  %v7027_v10 = vsub.s32 1, %v13124_v62 }
 0x5d5   : > { %6040 = vmatprep.subr.mxu1 %v5732_v23  ;;  %v6152_v30 = vsel %vm6143_vm4, %v6140_v11, %v6142_v22  ;;  %v7031_v11 = vsub.s32 2, %v13124_v62 }
 0x5d7   : > { %11168 = vmatmul.mubr.msk.f32.vlgmr.msra.gmra.mrb[24].mxu1 %vm3356_vm15, %v11164_v2  ;;  %v6536_v21 = vpop.permute.xlu0 %6535 }
 0x5d8   : > { %6041 = vmatpush1.msra.mxu1 %v5742_v12  ;;  %6104 = vmatprep.mubr.f32.mxu1 %v12305_v20  ;;  %v6538_v17 = vpop.permute.xlu1 %6537 }
 0x5d9   : > { %6166 = vmatprep.subr.mxu1 %v6145_v14  ;;  %v6555_v31 = vsel %vm6553_vm5, %v6536_v21, %v6538_v17 }
 0x5db   : > { %11169 = vmatmul.mubr.msk.f32.vlgmr.msra.gmra.mrb[26].mxu1 %vm3356_vm15, %v11164_v2  ;;  %v6534_v42 = vpop.permute.xlu0 %6533 }
 0x5dc   : > { %6167 = vmatpush1.msra.mxu1 %v6144_v16  ;;  %6230 = vmatprep.mubr.f32.mxu1 %v12305_v20  ;;  %v6540_v29 = vpop.permute.xlu1 %6539  ;;  %v6554_v32 = vsel %vm6553_vm5, %v6534_v42, %v6536_v21  ;;  %v7035_v16 = vsub.s32 3, %v13124_v62 }
 0x5dd   : > { %6237 = vmatprep.subr.mxu1 %v6147_v18  ;;  %v6556_v37 = vsel %vm6553_vm5, %v6538_v17, %v6540_v29  ;;  %v7032_v17 = vrot.slane %v13136_v9, %v7031_v11 }
 0x5df   : > { %11171 = vmatmul.mubr.msk.f32.vlgmr.msra.gmra.mrb[18].mxu1 %vm3356_vm15, %v11170_v19  ;;  %v6542_v63 = vpop.permute.xlu0 %6541 }
 0x5e0   : > { %6238 = vmatpush1.msra.mxu1 %v6146_v24  ;;  %6301 = vmatprep.mubr.f32.mxu1 %v12305_v20  ;;  %v6544_v34 = vpop.permute.xlu1 %6543  ;;  %v6557_v35 = vsel %vm6553_vm5, %v6540_v29, %v6542_v63 }
 0x5e1   : > { %6308 = vmatprep.subr.mxu1 %v6149_v25  ;;  %v6558_v41 = vsel %vm6553_vm5, %v6542_v63, %v6544_v34 }
 0x5e3   : > { %11172 = vmatmul.mubr.msk.f32.vlgmr.msra.gmra.mrb[20].mxu1 %vm3356_vm15, %v11170_v19  ;;  %v6546_v33 = vpop.permute.xlu0 %6545 }
 0x5e4   : > { %6309 = vmatpush1.msra.mxu1 %v6148_v26  ;;  %6372 = vmatprep.mubr.f32.mxu1 %v12305_v20  ;;  %v6559_v38 = vsel %vm6553_vm5, %v6544_v34, %v6546_v33  ;;  %v6548_v40 = vpop.permute.xlu1 %6547  ;;  %v7028_v26 = vrot.slane %v13136_v9, %v7027_v10 }
 0x5e5   : > { %6379 = vmatprep.subr.mxu1 %v6151_v27  ;;  %v6560_v44 = vsel %vm6553_vm5, %v6546_v33, %v6548_v40 }
 0x5e7   : > { %11173 = vmatmul.mubr.msk.f32.vlgmr.msra.gmra.mrb[22].mxu1 %vm3356_vm15, %v11170_v19  ;;  %v6550_v39 = vpop.permute.xlu0 %6549 }
 0x5e8   : > { %6380 = vmatpush1.msra.mxu1 %v6150_v28  ;;  %6443 = vmatprep.mubr.f32.mxu1 %v12305_v20  ;;  %v6561_v43 = vsel %vm6553_vm5, %v6548_v40, %v6550_v39  ;;  %v6552_v46 = vpop.permute.xlu1 %6551 }
 0x5e9   : > { %6450 = vmatprep.subr.mxu1 %v6142_v22  ;;  %v6562_v47 = vsel %vm6553_vm5, %v6550_v39, %v6552_v46  ;;  %v7024_v22 = vrot.slane %v13136_v9, %v13133_v6 }
 0x5eb   : > { %11174 = vmatmul.mubr.msk.f32.vlgmr.msra.gmra.mrb[24].mxu1 %vm3356_vm15, %v11170_v19 }
 0x5ec   : > { %6451 = vmatpush1.msra.mxu1 %v6152_v30  ;;  %6514 = vmatprep.mubr.f32.mxu1 %v12305_v20 }
 0x5ed   : > { %6576 = vmatprep.subr.mxu1 %v6555_v31  ;;  %v7036_v31 = vrot.slane %v13136_v9, %v7035_v16 }
 0x5ef   : > { %11175 = vmatmul.mubr.msk.f32.vlgmr.msra.gmra.mrb[26].mxu1 %vm3356_vm15, %v11170_v19 }
 0x5f0   : > { %6577 = vmatpush1.msra.mxu1 %v6554_v32  ;;  %6640 = vmatprep.mubr.f32.mxu1 %v12305_v20 }
 0x5f1   : > { %6647 = vmatprep.subr.mxu1 %v6557_v35 }
 0x5f3   : > { %11177 = vmatmul.mubr.msk.f32.vlgmr.msra.gmra.mrb[18].mxu1 %vm3356_vm15, %v11176_v36 }
 0x5f4   : > { %6648 = vmatpush1.msra.mxu1 %v6556_v37  ;;  %6711 = vmatprep.mubr.f32.mxu1 %v12305_v20 }
 0x5f5   : > { %6718 = vmatprep.subr.mxu1 %v6559_v38 }
 0x5f7   : > { %11178 = vmatmul.mubr.msk.f32.vlgmr.msra.gmra.mrb[20].mxu1 %vm3356_vm15, %v11176_v36 }
 0x5f8   : > { %6719 = vmatpush1.msra.mxu1 %v6558_v41  ;;  %6782 = vmatprep.mubr.f32.mxu1 %v12305_v20  ;;  %v6945_v48 = vpop.permute.xlu0 %6944  ;;  %v7039_v41 = vsub.s32 4, %v13124_v62 }
 0x5f9   : > { %6789 = vmatprep.subr.mxu1 %v6561_v43 }
 0x5fb   : > { %11179 = vmatmul.mubr.msk.f32.vlgmr.msra.gmra.mrb[22].mxu1 %vm3356_vm15, %v11176_v36 }
 0x5fc   : > { %6790 = vmatpush1.msra.mxu1 %v6560_v44  ;;  %6853 = vmatprep.mubr.f32.mxu1 %v12305_v20 }
 0x5fd   : > { %6860 = vmatprep.subr.mxu1 %v6552_v46 }
 0x5ff   : > { %11180 = vmatmul.mubr.msk.f32.vlgmr.msra.gmra.mrb[24].mxu1 %vm3356_vm15, %v11176_v36 }
 0x600   : > { %6861 = vmatpush1.msra.mxu1 %v6562_v47  ;;  %6924 = vmatprep.mubr.f32.mxu1 %v12305_v20 }
 0x603   : > { %11181 = vmatmul.mubr.msk.f32.vlgmr.msra.gmra.mrb[26].mxu1 %vm3356_vm15, %v11176_v36 }
 0x6c6   : > { %v6642_v49 = vpop.f32.mrb[18].mxu1 }
 0x6c7   : > { %v6947_v50 = vadd.f32 %v6945_v48, %v6642_v49  ;;  %v6644_v51 = vpop.f32.mrb[19].mxu1 }
 0x6c8   : > { %v13115_v52 = vadd.f32 %v6945_v48, %v6644_v51 }
 0x6c9   : > { %v6967_v53 = vmin.f32 %v6947_v50, 0.0  ;;  %vm6957_vm9 = vcmp.gt.f32.partialorder %v6947_v50, 0.0 }
 0x6ca   : > { %v6968_v55 = vmin.f32 %v13115_v52, 0.0  ;;  %v6713_v56 = vpop.f32.mrb[20].mxu1  ;;  %vm6958_vm10 = vcmp.gt.f32.partialorder %v13115_v52, 0.0 }
 0x6cb   : > { %v6977_v57 = vmul.f32 1.442695, %v6967_v53  ;;  %v13118_v58 = vadd.f32 %v6945_v48, %v6713_v56  ;;  %v6715_v23 = vpop.f32.mrb[21].mxu1  ;;  %v7040_v56 = vrot.slane %v13136_v9, %v7039_v41 }
 0x6cc   : > { %v6979_v59 = vmul.f32 1.442695, %v6968_v55  ;;  %v13120_v60 = vadd.f32 %v6945_v48, %v6715_v23 }
 0x6cd   : > { %12103 = vpow2.f32 %v6977_v57  ;;  %v6969_v61 = vmin.f32 %v13118_v58, 0.0  ;;  %vm6959_vm11 = vcmp.gt.f32.partialorder %v13118_v58, 0.0  ;;  %v7047_v57 = vsub.s32 6, %v13124_v62 }
 0x6ce   : > { %12105 = vpow2.f32 %v6979_v59  ;;  %v6970_v0 = vmin.f32 %v13120_v60, 0.0  ;;  %v6784_v45 = vpop.f32.mrb[22].mxu1  ;;  %vm6960_vm12 = vcmp.gt.f32.partialorder %v13120_v60, 0.0 }
 0x6cf   : > { %v6981_v1 = vmul.f32 1.442695, %v6969_v61  ;;  %v13127_v2 = vadd.f32 %v6945_v48, %v6784_v45  ;;  %v6786_v3 = vpop.f32.mrb[23].mxu1 }
 0x6d0   : > { %v6983_v15 = vmul.f32 1.442695, %v6970_v0  ;;  %v13129_v4 = vadd.f32 %v6945_v48, %v6786_v3 }
 0x6d1   : > { %12107 = vpow2.f32 %v6981_v1  ;;  %v6971_v5 = vmin.f32 %v13127_v2, 0.0  ;;  %vm6961_vm13 = vcmp.gt.f32.partialorder %v13127_v2, 0.0 }
 0x6d2   : > { %12109 = vpow2.f32 %v6983_v15  ;;  %v6972_v7 = vmin.f32 %v13129_v4, 0.0  ;;  %v6855_v8 = vpop.f32.mrb[24].mxu1 }
 0x6d3   : > { %v6985_v12 = vmul.f32 1.442695, %v6971_v5  ;;  %v13140_v13 = vadd.f32 %v6945_v48, %v6855_v8  ;;  %v6857_v14 = vpop.f32.mrb[25].mxu1  ;;  %v7048_v5 = vrot.slane %v13136_v9, %v7047_v57 }
 0x6d4   : > { %v6987_v18 = vmul.f32 1.442695, %v6972_v7  ;;  %v13143_v19 = vadd.f32 %v6945_v48, %v6857_v14  ;;  %v7018_v14 = vld [vmem:[#allocation9 + $0x8] sm:$0x3] }
 0x6d5   : > { %12111 = vpow2.f32 %v6985_v12  ;;  %v6973_v21 = vmin.f32 %v13140_v13, 0.0 }
 0x6d6   : > { %12113 = vpow2.f32 %v6987_v18  ;;  %v6974_v24 = vmin.f32 %v13143_v19, 0.0  ;;  %v6926_v25 = vpop.f32.mrb[26].mxu1 }
 0x6d7   : > { %v12104_v42 = vpop.eup %12103  ;;  %v6989_v27 = vmul.f32 1.442695, %v6973_v21  ;;  %v13153_v28 = vadd.f32 %v6945_v48, %v6926_v25  ;;  %v6928_v63 = vpop.f32.mrb[27].mxu1 }
 0x6d8   : > { %v12106_v29 = vpop.eup %12105  ;;  %v11182_v30 = vadd.f32 -1.0, %v12104_v42  ;;  %v6991_v32 = vmul.f32 1.442695, %v6974_v24  ;;  %v13156_v33 = vadd.f32 %v6945_v48, %v6928_v63  ;;  %v7043_v48 = vsub.s32 5, %v13124_v62 }
 0x6d9   : > { %v11183_v34 = vadd.f32 -1.0, %v12106_v29  ;;  %12115 = vpow2.f32 %v6989_v27  ;;  %v6975_v35 = vmin.f32 %v13153_v28, 0.0  ;;  %v7060_v42 = vrot.slane %v7018_v14, %v7027_v10 }
 0x6da   : > { %v7007_v36 = vsel %vm6957_vm9, %v6947_v50, %v11182_v30  ;;  %12117 = vpow2.f32 %v6991_v32  ;;  %v6976_v37 = vmin.f32 %v13156_v33, 0.0  ;;  %v7044_v0 = vrot.slane %v13136_v9, %v7043_v48 }
 0x6db   : > { %v12108_v38 = vpop.eup %12107  ;;  %v7071_v39 = vmul.f32 %v7024_v22, %v7007_v36  ;;  %v7008_v40 = vsel %vm6958_vm10, %v13115_v52, %v11183_v34  ;;  %v6993_v43 = vmul.f32 1.442695, %v6975_v35  ;;  %vm6962_vm9 = vcmp.gt.f32.partialorder %v13129_v4, 0.0 }
 0x6dc   : > { %v12110_v44 = vpop.eup %12109  ;;  %v7072_v46 = vmul.f32 %v7028_v26, %v7008_v40  ;;  %v11184_v47 = vadd.f32 -1.0, %v12108_v38  ;;  %v6995_v49 = vmul.f32 1.442695, %v6976_v37  ;;  %vm6963_vm10 = vcmp.gt.f32.partialorder %v13140_v13, 0.0 }
 0x6dd   : > { %v11185_v50 = vadd.f32 -1.0, %v12110_v44  ;;  %12119 = vpow2.f32 %v6993_v43  ;;  %7095 = vrot.lane.b32.xlu1 %v7071_v39, %s12321_s26  ;;  %v7056_v22 = vrot.slane %v7018_v14, %v13133_v6  ;;  %v7156_v14 = vld [vmem:[#allocation8] sm:$0x1] }
 0x6de   : > { %v7009_v51 = vsel %vm6959_vm11, %v13118_v58, %v11184_v47  ;;  %12121 = vpow2.f32 %v6995_v49  ;;  %7097 = vrot.lane.b32.xlu0 %v7072_v46, %s12321_s26  ;;  %v7051_v58 = vsub.s32 7, %v13124_v62  ;;  %vm6964_vm11 = vcmp.gt.f32.partialorder %v13143_v19, 0.0 }
 0x6df   : > { %v12112_v52 = vpop.eup %12111  ;;  %v7073_v53 = vmul.f32 %v7032_v17, %v7009_v51  ;;  %v7010_v55 = vsel %vm6960_vm12, %v13120_v60, %v11185_v50  ;;  %vm6965_vm12 = vcmp.gt.f32.partialorder %v13153_v28, 0.0 }
 0x6e0   : > { %v12114_v23 = vpop.eup %12113  ;;  %v7074_v59 = vmul.f32 %v7036_v31, %v7010_v55  ;;  %v11186_v61 = vadd.f32 -1.0, %v12112_v52  ;;  %v7052_v12 = vrot.slane %v13136_v9, %v7051_v58 }
 0x6e1   : > { %v11187_v45 = vadd.f32 -1.0, %v12114_v23  ;;  %7099 = vrot.lane.b32.xlu1 %v7073_v53, %s12321_s26 }
 0x6e2   : > { %v7011_v1 = vsel %vm6961_vm13, %v13127_v2, %v11186_v61  ;;  %7101 = vrot.lane.b32.xlu0 %v7074_v59, %s12321_s26  ;;  %vm6966_vm13 = vcmp.gt.f32.partialorder %v13156_v33, 0.0 }
 0x6e3   : > { %v12116_v60 = vpop.eup %12115  ;;  %v7075_v3 = vmul.f32 %v7040_v56, %v7011_v1  ;;  %v7012_v15 = vsel %vm6962_vm9, %v13129_v4, %v11187_v45  ;;  %vm7144_vm9 = vcmask 318464   ;;  %v7158_v56 = vld [vmem:[#allocation8 + $0x1] sm:$0x1] }
 0x6e4   : > { %v12118_v7 = vpop.eup %12117  ;;  %v7076_v8 = vmul.f32 %v7044_v0, %v7012_v15  ;;  %v11188_v11 = vadd.f32 -1.0, %v12116_v60 }
 0x6e5   : > { %v11189_v2 = vadd.f32 -1.0, %v12118_v7  ;;  %7103 = vrot.lane.b32.xlu1 %v7075_v3, %s12321_s26 }
 0x6e6   : > { %v7013_v16 = vsel %vm6963_vm10, %v13140_v13, %v11188_v11  ;;  %7105 = vrot.lane.b32.xlu0 %v7076_v8, %s12321_s26 }
 0x6e7   : > { %v12120_v4 = vpop.eup %12119  ;;  %v7077_v18 = vmul.f32 %v7048_v5, %v7013_v16  ;;  %v7014_v21 = vsel %vm6964_vm11, %v13143_v19, %v11189_v2 }
 0x6e8   : > { %v12122_v24 = vpop.eup %12121  ;;  %v7078_v9 = vmul.f32 %v7052_v12, %v7014_v21  ;;  %v11190_v25 = vadd.f32 -1.0, %v12120_v4 }
 0x6e9   : > { %v11191_v26 = vadd.f32 -1.0, %v12122_v24  ;;  %7107 = vrot.lane.b32.xlu1 %v7077_v18, %s12321_s26 }
 0x6ea   : > { %v7015_v13 = vsel %vm6965_vm12, %v13153_v28, %v11190_v25  ;;  %7109 = vrot.lane.b32.xlu0 %v7078_v9, %s12321_s26 }
 0x6eb   : > { %v7079_v19 = vmul.f32 %v7056_v22, %v7015_v13  ;;  %v7016_v17 = vsel %vm6966_vm13, %v13156_v33, %v11191_v26 }
 0x6ec   : > { %v7080_v27 = vmul.f32 %v7060_v42, %v7016_v17  ;;  %v7925_v17 = vld [vmem:[#allocation8 + $0x2] sm:$0x1] }
 0x6ed   : > { %7111 = vrot.lane.b32.xlu1 %v7079_v19, %s12321_s26 }
 0x6ee   : > { %7113 = vrot.lane.b32.xlu0 %v7080_v27, %s12321_s26 }
 0x74f   : > { %v7096_v10 = vpop.permute.xlu1 %7095 }
 0x750   : > { %7135 = vst.msk [vmem:[#allocation2] sm:$0xff] %vm7134_vm14, %v7096_v10  ;;  %v7098_v63 = vpop.permute.xlu0 %7097 }
 0x751   : > { %v13201_v29 = vsel %vm7081_vm6, %v7096_v10, %v7098_v63 }
 0x753   : > { %v7100_v28 = vpop.permute.xlu1 %7099 }
 0x754   : > { %v13204_v30 = vsel %vm7081_vm6, %v7098_v63, %v7100_v28  ;;  %v7102_v31 = vpop.permute.xlu0 %7101 }
 0x755   : > { %v13207_v32 = vsel %vm7081_vm6, %v7100_v28, %v7102_v31  ;;  %7173 = vrot.lane.b32.xlu0 %v13204_v30, %s12308_s11 }
 0x757   : > { %v7104_v33 = vpop.permute.xlu1 %7103  ;;  %v13211_v34 = vld [vmem:[#allocation2] sm:$0xff] }
 0x758   : > { %v13214_v35 = vsel %vm7081_vm6, %v7102_v31, %v7104_v33  ;;  %v7106_v36 = vpop.permute.xlu0 %7105  ;;  %7169 = vrot.lane.b32.xlu1 %v13211_v34, %s12308_s11 }
 0x759   : > { %v13219_v37 = vsel %vm7081_vm6, %v7104_v33, %v7106_v36  ;;  %7175 = vrot.lane.b32.xlu0 %v13207_v32, %s12308_s11 }
 0x75b   : > { %v7108_v38 = vpop.permute.xlu1 %7107 }
 0x75c   : > { %v13224_v39 = vsel %vm7081_vm6, %v7106_v36, %v7108_v38  ;;  %v7110_v40 = vpop.permute.xlu0 %7109  ;;  %7171 = vrot.lane.b32.xlu1 %v13201_v29, %s12308_s11  ;;  %v10787_v36 = vld [vmem:[#allocation3] sm:$0x1] }
 0x75d   : > { %v13229_v41 = vsel %vm7081_vm6, %v7108_v38, %v7110_v40  ;;  %7179 = vrot.lane.b32.xlu0 %v13219_v37, %s12308_s11 }
 0x75f   : > { %v7112_v43 = vpop.permute.xlu1 %7111 }
 0x760   : > { %v13234_v44 = vsel %vm7081_vm6, %v7110_v40, %v7112_v43  ;;  %v7114_v46 = vpop.permute.xlu0 %7113  ;;  %7177 = vrot.lane.b32.xlu1 %v13214_v35, %s12308_s11 }
 0x761   : > { %v7123_v47 = vsel %vm7081_vm6, %v7112_v43, %v7114_v46  ;;  %7183 = vrot.lane.b32.xlu0 %v13229_v41, %s12308_s11 }
 0x762   : > { %7145 = vst.msk [vmem:[#allocation2 + $0x48] sm:$0xff] %vm7144_vm9, %v7123_v47  ;;  %v8334_v47 = vld [vmem:[#allocation8 + $0x3] sm:$0x1] }
 0x764   : > { %7181 = vrot.lane.b32.xlu1 %v13224_v39, %s12308_s11 }
 0x768   : > { %7185 = vrot.lane.b32.xlu1 %v13234_v44, %s12308_s11 }
 0x769   : > { %v13245_v48 = vld [vmem:[#allocation2 + $0x48] sm:$0xff] }
 0x76a   : > { %7187 = vrot.lane.b32.xlu0 %v13245_v48, %s12308_s11 }
 0x76c   : > { %7928 = vrot.lane.b32.xlu1 %v13201_v29, %s12307_s17 }
 0x76e   : > { %7930 = vrot.lane.b32.xlu0 %v13204_v30, %s12307_s17 }
 0x770   : > { %7926 = vrot.lane.b32.xlu1 %v13211_v34, %s12307_s17 }
 0x772   : > { %7932 = vrot.lane.b32.xlu0 %v13207_v32, %s12307_s17 }
 0x774   : > { %7934 = vrot.lane.b32.xlu1 %v13214_v35, %s12307_s17 }
 0x776   : > { %7936 = vrot.lane.b32.xlu0 %v13219_v37, %s12307_s17 }
 0x778   : > { %7938 = vrot.lane.b32.xlu1 %v13224_v39, %s12307_s17 }
 0x77a   : > { %7940 = vrot.lane.b32.xlu0 %v13229_v41, %s12307_s17 }
 0x77c   : > { %7942 = vrot.lane.b32.xlu1 %v13234_v44, %s12307_s17 }
 0x77e   : > { %7944 = vrot.lane.b32.xlu0 %v13245_v48, %s12307_s17  ;;  %s12020_s17 = smul.u32 10, %s13594_s18 }
 0x780   : > { %8337 = vrot.lane.b32.xlu1 %v13201_v29, %s12316_s20 }
 0x782   : > { %8339 = vrot.lane.b32.xlu0 %v13204_v30, %s12316_s20 }
 0x784   : > { %8335 = vrot.lane.b32.xlu1 %v13211_v34, %s12316_s20 }
 0x786   : > { %8341 = vrot.lane.b32.xlu0 %v13207_v32, %s12316_s20 }
 0x788   : > { %8343 = vrot.lane.b32.xlu1 %v13214_v35, %s12316_s20 }
 0x78a   : > { %8345 = vrot.lane.b32.xlu0 %v13219_v37, %s12316_s20 }
 0x78c   : > { %8347 = vrot.lane.b32.xlu1 %v13224_v39, %s12316_s20 }
 0x78e   : > { %8349 = vrot.lane.b32.xlu0 %v13229_v41, %s12316_s20 }
 0x790   : > { %8351 = vrot.lane.b32.xlu1 %v13234_v44, %s12316_s20 }
 0x792   : > { %8353 = vrot.lane.b32.xlu0 %v13245_v48, %s12316_s20  ;;  %s416_s20 = scalar_lea.vmem %s13580_s10, %s12020_s17 }
 0x794   : > { %8746 = vrot.lane.b32.xlu1 %v13201_v29, %s12317_s8 }
 0x796   : > { %8748 = vrot.lane.b32.xlu0 %v13204_v30, %s12317_s8 }
 0x798   : > { %8744 = vrot.lane.b32.xlu1 %v13211_v34, %s12317_s8 }
 0x79a   : > { %8750 = vrot.lane.b32.xlu0 %v13207_v32, %s12317_s8 }
 0x79c   : > { %8752 = vrot.lane.b32.xlu1 %v13214_v35, %s12317_s8 }
 0x79e   : > { %8754 = vrot.lane.b32.xlu0 %v13219_v37, %s12317_s8 }
 0x7a0   : > { %8756 = vrot.lane.b32.xlu1 %v13224_v39, %s12317_s8 }
 0x7a2   : > { %8758 = vrot.lane.b32.xlu0 %v13229_v41, %s12317_s8 }
 0x7a4   : > { %8760 = vrot.lane.b32.xlu1 %v13234_v44, %s12317_s8 }
 0x7a6   : > { %8762 = vrot.lane.b32.xlu0 %v13245_v48, %s12317_s8 }
 0x7a8   : > { %9155 = vrot.lane.b32.xlu1 %v13201_v29, %s12312_s16 }
 0x7aa   : > { %9157 = vrot.lane.b32.xlu0 %v13204_v30, %s12312_s16 }
 0x7ac   : > { %9153 = vrot.lane.b32.xlu1 %v13211_v34, %s12312_s16 }
 0x7ae   : > { %9159 = vrot.lane.b32.xlu0 %v13207_v32, %s12312_s16 }
 0x7b0   : > { %9161 = vrot.lane.b32.xlu1 %v13214_v35, %s12312_s16 }
 0x7b2   : > { %9163 = vrot.lane.b32.xlu0 %v13219_v37, %s12312_s16 }
 0x7b4   : > { %9165 = vrot.lane.b32.xlu1 %v13224_v39, %s12312_s16 }
 0x7b6   : > { %9167 = vrot.lane.b32.xlu0 %v13229_v41, %s12312_s16 }
 0x7b8   : > { %9169 = vrot.lane.b32.xlu1 %v13234_v44, %s12312_s16 }
 0x7ba   : > { %9171 = vrot.lane.b32.xlu0 %v13245_v48, %s12312_s16 }
 0x7bc   : > { %9564 = vrot.lane.b32.xlu1 %v13201_v29, %s12318_s21 }
 0x7be   : > { %9566 = vrot.lane.b32.xlu0 %v13204_v30, %s12318_s21 }
 0x7c0   : > { %9562 = vrot.lane.b32.xlu1 %v13211_v34, %s12318_s21 }
 0x7c2   : > { %9568 = vrot.lane.b32.xlu0 %v13207_v32, %s12318_s21 }
 0x7c4   : > { %9570 = vrot.lane.b32.xlu1 %v13214_v35, %s12318_s21 }
 0x7c6   : > { %9572 = vrot.lane.b32.xlu0 %v13219_v37, %s12318_s21 }
 0x7c7   : > { %v7174_v49 = vpop.permute.xlu0 %7173 }
 0x7c8   : > { %9574 = vrot.lane.b32.xlu1 %v13224_v39, %s12318_s21 }
 0x7ca   : > { %v7170_v50 = vpop.permute.xlu1 %7169  ;;  %9576 = vrot.lane.b32.xlu0 %v13229_v41, %s12318_s21 }
 0x7cb   : > { %v7176_v51 = vpop.permute.xlu0 %7175 }
 0x7cc   : > { %9578 = vrot.lane.b32.xlu1 %v13234_v44, %s12318_s21  ;;  %v7191_v61 = vsel %vm670_vm8, %v7174_v49, %v7176_v51 }
 0x7ce   : > { %v7172_v52 = vpop.permute.xlu1 %7171  ;;  %9580 = vrot.lane.b32.xlu0 %v13245_v48, %s12318_s21 }
 0x7cf   : > { %v7189_v53 = vsel %vm670_vm8, %v7170_v50, %v7172_v52  ;;  %v7190_v55 = vsel %vm670_vm8, %v7172_v52, %v7174_v49  ;;  %v7180_v23 = vpop.permute.xlu0 %7179 }
 0x7d0   : > { %9973 = vrot.lane.b32.xlu1 %v13201_v29, %s12319_s29  ;;  %7211 = vmatprep.subr.mxu0 %v7190_v55 }
 0x7d1   : > { %7212 = vmatpush1.msra.mxu0 %v7189_v53 }
 0x7d2   : > { %11192 = vmatmul.mubr.msk.f32.vlgmr.msra.gmra.mrb[20].mxu0 %vm3356_vm15, %v7158_v56  ;;  %v7178_v57 = vpop.permute.xlu1 %7177  ;;  %9975 = vrot.lane.b32.xlu0 %v13204_v30, %s12319_s29 }
 0x7d3   : > { %v7192_v59 = vsel %vm670_vm8, %v7176_v51, %v7178_v57  ;;  %7346 = vmatprep.mubr.f32.mxu0 %v12305_v20  ;;  %v7193_v45 = vsel %vm670_vm8, %v7178_v57, %v7180_v23  ;;  %v7184_v1 = vpop.permute.xlu0 %7183 }
 0x7d4   : > { %9971 = vrot.lane.b32.xlu1 %v13211_v34, %s12319_s29  ;;  %7282 = vmatprep.subr.mxu0 %v7192_v59 }
 0x7d5   : > { %7283 = vmatpush1.msra.mxu0 %v7191_v61 }
 0x7d6   : > { %11193 = vmatmul.mubr.msk.f32.vlgmr.msra.gmra.mrb[22].mxu0 %vm3356_vm15, %v7158_v56  ;;  %v7182_v0 = vpop.permute.xlu1 %7181  ;;  %9977 = vrot.lane.b32.xlu0 %v13207_v32, %s12319_s29 }
 0x7d7   : > { %v7194_v58 = vsel %vm670_vm8, %v7180_v23, %v7182_v0  ;;  %7417 = vmatprep.mubr.f32.mxu0 %v12305_v20  ;;  %v7195_v15 = vsel %vm670_vm8, %v7182_v0, %v7184_v1 }
 0x7d8   : > { %9979 = vrot.lane.b32.xlu1 %v13214_v35, %s12319_s29  ;;  %7353 = vmatprep.subr.mxu0 %v7194_v58 }
 0x7d9   : > { %7354 = vmatpush1.msra.mxu0 %v7193_v45 }
 0x7da   : > { %11194 = vmatmul.mubr.msk.f32.vlgmr.msra.gmra.mrb[24].mxu0 %vm3356_vm15, %v7158_v56  ;;  %v7186_v60 = vpop.permute.xlu1 %7185  ;;  %9981 = vrot.lane.b32.xlu0 %v13219_v37, %s12319_s29 }
 0x7db   : > { %v7196_v3 = vsel %vm670_vm8, %v7184_v1, %v7186_v60  ;;  %7488 = vmatprep.mubr.f32.mxu0 %v12305_v20 }
 0x7dc   : > { %9983 = vrot.lane.b32.xlu1 %v13224_v39, %s12319_s29  ;;  %7424 = vmatprep.subr.mxu0 %v7196_v3  ;;  %v7188_v5 = vpop.permute.xlu0 %7187 }
 0x7dd   : > { %7425 = vmatpush1.msra.mxu0 %v7195_v15  ;;  %v7197_v7 = vsel %vm670_vm8, %v7186_v60, %v7188_v5 }
 0x7de   : > { %11195 = vmatmul.mubr.msk.f32.vlgmr.msra.gmra.mrb[26].mxu0 %vm3356_vm15, %v7158_v56  ;;  %v7929_v8 = vpop.permute.xlu1 %7928  ;;  %7495 = vmatprep.subr.mxu0 %v7188_v5  ;;  %v8743_v5 = vld [vmem:[#allocation8 + $0x4] sm:$0x1] }
 0x7df   : > { %9985 = vrot.lane.b32.xlu0 %v13229_v41, %s12319_s29  ;;  %7496 = vmatpush1.msra.mxu0 %v7197_v7 }
 0x7e0   : > { %9987 = vrot.lane.b32.xlu1 %v13234_v44, %s12319_s29  ;;  %7559 = vmatprep.mubr.f32.mxu0 %v12305_v20  ;;  %v7931_v11 = vpop.permute.xlu0 %7930 }
 0x7e1   : > { %7569 = vmatprep.subr.mxu0 %v13201_v29  ;;  %v7947_v25 = vsel %vm983_vm3, %v7929_v8, %v7931_v11 }
 0x7e2   : > { %11196 = vmatmul.mubr.msk.f32.vlgmr.msra.gmra.mrb[28].mxu0 %vm3356_vm15, %v7158_v56  ;;  %v7927_v12 = vpop.permute.xlu1 %7926 }
 0x7e3   : > { %7570 = vmatpush1.msra.mxu0 %v13211_v34  ;;  %9989 = vrot.lane.b32.xlu0 %v13245_v48, %s12319_s29  ;;  %v7946_v26 = vsel %vm983_vm3, %v7927_v12, %v7929_v8 }
 0x7e4   : > { %7640 = vmatprep.subr.mxu0 %v13207_v32  ;;  %10382 = vrot.lane.b32.xlu1 %v13201_v29, %s12320_s13  ;;  %v7933_v2 = vpop.permute.xlu0 %7932 }
 0x7e5   : > { %7633 = vmatprep.mubr.f32.mxu0 %v12305_v20  ;;  %v7948_v10 = vsel %vm983_vm3, %v7931_v11, %v7933_v2 }
 0x7e6   : > { %11197 = vmatmul.mubr.msk.f32.vlgmr.msra.gmra.mrb[20].mxu0 %vm3356_vm15, %v7156_v14  ;;  %v7935_v16 = vpop.permute.xlu1 %7934 }
 0x7e7   : > { %7641 = vmatpush1.msra.mxu0 %v13204_v30  ;;  %10384 = vrot.lane.b32.xlu0 %v13204_v30, %s12320_s13  ;;  %v7949_v19 = vsel %vm983_vm3, %v7933_v2, %v7935_v16 }
 0x7e8   : > { %7711 = vmatprep.subr.mxu0 %v13219_v37  ;;  %10380 = vrot.lane.b32.xlu1 %v13211_v34, %s12320_s13  ;;  %v7937_v4 = vpop.permute.xlu0 %7936 }
 0x7e9   : > { %7704 = vmatprep.mubr.f32.mxu0 %v12305_v20  ;;  %v7950_v30 = vsel %vm983_vm3, %v7935_v16, %v7937_v4 }
 0x7ea   : > { %11198 = vmatmul.mubr.msk.f32.vlgmr.msra.gmra.mrb[22].mxu0 %vm3356_vm15, %v7156_v14  ;;  %v7939_v18 = vpop.permute.xlu1 %7938 }
 0x7eb   : > { %7712 = vmatpush1.msra.mxu0 %v13214_v35  ;;  %10386 = vrot.lane.b32.xlu0 %v13207_v32, %s12320_s13  ;;  %v7951_v29 = vsel %vm983_vm3, %v7937_v4, %v7939_v18 }
 0x7ec   : > { %7782 = vmatprep.subr.mxu0 %v13229_v41  ;;  %10388 = vrot.lane.b32.xlu1 %v13214_v35, %s12320_s13  ;;  %v7941_v21 = vpop.permute.xlu0 %7940 }
 0x7ed   : > { %7775 = vmatprep.mubr.f32.mxu0 %v12305_v20  ;;  %v7952_v34 = vsel %vm983_vm3, %v7939_v18, %v7941_v21 }
 0x7ee   : > { %11199 = vmatmul.mubr.msk.f32.vlgmr.msra.gmra.mrb[24].mxu0 %vm3356_vm15, %v7156_v14  ;;  %v7943_v22 = vpop.permute.xlu1 %7942 }
 0x7ef   : > { %7783 = vmatpush1.msra.mxu0 %v13224_v39  ;;  %10390 = vrot.lane.b32.xlu0 %v13219_v37, %s12320_s13  ;;  %v7953_v32 = vsel %vm983_vm3, %v7941_v21, %v7943_v22 }
 0x7f0   : > { %7853 = vmatprep.subr.mxu0 %v13245_v48  ;;  %10392 = vrot.lane.b32.xlu1 %v13224_v39, %s12320_s13  ;;  %v7945_v24 = vpop.permute.xlu0 %7944 }
 0x7f1   : > { %7846 = vmatprep.mubr.f32.mxu0 %v12305_v20  ;;  %v7954_v38 = vsel %vm983_vm3, %v7943_v22, %v7945_v24  ;;  %vm10946_vm3 = vcmp.lt.s32.totalorder %v7021_v54, 132 }
 0x7f2   : > { %11200 = vmatmul.mubr.msk.f32.vlgmr.msra.gmra.mrb[26].mxu0 %vm3356_vm15, %v7156_v14  ;;  %v8338_v9 = vpop.permute.xlu1 %8337 }
 0x7f3   : > { %7854 = vmatpush1.msra.mxu0 %v13234_v44  ;;  %10394 = vrot.lane.b32.xlu0 %v13229_v41, %s12320_s13 }
 0x7f4   : > { %7968 = vmatprep.subr.mxu0 %v7947_v25  ;;  %10396 = vrot.lane.b32.xlu1 %v13234_v44, %s12320_s13  ;;  %v8340_v42 = vpop.permute.xlu0 %8339 }
 0x7f5   : > { %7917 = vmatprep.mubr.f32.mxu0 %v12305_v20  ;;  %v8356_v40 = vsel %vm4504_vm0, %v8338_v9, %v8340_v42 }
 0x7f6   : > { %11201 = vmatmul.mubr.msk.f32.vlgmr.msra.gmra.mrb[28].mxu0 %vm3356_vm15, %v7156_v14  ;;  %v8336_v13 = vpop.permute.xlu1 %8335 }
 0x7f7   : > { %7969 = vmatpush1.msra.mxu0 %v7946_v26  ;;  %10398 = vrot.lane.b32.xlu0 %v13245_v48, %s12320_s13  ;;  %v8355_v43 = vsel %vm4504_vm0, %v8336_v13, %v8338_v9 }
 0x7f8   : > { %8039 = vmatprep.subr.mxu0 %v7949_v19  ;;  %8032 = vmatprep.mubr.f32.mxu0 %v12305_v20  ;;  %v8342_v27 = vpop.permute.xlu0 %8341 }
 0x7f9   : > { %10790 = vperm.xlu1 %12095, %v10787_v36   ;;  %v8357_v49 = vsel %vm4504_vm0, %v8340_v42, %v8342_v27 }
 0x7fa   : > { %11202 = vmatmul.mubr.msk.f32.vlgmr.msra.gmra.mrb[20].mxu0 %vm3356_vm15, %v7925_v17  ;;  %v8344_v63 = vpop.permute.xlu1 %8343 }
 0x7fb   : > { %8040 = vmatpush1.msra.mxu0 %v7948_v10  ;;  %8103 = vmatprep.mubr.f32.mxu0 %v12305_v20  ;;  %v8358_v46 = vsel %vm4504_vm0, %v8342_v27, %v8344_v63  ;;  %v9152_v27 = vld [vmem:[#allocation8 + $0x5] sm:$0x1] }
 0x7fc   : > { %8110 = vmatprep.subr.mxu0 %v7951_v29  ;;  %v8346_v28 = vpop.permute.xlu0 %8345 }
 0x7fd   : > { %v8359_v53 = vsel %vm4504_vm0, %v8344_v63, %v8346_v28 }
 0x7fe   : > { %11203 = vmatmul.mubr.msk.f32.vlgmr.msra.gmra.mrb[22].mxu0 %vm3356_vm15, %v7925_v17  ;;  %v8348_v31 = vpop.permute.xlu1 %8347 }
 0x7ff   : > { %8111 = vmatpush1.msra.mxu0 %v7950_v30  ;;  %8174 = vmatprep.mubr.f32.mxu0 %v12305_v20  ;;  %v8360_v51 = vsel %vm4504_vm0, %v8346_v28, %v8348_v31 }
 0x800   : > { %8181 = vmatprep.subr.mxu0 %v7953_v32  ;;  %v8350_v33 = vpop.permute.xlu0 %8349 }
 0x801   : > { %v8361_v23 = vsel %vm4504_vm0, %v8348_v31, %v8350_v33 }
 0x802   : > { %11204 = vmatmul.mubr.msk.f32.vlgmr.msra.gmra.mrb[24].mxu0 %vm3356_vm15, %v7925_v17  ;;  %v8352_v35 = vpop.permute.xlu1 %8351 }
 0x803   : > { %8182 = vmatpush1.msra.mxu0 %v7952_v34  ;;  %8245 = vmatprep.mubr.f32.mxu0 %v12305_v20  ;;  %v8362_v56 = vsel %vm4504_vm0, %v8350_v33, %v8352_v35 }
 0x804   : > { %8252 = vmatprep.subr.mxu0 %v7945_v24  ;;  %v8354_v37 = vpop.permute.xlu0 %8353 }
 0x805   : > { %v8363_v0 = vsel %vm4504_vm0, %v8352_v35, %v8354_v37 }
 0x806   : > { %11205 = vmatmul.mubr.msk.f32.vlgmr.msra.gmra.mrb[26].mxu0 %vm3356_vm15, %v7925_v17  ;;  %v8747_v39 = vpop.permute.xlu1 %8746 }
 0x807   : > { %8253 = vmatpush1.msra.mxu0 %v7954_v38  ;;  %8316 = vmatprep.mubr.f32.mxu0 %v12305_v20 }
 0x808   : > { %8377 = vmatprep.subr.mxu0 %v8356_v40  ;;  %v8749_v41 = vpop.permute.xlu0 %8748 }
 0x809   : > { %v8765_v45 = vsel %vm4914_vm1, %v8747_v39, %v8749_v41 }
 0x80a   : > { %11206 = vmatmul.mubr.msk.f32.vlgmr.msra.gmra.mrb[28].mxu0 %vm3356_vm15, %v7925_v17  ;;  %v8745_v44 = vpop.permute.xlu1 %8744 }
 0x80b   : > { %8378 = vmatpush1.msra.mxu0 %v8355_v43  ;;  %8441 = vmatprep.mubr.f32.mxu0 %v12305_v20  ;;  %v8764_v60 = vsel %vm4914_vm1, %v8745_v44, %v8747_v39 }
 0x80c   : > { %8448 = vmatprep.subr.mxu0 %v8358_v46  ;;  %v8751_v48 = vpop.permute.xlu0 %8750 }
 0x80d   : > { %v8766_v8 = vsel %vm4914_vm1, %v8749_v41, %v8751_v48 }
 0x80e   : > { %11207 = vmatmul.mubr.msk.f32.vlgmr.msra.gmra.mrb[20].mxu0 %vm3356_vm15, %v8334_v47  ;;  %v8753_v50 = vpop.permute.xlu1 %8752 }
 0x80f   : > { %8449 = vmatpush1.msra.mxu0 %v8357_v49  ;;  %8512 = vmatprep.mubr.f32.mxu0 %v12305_v20  ;;  %v8767_v15 = vsel %vm4914_vm1, %v8751_v48, %v8753_v50 }
 0x810   : > { %8519 = vmatprep.subr.mxu0 %v8360_v51  ;;  %v8755_v52 = vpop.permute.xlu0 %8754 }
 0x811   : > { %v8768_v2 = vsel %vm4914_vm1, %v8753_v50, %v8755_v52 }
 0x812   : > { %11208 = vmatmul.mubr.msk.f32.vlgmr.msra.gmra.mrb[22].mxu0 %vm3356_vm15, %v8334_v47  ;;  %v8757_v55 = vpop.permute.xlu1 %8756 }
 0x813   : > { %8520 = vmatpush1.msra.mxu0 %v8359_v53  ;;  %8583 = vmatprep.mubr.f32.mxu0 %v12305_v20  ;;  %v8769_v12 = vsel %vm4914_vm1, %v8755_v52, %v8757_v55 }
 0x814   : > { %8590 = vmatprep.subr.mxu0 %v8362_v56  ;;  %v8759_v57 = vpop.permute.xlu0 %8758 }
 0x815   : > { %v8770_v21 = vsel %vm4914_vm1, %v8757_v55, %v8759_v57 }
 0x816   : > { %11209 = vmatmul.mubr.msk.f32.vlgmr.msra.gmra.mrb[24].mxu0 %vm3356_vm15, %v8334_v47  ;;  %v8761_v59 = vpop.permute.xlu1 %8760 }
 0x817   : > { %8591 = vmatpush1.msra.mxu0 %v8361_v23  ;;  %8654 = vmatprep.mubr.f32.mxu0 %v12305_v20  ;;  %v8771_v4 = vsel %vm4914_vm1, %v8759_v57, %v8761_v59 }
 0x818   : > { %8661 = vmatprep.subr.mxu0 %v8354_v37  ;;  %v8763_v61 = vpop.permute.xlu0 %8762 }
 0x819   : > { %v8772_v9 = vsel %vm4914_vm1, %v8761_v59, %v8763_v61 }
 0x81a   : > { %11210 = vmatmul.mubr.msk.f32.vlgmr.msra.gmra.mrb[26].mxu0 %vm3356_vm15, %v8334_v47  ;;  %v9156_v58 = vpop.permute.xlu1 %9155 }
 0x81b   : > { %8662 = vmatpush1.msra.mxu0 %v8363_v0  ;;  %8725 = vmatprep.mubr.f32.mxu0 %v12305_v20 }
 0x81c   : > { %8786 = vmatprep.subr.mxu0 %v8765_v45  ;;  %v9158_v1 = vpop.permute.xlu0 %9157 }
 0x81d   : > { %v9174_v42 = vsel %vm1639_vm7, %v9156_v58, %v9158_v1 }
 0x81e   : > { %11211 = vmatmul.mubr.msk.f32.vlgmr.msra.gmra.mrb[28].mxu0 %vm3356_vm15, %v8334_v47  ;;  %v9154_v3 = vpop.permute.xlu1 %9153  ;;  %v9561_v47 = vld [vmem:[#allocation8 + $0x6] sm:$0x1] }
 0x81f   : > { %8787 = vmatpush1.msra.mxu0 %v8764_v60  ;;  %8850 = vmatprep.mubr.f32.mxu0 %v12305_v20  ;;  %v9173_v13 = vsel %vm1639_vm7, %v9154_v3, %v9156_v58 }
 0x820   : > { %8857 = vmatprep.subr.mxu0 %v8767_v15  ;;  %v9160_v7 = vpop.permute.xlu0 %9159 }
 0x821   : > { %v9175_v63 = vsel %vm1639_vm7, %v9158_v1, %v9160_v7  ;;  %v9970_v1 = vld [vmem:[#allocation8 + $0x7] sm:$0x1] }
 0x822   : > { %11212 = vmatmul.mubr.msk.f32.vlgmr.msra.gmra.mrb[20].mxu0 %vm3356_vm15, %v8743_v5  ;;  %v9162_v11 = vpop.permute.xlu1 %9161 }
 0x823   : > { %8858 = vmatpush1.msra.mxu0 %v8766_v8  ;;  %8921 = vmatprep.mubr.f32.mxu0 %v12305_v20  ;;  %v9176_v17 = vsel %vm1639_vm7, %v9160_v7, %v9162_v11 }
 0x824   : > { %8928 = vmatprep.subr.mxu0 %v8769_v12  ;;  %v9164_v14 = vpop.permute.xlu0 %9163 }
 0x825   : > { %v9177_v31 = vsel %vm1639_vm7, %v9162_v11, %v9164_v14 }
 0x826   : > { %11213 = vmatmul.mubr.msk.f32.vlgmr.msra.gmra.mrb[22].mxu0 %vm3356_vm15, %v8743_v5  ;;  %v9166_v16 = vpop.permute.xlu1 %9165 }
 0x827   : > { %8929 = vmatpush1.msra.mxu0 %v8768_v2  ;;  %8992 = vmatprep.mubr.f32.mxu0 %v12305_v20  ;;  %v9178_v28 = vsel %vm1639_vm7, %v9164_v14, %v9166_v16 }
 0x828   : > { %8999 = vmatprep.subr.mxu0 %v8771_v4  ;;  %v9168_v18 = vpop.permute.xlu0 %9167 }
 0x829   : > { %v9179_v35 = vsel %vm1639_vm7, %v9166_v16, %v9168_v18 }
 0x82a   : > { %11214 = vmatmul.mubr.msk.f32.vlgmr.msra.gmra.mrb[24].mxu0 %vm3356_vm15, %v8743_v5  ;;  %v9170_v22 = vpop.permute.xlu1 %9169 }
 0x82b   : > { %9000 = vmatpush1.msra.mxu0 %v8770_v21  ;;  %9063 = vmatprep.mubr.f32.mxu0 %v12305_v20  ;;  %v9180_v33 = vsel %vm1639_vm7, %v9168_v18, %v9170_v22 }
 0x82c   : > { %9070 = vmatprep.subr.mxu0 %v8763_v61  ;;  %v9172_v24 = vpop.permute.xlu0 %9171 }
 0x82d   : > { %v9181_v38 = vsel %vm1639_vm7, %v9170_v22, %v9172_v24 }
 0x82e   : > { %11215 = vmatmul.mubr.msk.f32.vlgmr.msra.gmra.mrb[26].mxu0 %vm3356_vm15, %v8743_v5  ;;  %v9565_v25 = vpop.permute.xlu1 %9564 }
 0x82f   : > { %9071 = vmatpush1.msra.mxu0 %v8772_v9  ;;  %9134 = vmatprep.mubr.f32.mxu0 %v12305_v20 }
 0x830   : > { %9195 = vmatprep.subr.mxu0 %v9174_v42  ;;  %v9567_v26 = vpop.permute.xlu0 %9566 }
 0x831   : > { %v9583_v40 = vsel %vm5733_vm2, %v9565_v25, %v9567_v26 }
 0x832   : > { %11216 = vmatmul.mubr.msk.f32.vlgmr.msra.gmra.mrb[28].mxu0 %vm3356_vm15, %v8743_v5  ;;  %v9563_v19 = vpop.permute.xlu1 %9562 }
 0x833   : > { %9196 = vmatpush1.msra.mxu0 %v9173_v13  ;;  %9259 = vmatprep.mubr.f32.mxu0 %v12305_v20  ;;  %v9582_v43 = vsel %vm5733_vm2, %v9563_v19, %v9565_v25  ;;  %v10379_v25 = vld [vmem:[#allocation8 + $0x8] sm:$0x1] }
 0x834   : > { %9266 = vmatprep.subr.mxu0 %v9176_v17  ;;  %v9569_v10 = vpop.permute.xlu0 %9568 }
 0x835   : > { %v9584_v48 = vsel %vm5733_vm2, %v9567_v26, %v9569_v10 }
 0x836   : > { %11217 = vmatmul.mubr.msk.f32.vlgmr.msra.gmra.mrb[20].mxu0 %vm3356_vm15, %v9152_v27  ;;  %v9571_v29 = vpop.permute.xlu1 %9570 }
 0x837   : > { %9267 = vmatpush1.msra.mxu0 %v9175_v63  ;;  %9330 = vmatprep.mubr.f32.mxu0 %v12305_v20  ;;  %v9585_v46 = vsel %vm5733_vm2, %v9569_v10, %v9571_v29 }
 0x838   : > { %9337 = vmatprep.subr.mxu0 %v9178_v28  ;;  %v9573_v30 = vpop.permute.xlu0 %9572 }
 0x839   : > { %v9586_v52 = vsel %vm5733_vm2, %v9571_v29, %v9573_v30 }
 0x83a   : > { %11218 = vmatmul.mubr.msk.f32.vlgmr.msra.gmra.mrb[22].mxu0 %vm3356_vm15, %v9152_v27  ;;  %v9575_v32 = vpop.permute.xlu1 %9574 }
 0x83b   : > { %9338 = vmatpush1.msra.mxu0 %v9177_v31  ;;  %9401 = vmatprep.mubr.f32.mxu0 %v12305_v20  ;;  %v9587_v51 = vsel %vm5733_vm2, %v9573_v30, %v9575_v32 }
 0x83c   : > { %9408 = vmatprep.subr.mxu0 %v9180_v33  ;;  %v9577_v34 = vpop.permute.xlu0 %9576 }
 0x83d   : > { %v9588_v57 = vsel %vm5733_vm2, %v9575_v32, %v9577_v34 }
 0x83e   : > { %11219 = vmatmul.mubr.msk.f32.vlgmr.msra.gmra.mrb[24].mxu0 %vm3356_vm15, %v9152_v27  ;;  %v9579_v36 = vpop.permute.xlu1 %9578 }
 0x83f   : > { %9409 = vmatpush1.msra.mxu0 %v9179_v35  ;;  %9472 = vmatprep.mubr.f32.mxu0 %v12305_v20  ;;  %v9589_v53 = vsel %vm5733_vm2, %v9577_v34, %v9579_v36 }
 0x840   : > { %9479 = vmatprep.subr.mxu0 %v9172_v24  ;;  %v9581_v37 = vpop.permute.xlu0 %9580 }
 0x841   : > { %v9590_v23 = vsel %vm5733_vm2, %v9579_v36, %v9581_v37 }
 0x842   : > { %11220 = vmatmul.mubr.msk.f32.vlgmr.msra.gmra.mrb[26].mxu0 %vm3356_vm15, %v9152_v27  ;;  %v9974_v39 = vpop.permute.xlu1 %9973 }
 0x843   : > { %9480 = vmatpush1.msra.mxu0 %v9181_v38  ;;  %9543 = vmatprep.mubr.f32.mxu0 %v12305_v20 }
 0x844   : > { %9604 = vmatprep.subr.mxu0 %v9583_v40  ;;  %v9976_v41 = vpop.permute.xlu0 %9975 }
 0x845   : > { %v9992_v0 = vsel %vm6143_vm4, %v9974_v39, %v9976_v41 }
 0x846   : > { %11221 = vmatmul.mubr.msk.f32.vlgmr.msra.gmra.mrb[28].mxu0 %vm3356_vm15, %v9152_v27  ;;  %v9972_v44 = vpop.permute.xlu1 %9971 }
 0x847   : > { %9605 = vmatpush1.msra.mxu0 %v9582_v43  ;;  %9668 = vmatprep.mubr.f32.mxu0 %v12305_v20  ;;  %v9991_v58 = vsel %vm6143_vm4, %v9972_v44, %v9974_v39 }
 0x848   : > { %9675 = vmatprep.subr.mxu0 %v9585_v46  ;;  %v9978_v50 = vpop.permute.xlu0 %9977 }
 0x849   : > { %v9993_v15 = vsel %vm6143_vm4, %v9976_v41, %v9978_v50 }
 0x84a   : > { %11222 = vmatmul.mubr.msk.f32.vlgmr.msra.gmra.mrb[20].mxu0 %vm3356_vm15, %v9561_v47  ;;  %v9980_v49 = vpop.permute.xlu1 %9979 }
 0x84b   : > { %9676 = vmatpush1.msra.mxu0 %v9584_v48  ;;  %9739 = vmatprep.mubr.f32.mxu0 %v12305_v20  ;;  %v9994_v45 = vsel %vm6143_vm4, %v9978_v50, %v9980_v49 }
 0x84c   : > { %9746 = vmatprep.subr.mxu0 %v9587_v51  ;;  %v9982_v56 = vpop.permute.xlu0 %9981 }
 0x84d   : > { %v9995_v7 = vsel %vm6143_vm4, %v9980_v49, %v9982_v56 }
 0x84e   : > { %11223 = vmatmul.mubr.msk.f32.vlgmr.msra.gmra.mrb[22].mxu0 %vm3356_vm15, %v9561_v47  ;;  %v9984_v55 = vpop.permute.xlu1 %9983 }
 0x84f   : > { %9747 = vmatpush1.msra.mxu0 %v9586_v52  ;;  %9810 = vmatprep.mubr.f32.mxu0 %v12305_v20  ;;  %v9996_v5 = vsel %vm6143_vm4, %v9982_v56, %v9984_v55 }
 0x850   : > { %9817 = vmatprep.subr.mxu0 %v9589_v53 }
 0x851   : > { %v9986_v61 = vpop.permute.xlu0 %9985 }
 0x852   : > { %11224 = vmatmul.mubr.msk.f32.vlgmr.msra.gmra.mrb[24].mxu0 %vm3356_vm15, %v9561_v47  ;;  %v9988_v59 = vpop.permute.xlu1 %9987  ;;  %v9997_v14 = vsel %vm6143_vm4, %v9984_v55, %v9986_v61 }
 0x853   : > { %9818 = vmatpush1.msra.mxu0 %v9588_v57  ;;  %9881 = vmatprep.mubr.f32.mxu0 %v12305_v20  ;;  %v9998_v12 = vsel %vm6143_vm4, %v9986_v61, %v9988_v59 }
 0x854   : > { %9888 = vmatprep.subr.mxu0 %v9581_v37 }
 0x855   : > { %v9990_v3 = vpop.permute.xlu0 %9989 }
 0x856   : > { %11225 = vmatmul.mubr.msk.f32.vlgmr.msra.gmra.mrb[26].mxu0 %vm3356_vm15, %v9561_v47  ;;  %v10383_v60 = vpop.permute.xlu1 %10382  ;;  %v9999_v4 = vsel %vm6143_vm4, %v9988_v59, %v9990_v3 }
 0x857   : > { %9889 = vmatpush1.msra.mxu0 %v9590_v23  ;;  %9952 = vmatprep.mubr.f32.mxu0 %v12305_v20 }
 0x858   : > { %10013 = vmatprep.subr.mxu0 %v9992_v0 }
 0x859   : > { %v10385_v11 = vpop.permute.xlu0 %10384 }
 0x85a   : > { %11226 = vmatmul.mubr.msk.f32.vlgmr.msra.gmra.mrb[28].mxu0 %vm3356_vm15, %v9561_v47  ;;  %v10381_v8 = vpop.permute.xlu1 %10380  ;;  %v10401_v18 = vsel %vm6553_vm5, %v10383_v60, %v10385_v11 }
 0x85b   : > { %10014 = vmatpush1.msra.mxu0 %v9991_v58  ;;  %10077 = vmatprep.mubr.f32.mxu0 %v12305_v20  ;;  %v10400_v21 = vsel %vm6553_vm5, %v10381_v8, %v10383_v60 }
 0x85c   : > { %10084 = vmatprep.subr.mxu0 %v9994_v45 }
 0x85d   : > { %v10387_v16 = vpop.permute.xlu0 %10386 }
 0x85e   : > { %11227 = vmatmul.mubr.msk.f32.vlgmr.msra.gmra.mrb[20].mxu0 %vm3356_vm15, %v9970_v1  ;;  %v10389_v2 = vpop.permute.xlu1 %10388  ;;  %v10402_v42 = vsel %vm6553_vm5, %v10385_v11, %v10387_v16 }
 0x85f   : > { %10085 = vmatpush1.msra.mxu0 %v9993_v15  ;;  %10148 = vmatprep.mubr.f32.mxu0 %v12305_v20  ;;  %v10403_v9 = vsel %vm6553_vm5, %v10387_v16, %v10389_v2 }
 0x860   : > { %10155 = vmatprep.subr.mxu0 %v9996_v5 }
 0x861   : > { %v10391_v24 = vpop.permute.xlu0 %10390 }
 0x862   : > { %11228 = vmatmul.mubr.msk.f32.vlgmr.msra.gmra.mrb[22].mxu0 %vm3356_vm15, %v9970_v1  ;;  %v10393_v22 = vpop.permute.xlu1 %10392  ;;  %v10404_v17 = vsel %vm6553_vm5, %v10389_v2, %v10391_v24 }
 0x863   : > { %10156 = vmatpush1.msra.mxu0 %v9995_v7  ;;  %10219 = vmatprep.mubr.f32.mxu0 %v12305_v20  ;;  %v10405_v26 = vsel %vm6553_vm5, %v10391_v24, %v10393_v22 }
 0x864   : > { %10226 = vmatprep.subr.mxu0 %v9998_v12 }
 0x865   : > { %v10395_v19 = vpop.permute.xlu0 %10394 }
 0x866   : > { %11229 = vmatmul.mubr.msk.f32.vlgmr.msra.gmra.mrb[24].mxu0 %vm3356_vm15, %v9970_v1  ;;  %v10397_v13 = vpop.permute.xlu1 %10396  ;;  %v10406_v10 = vsel %vm6553_vm5, %v10393_v22, %v10395_v19 }
 0x867   : > { %10227 = vmatpush1.msra.mxu0 %v9997_v14  ;;  %10290 = vmatprep.mubr.f32.mxu0 %v12305_v20  ;;  %v10407_v27 = vsel %vm6553_vm5, %v10395_v19, %v10397_v13 }
 0x868   : > { %10297 = vmatprep.subr.mxu0 %v9990_v3 }
 0x869   : > { %v10399_v63 = vpop.permute.xlu0 %10398 }
 0x86a   : > { %11230 = vmatmul.mubr.msk.f32.vlgmr.msra.gmra.mrb[26].mxu0 %vm3356_vm15, %v9970_v1  ;;  %v10408_v29 = vsel %vm6553_vm5, %v10397_v13, %v10399_v63 }
 0x86b   : > { %10298 = vmatpush1.msra.mxu0 %v9999_v4  ;;  %10361 = vmatprep.mubr.f32.mxu0 %v12305_v20 }
 0x86c   : > { %10422 = vmatprep.subr.mxu0 %v10401_v18 }
 0x86e   : > { %11231 = vmatmul.mubr.msk.f32.vlgmr.msra.gmra.mrb[28].mxu0 %vm3356_vm15, %v9970_v1 }
 0x86f   : > { %10423 = vmatpush1.msra.mxu0 %v10400_v21  ;;  %10486 = vmatprep.mubr.f32.mxu0 %v12305_v20 }
 0x870   : > { %10493 = vmatprep.subr.mxu0 %v10403_v9 }
 0x872   : > { %11232 = vmatmul.mubr.msk.f32.vlgmr.msra.gmra.mrb[20].mxu0 %vm3356_vm15, %v10379_v25 }
 0x873   : > { %10494 = vmatpush1.msra.mxu0 %v10402_v42  ;;  %10557 = vmatprep.mubr.f32.mxu0 %v12305_v20 }
 0x874   : > { %10564 = vmatprep.subr.mxu0 %v10405_v26 }
 0x876   : > { %11233 = vmatmul.mubr.msk.f32.vlgmr.msra.gmra.mrb[22].mxu0 %vm3356_vm15, %v10379_v25 }
 0x877   : > { %10565 = vmatpush1.msra.mxu0 %v10404_v17  ;;  %10628 = vmatprep.mubr.f32.mxu0 %v12305_v20 }
 0x878   : > { %10635 = vmatprep.subr.mxu0 %v10407_v27  ;;  %v10791_v28 = vpop.permute.xlu1 %10790 }
 0x879   : > { %v10796_v30 = vrot.slane %v10791_v28, %v13133_v6 }
 0x87a   : > { %11234 = vmatmul.mubr.msk.f32.vlgmr.msra.gmra.mrb[24].mxu0 %vm3356_vm15, %v10379_v25 }
 0x87b   : > { %10636 = vmatpush1.msra.mxu0 %v10406_v10  ;;  %10699 = vmatprep.mubr.f32.mxu0 %v12305_v20 }
 0x87c   : > { %10706 = vmatprep.subr.mxu0 %v10399_v63 }
 0x87e   : > { %11235 = vmatmul.mubr.msk.f32.vlgmr.msra.gmra.mrb[26].mxu0 %vm3356_vm15, %v10379_v25 }
 0x87f   : > { %10707 = vmatpush1.msra.mxu0 %v10408_v29  ;;  %10770 = vmatprep.mubr.f32.mxu0 %v12305_v20 }
 0x882   : > { %11236 = vmatmul.mubr.msk.f32.vlgmr.msra.gmra.mrb[28].mxu0 %vm3356_vm15, %v10379_v25  ;;  %v12322_v25 = vmov 1966171168  }
 0x883   : > { %v10882_v42 = vunpack.c.l.s4 %v12322_v25 }
 0x885   : > { %v10883_v27 = vunpack.c.0.s8 %v10882_v42 }
 0x945   : > { %v10488_v31 = vpop.f32.mrb[20].mxu0 }
 0x946   : > { %v10797_v32 = vadd.f32 %v10796_v30, %v10488_v31  ;;  %v10490_v33 = vpop.f32.mrb[21].mxu0 }
 0x947   : > { %v10798_v34 = vadd.f32 %v10796_v30, %v10490_v33  ;;  %v10886_v33 = vsub.s32 %v10883_v27, %v13124_v62 }
 0x948   : > { %v10807_v35 = vsub.f32 0.0, %v10797_v32 }
 0x949   : > { %v10808_v36 = vsub.f32 0.0, %v10798_v34  ;;  %v10559_v37 = vpop.f32.mrb[22].mxu0 }
 0x94a   : > { %v10817_v38 = vmul.f32 1.442695, %v10807_v35  ;;  %v10799_v39 = vadd.f32 %v10796_v30, %v10559_v37  ;;  %v10561_v40 = vpop.f32.mrb[23].mxu0 }
 0x94b   : > { %v10819_v41 = vmul.f32 1.442695, %v10808_v36  ;;  %v10800_v43 = vadd.f32 %v10796_v30, %v10561_v40 }
 0x94c   : > { %12123 = vpow2.f32 %v10817_v38  ;;  %v10809_v44 = vsub.f32 0.0, %v10799_v39 }
 0x94d   : > { %12125 = vpow2.f32 %v10819_v41  ;;  %v10810_v20 = vsub.f32 0.0, %v10800_v43  ;;  %v10630_v46 = vpop.f32.mrb[24].mxu0 }
 0x94e   : > { %v10821_v47 = vmul.f32 1.442695, %v10809_v44  ;;  %v10801_v48 = vadd.f32 %v10796_v30, %v10630_v46  ;;  %v10632_v6 = vpop.f32.mrb[25].mxu0 }
 0x94f   : > { %v10823_v49 = vmul.f32 1.442695, %v10810_v20  ;;  %v10802_v50 = vadd.f32 %v10796_v30, %v10632_v6 }
 0x950   : > { %12127 = vpow2.f32 %v10821_v47  ;;  %v10811_v51 = vsub.f32 0.0, %v10801_v48 }
 0x951   : > { %12129 = vpow2.f32 %v10823_v49  ;;  %v10812_v52 = vsub.f32 0.0, %v10802_v50  ;;  %v10701_v53 = vpop.f32.mrb[26].mxu0 }
 0x952   : > { %v10825_v55 = vmul.f32 1.442695, %v10811_v51  ;;  %v10803_v56 = vadd.f32 %v10796_v30, %v10701_v53  ;;  %v10703_v57 = vpop.f32.mrb[27].mxu0 }
 0x953   : > { %v10827_v23 = vmul.f32 1.442695, %v10812_v52  ;;  %v10804_v59 = vadd.f32 %v10796_v30, %v10703_v57 }
 0x954   : > { %12131 = vpow2.f32 %v10825_v55  ;;  %v10813_v61 = vsub.f32 0.0, %v10803_v56 }
 0x955   : > { %12133 = vpow2.f32 %v10827_v23  ;;  %v10814_v0 = vsub.f32 0.0, %v10804_v59  ;;  %v10772_v58 = vpop.f32.mrb[28].mxu0 }
 0x956   : > { %v12124_v45 = vpop.eup %12123  ;;  %v10829_v1 = vmul.f32 1.442695, %v10813_v61  ;;  %v10805_v60 = vadd.f32 %v10796_v30, %v10772_v58  ;;  %v10774_v3 = vpop.f32.mrb[29].mxu0 }
 0x957   : > { %v12126_v15 = vpop.eup %12125  ;;  %v10837_v5 = vadd.f32 1.0, %v12124_v45  ;;  %v10831_v7 = vmul.f32 1.442695, %v10814_v0  ;;  %v10806_v8 = vadd.f32 %v10796_v30, %v10774_v3 }
 0x958   : > { %v10838_v11 = vadd.f32 1.0, %v12126_v15  ;;  %12135 = vpow2.f32 %v10829_v1  ;;  %v10815_v12 = vsub.f32 0.0, %v10805_v60 }
 0x959   : > { %12137 = vrcp.f32 %v10837_v5  ;;  %v10816_v14 = vsub.f32 0.0, %v10806_v8 }
 0x95a   : > { %v12128_v2 = vpop.eup %12127  ;;  %12139 = vrcp.f32 %v10838_v11  ;;  %v10833_v16 = vmul.f32 1.442695, %v10815_v12 }
 0x95b   : > { %v12130_v4 = vpop.eup %12129  ;;  %v10839_v18 = vadd.f32 1.0, %v12128_v2  ;;  %12141 = vpow2.f32 %v10831_v7  ;;  %v10835_v21 = vmul.f32 1.442695, %v10816_v14 }
 0x95c   : > { %v10840_v22 = vadd.f32 1.0, %v12130_v4  ;;  %12143 = vpow2.f32 %v10833_v16 }
 0x95d   : > { %12145 = vrcp.f32 %v10839_v18 }
 0x95e   : > { %v12132_v24 = vpop.eup %12131  ;;  %12147 = vrcp.f32 %v10840_v22 }
 0x95f   : > { %v12134_v9 = vpop.eup %12133  ;;  %v10841_v26 = vadd.f32 1.0, %v12132_v24  ;;  %12149 = vpow2.f32 %v10835_v21 }
 0x960   : > { %v10842_v13 = vadd.f32 1.0, %v12134_v9 }
 0x961   : > { %12151 = vrcp.f32 %v10841_v26 }
 0x962   : > { %v12136_v19 = vpop.eup %12135  ;;  %12153 = vrcp.f32 %v10842_v13 }
 0x963   : > { %v12138_v17 = vpop.eup %12137  ;;  %v10843_v10 = vadd.f32 1.0, %v12136_v19 }
 0x964   : > { %v12140_v63 = vpop.eup %12139 }
 0x965   : > { %v12142_v29 = vpop.eup %12141  ;;  %v10877_v28 = vcombine.low %v12138_v17, %v12140_v63  ;;  %12155 = vrcp.f32 %v10843_v10 }
 0x966   : > { %v12144_v30 = vpop.eup %12143  ;;  %v10844_v31 = vadd.f32 1.0, %v12142_v29 }
 0x967   : > { %v12146_v32 = vpop.eup %12145  ;;  %v10845_v34 = vadd.f32 1.0, %v12144_v30  ;;  %v10887_v40 = vrot.slane %v10877_v28, %v10886_v33 }
 0x968   : > { %v12148_v35 = vpop.eup %12147  ;;  %12157 = vrcp.f32 %v10844_v31 }
 0x969   : > { %v12150_v36 = vpop.eup %12149  ;;  %v10878_v37 = vcombine.low %v12146_v32, %v12148_v35  ;;  %12159 = vrcp.f32 %v10845_v34 }
 0x96a   : > { %v10846_v38 = vadd.f32 1.0, %v12150_v36 }
 0x96b   : > { %v12152_v39 = vpop.eup %12151  ;;  %v10894_v41 = vrot.slane %v10878_v37, %v10886_v33 }
 0x96c   : > { %v12154_v43 = vpop.eup %12153  ;;  %12161 = vrcp.f32 %v10846_v38 }
 0x96d   : > { %v10909_v44 = vcombine.low %v10887_v40, %v10894_v41  ;;  %v10879_v20 = vcombine.low %v12152_v39, %v12154_v43 }
 0x96f   : > { %v12156_v46 = vpop.eup %12155  ;;  %v10901_v62 = vrot.slane %v10879_v20, %v10886_v33  ;;  %v10917_v53 = vrot.slane %v10909_v44, %v10886_v33 }
 0x972   : > { %v12158_v47 = vpop.eup %12157 }
 0x973   : > { %v10880_v48 = vcombine.low %v12156_v46, %v12158_v47  ;;  %v12160_v6 = vpop.eup %12159 }
 0x975   : > { %v10908_v49 = vrot.slane %v10880_v48, %v10886_v33 }
 0x976   : > { %v12162_v50 = vpop.eup %12161 }
 0x977   : > { %v10910_v51 = vcombine.low %v10901_v62, %v10908_v49  ;;  %v10926_v52 = vcombine.low %v12160_v6, %v12162_v50 }
 0x979   : > { %v10924_v55 = vrot.slane %v10910_v51, %v10886_v33  ;;  %v10933_v56 = vrot.slane %v10926_v52, %v10886_v33 }
 0x97b   : > { %v10925_v57 = vcombine.low %v10917_v53, %v10924_v55  ;;  %v10940_v23 = vrot.slane %v10933_v56, %v10886_v33 }
 0x97d   : > { %10943 = vst [vmem:[%s416_s20] sm:$0xff] %v10925_v57  ;;  %10948 = vst.msk [vmem:[%s416_s20 + $0x8] sm:$0x3] %vm10946_vm3, %v10940_v23 }
 0x97e PF: > { %s25_s15 = sadd.s32 1, %s12293_s15  }
 0x97f   : > { %p22_p1 = scmp.ge.s32.totalorder %s25_s15, 4  }
 0x981   :  { %24 = sbr.rel (!%p22_p1) target bundleno = 6 (0x6), region = 131 }
 0x988   :  { %10968 = vsyncpa [#allocation5], 1 }
 0x989   :  { %10970 = vsyncpa [#allocation5 + $0x1], 1 }
 0x98a   :  { %10971 = vsyncpa [#allocation7], 1 }
 0x98b   :  { %10972 = vsyncpa [#allocation10], 1 }

</bundles_post_ra>
